<compile_context>
chip_gen: v6e
topology: v6e:2x2x1
jax: 0.10.0
libtpu: 0.0.40
codegen_flags: <defaults>
</compile_context>

<pallas_src>
import math
import functools

import numpy as np
import jax
import jax.numpy as jnp
from jax.experimental import pallas as pl
from jax.experimental.pallas import tpu as pltpu


OUT_W = 128          # lane-dense output slab width (>= num_classes + 2 + 1)
_REF_PREC = jax.lax.Precision.HIGHEST   # reference-only matmul precision


# ----------------------------------------------------------------------------
# Pallas kernel: full FCOS head forward over ALL pyramid levels at once.
# ----------------------------------------------------------------------------
def fcos_head_kernel(x_ref, mprev_ref, mnext_ref, lvlavg_ref, scatter_ref,
                     scales_ref,
                     tw_ref, tb_ref, tg_ref, tbe_ref,
                     hw_ref, hb_ref,
                     mixw_ref, mixb_ref, mixg_ref, mixbe_ref,
                     i1w_ref, i1b_ref, i1g_ref, i1be_ref,
                     i2w_ref, i2b_ref,
                     out_ref, *, L, num_classes):
    f32 = jnp.float32
    bf16 = jnp.bfloat16

    mprev = mprev_ref[...]          # (N,1) 0 at segment-start rows / pad rows
    mnext = mnext_ref[...]          # (N,1) 0 at segment-end rows / pad rows
    lvl_avg = lvlavg_ref[...]       # (num_levels, N): 1/count per level
    scatter = scatter_ref[...]      # (N, num_levels): one-hot level membership

    def dot32(a, b):
        return jnp.dot(a, b, preferred_element_type=f32)

    def conv_k3(x, w0, w1, w2, b):
        # Conv1d(k=3, stride=1, pad=1): time-shifted copies come from XLU
        # rolls (circular) with boundary masks zeroing every batch/level edge,
        # then three accumulated bf16 MXU dots (f32 accumulation) -- no
        # lane-concat of taps, no N^2 shift matrices.
        n = x.shape[0]
        xp = (pltpu.roll(x, 1, axis=0) * mprev).astype(bf16)      # row r <- r-1
        xn = (pltpu.roll(x, n - 1, axis=0) * mnext).astype(bf16)  # row r <- r+1
        xc = x.astype(bf16)
        return dot32(xp, w0) + dot32(xc, w1) + dot32(xn, w2) + b

    def bn_relu(y, g, be, eps=1e-5):
        # Training-mode BatchNorm1d with statistics PER pyramid level via
        # rectangular (num_levels, N) reductions + (N, num_levels) scatter
        # broadcast; two-pass centered (biased) variance, fp32, then ReLU.
        m = dot32(lvl_avg, y)                        # (num_levels, W) mean
        d = y - dot32(scatter, m)                    # centered, (N, W)
        v = dot32(lvl_avg, d * d)                    # (num_levels, W) variance
        sc = g * jax.lax.rsqrt(v + eps)              # (num_levels, W)
        return jnp.maximum(d * dot32(scatter, sc) + be, 0.0)

    # ---- initial fused [cls | box] state built in VMEM (no HBM duplicate) --
    x = x_ref[...]
    s = jnp.concatenate([x, x], axis=-1)             # (N, 2C)

    # ---- cls & bbox towers, fused (block-diagonal per-tap weights) ---------
    for i in range(L):   # TODO(synk): lax.fori_loop(unroll=True) if L grows
        s = bn_relu(conv_k3(s, tw_ref[3 * i + 0], tw_ref[3 * i + 1],
                            tw_ref[3 * i + 2], tb_ref[i]),
                    tg_ref[i], tbe_ref[i])

    # ---- cls_logits + bbox_pred fused head -> lane-dense (N, OUT_W) slab ---
    head = conv_k3(s, hw_ref[0], hw_ref[1], hw_ref[2], hb_ref[...])
    scale_rows = dot32(scatter, scales_ref[...])     # per-row (=per-level) Scale
    lane = jax.lax.broadcasted_iota(jnp.int32, head.shape, 1)
    is_bbox = (lane >= num_classes) & (lane < num_classes + 2)
    out = jnp.where(is_bbox, jnp.exp(head * scale_rows), head)

    # ---- mix_fc: Conv1d(2C->C, k=1) on cat([cls, box]) == s, then BN+ReLU --
    mix = dot32(s.astype(bf16), mixw_ref[...]) + mixb_ref[...]
    mix = bn_relu(mix, mixg_ref[...], mixbe_ref[...])

    # ---- iou_scores: Conv(C->C/2,k3)->BN->ReLU->Conv(C/2->1,k1) ------------
    ih = bn_relu(conv_k3(mix, i1w_ref[0], i1w_ref[1], i1w_ref[2],
                         i1b_ref[...]),
                 i1g_ref[...], i1be_ref[...])
    iou = jnp.sum(ih * i2w_ref[...], axis=-1, keepdims=True) + i2b_ref[...]

    out_ref[...] = jnp.where(lane == num_classes + 2, iou, out)  # single store


# ----------------------------------------------------------------------------
# Wrapper glue: small static operands, fused weight packing, layout transforms.
# ----------------------------------------------------------------------------
def _build_static_ops(B, level_ts, n_pad):
    """Boundary masks + per-level averaging / scatter matrices (O(N*L) only)."""
    num_levels = len(level_ts)
    mprev = np.ones((n_pad, 1), np.float32)
    mnext = np.ones((n_pad, 1), np.float32)
    lvl_avg = np.zeros((num_levels, n_pad), np.float32)
    scatter = np.zeros((n_pad, num_levels), np.float32)
    off = 0
    for lvl, t in enumerate(level_ts):
        sz = B * t
        lvl_avg[lvl, off:off + sz] = 1.0 / sz
        scatter[off:off + sz, lvl] = 1.0
        for b in range(B):
            mprev[off + b * t, 0] = 0.0            # first row of each segment
            mnext[off + (b + 1) * t - 1, 0] = 0.0  # last row of each segment
        off += sz
    mprev[off:] = 0.0                              # padded rows (if any)
    mnext[off:] = 0.0
    return (jnp.asarray(mprev), jnp.asarray(mnext),
            jnp.asarray(lvl_avg), jnp.asarray(scatter))


def _pack_kernel_params(params, num_classes):
    """Block-diagonal per-tap / lane-padded kernel operands (MXU weights bf16)."""
    C = params["mix_w"].shape[1]
    L = params["cls_b"].shape[0]
    C2 = params["iou1_w"].shape[-1]
    bf16 = jnp.bfloat16

    cls_w = np.asarray(params["cls_w"], np.float32)
    box_w = np.asarray(params["box_w"], np.float32)
    tw = np.zeros((3 * L, 2 * C, 2 * C), np.float32)   # per tap: [cls | box]
    for i in range(L):
        for k in range(3):
            tw[3 * i + k, :C, :C] = cls_w[3 * i + k]
            tw[3 * i + k, C:, C:] = box_w[3 * i + k]
    tb = jnp.concatenate([params["cls_b"], params["box_b"]], axis=-1)
    tg = jnp.concatenate([params["cls_g"], params["box_g"]], axis=-1)
    tbe = jnp.concatenate([params["cls_be"], params["box_be"]], axis=-1)

    # fused head: cols [0:NC]=cls_logits (from cls half), [NC:NC+2]=bbox_pred
    # (from box half), rest zero -> lane-dense OUT_W output slab.
    logit_w = np.asarray(params["logit_w"], np.float32)
    bbox_w = np.asarray(params["bbox_w"], np.float32)
    hw = np.zeros((3, 2 * C, OUT_W), np.float32)
    for k in range(3):
        hw[k, :C, :num_classes] = logit_w[k]
        hw[k, C:, num_classes:num_classes + 2] = bbox_w[k]
    hb = np.zeros((1, OUT_W), np.float32)
    hb[:, :num_classes] = np.asarray(params["logit_b"])
    hb[:, num_classes:num_classes + 2] = np.asarray(params["bbox_b"])

    return dict(
        tw=jnp.asarray(tw).astype(bf16), tb=tb, tg=tg, tbe=tbe,
        hw=jnp.asarray(hw).astype(bf16), hb=jnp.asarray(hb),
        mix_w=params["mix_w"].astype(bf16), mix_b=params["mix_b"],
        mix_g=params["mix_g"], mix_be=params["mix_be"],
        i1w=params["iou1_w"].astype(bf16), i1b=params["iou1_b"],
        i1g=params["iou1_g"], i1be=params["iou1_be"],
        i2w=params["iou2_w"].reshape(1, C2), i2b=params["iou2_b"])


def fcos_head_forward(features, params):
    """features: list of (B, C, T) arrays (PyTorch NCL layout)."""
    B, C, _ = features[0].shape
    level_ts = [int(f.shape[2]) for f in features]
    L = params["cls_b"].shape[0]
    NC = params["logit_w"].shape[-1]
    N = B * sum(level_ts)
    n_pad = ((N + 7) // 8) * 8        # sublane-aligned rows for pltpu.roll

    # channels-last rows, all levels concatenated into one (N, C) slab
    x = jnp.concatenate(
        [jnp.transpose(f, (0, 2, 1)).reshape(B * t, C)
         for f, t in zip(features, level_ts)], axis=0)
    if n_pad != N:
        x = jnp.concatenate([x, jnp.zeros((n_pad - N, C), x.dtype)], axis=0)

    mprev, mnext, lvl_avg, scatter = _build_static_ops(B, level_ts, n_pad)
    kp = _pack_kernel_params(params, NC)
    scales = jnp.concatenate([s.reshape(1, 1) for s in params["scales"]],
                             axis=0)                       # (num_levels, 1)

    vmem = pl.BlockSpec(memory_space=pltpu.MemorySpace.VMEM)
    args = [x, mprev, mnext, lvl_avg, scatter, scales,
            kp["tw"], kp["tb"], kp["tg"], kp["tbe"],
            kp["hw"], kp["hb"],
            kp["mix_w"], kp["mix_b"], kp["mix_g"], kp["mix_be"],
            kp["i1w"], kp["i1b"], kp["i1g"], kp["i1be"],
            kp["i2w"], kp["i2b"]]

    out = pl.pallas_call(
        functools.partial(fcos_head_kernel, L=L, num_classes=NC),
        out_shape=jax.ShapeDtypeStruct((n_pad, OUT_W), jnp.float32),
        in_specs=[vmem] * len(args),
        out_specs=vmem,
        # Resident footprint is now O(N*C) (no N^2 matrices); a modest scoped
        # VMEM raise keeps headroom on v5e's 16 MiB default.
        compiler_params=pltpu.CompilerParams(vmem_limit_bytes=32 * 1024 * 1024),
    )(*args)

    # split the lane-dense slab back to per-level PyTorch (B, C_out, T)
    logits_list, bbox_list, iou_list = [], [], []
    off = 0
    for t in level_ts:
        sl = out[off:off + B * t]
        off += B * t
        logits_list.append(jnp.transpose(sl[:, :NC].reshape(B, t, NC), (0, 2, 1)))
        bbox_list.append(jnp.transpose(sl[:, NC:NC + 2].reshape(B, t, 2), (0, 2, 1)))
        iou_list.append(jnp.transpose(sl[:, NC + 2:NC + 3].reshape(B, t, 1), (0, 2, 1)))

    centerness_list = []   # matches PyTorch forward: never populated
    return logits_list, bbox_list, centerness_list, iou_list


# ----------------------------------------------------------------------------
# Deterministic parameter init (mirrors FCOSHead.__init__ init scheme).
# ----------------------------------------------------------------------------
def init_params(key, in_channels, num_classes, conv_layers, prior_prob,
                num_levels):
    C = in_channels
    C2 = C // 2
    ks = jax.random.split(key, 8)

    def nrm(k, shape):
        return (0.01 * jax.random.normal(k, shape)).astype(jnp.float32)

    bias_value = -math.log((1.0 - prior_prob) / prior_prob)

    params = {
        # towers: conv weights stacked as (L*3, Cin, Cout); bias/BN (L,1,C)
        "cls_w": nrm(ks[0], (conv_layers * 3, C, C)),
        "cls_b": jnp.zeros((conv_layers, 1, C), jnp.float32),
        "cls_g": jnp.ones((conv_layers, 1, C), jnp.float32),
        "cls_be": jnp.zeros((conv_layers, 1, C), jnp.float32),
        "box_w": nrm(ks[1], (conv_layers * 3, C, C)),
        "box_b": jnp.zeros((conv_layers, 1, C), jnp.float32),
        "box_g": jnp.ones((conv_layers, 1, C), jnp.float32),
        "box_be": jnp.zeros((conv_layers, 1, C), jnp.float32),
        # cls_logits (bias initialised to focal-loss prior)
        "logit_w": nrm(ks[2], (3, C, num_classes)),
        "logit_b": jnp.full((1, num_classes), bias_value, jnp.float32),
        # bbox_pred
        "bbox_w": nrm(ks[3], (3, C, 2)),
        "bbox_b": jnp.zeros((1, 2), jnp.float32),
        # mix_fc (k=1 conv): rows [0:C]=cls channels, [C:2C]=box channels
        "mix_w": nrm(ks[4], (2 * C, C)),
        "mix_b": jnp.zeros((1, C), jnp.float32),
        "mix_g": jnp.ones((1, C), jnp.float32),
        "mix_be": jnp.zeros((1, C), jnp.float32),
        # iou_scores
        "iou1_w": nrm(ks[5], (3, C, C2)),
        "iou1_b": jnp.zeros((1, C2), jnp.float32),
        "iou1_g": jnp.ones((1, C2), jnp.float32),
        "iou1_be": jnp.zeros((1, C2), jnp.float32),
        "iou2_w": nrm(ks[6], (C2, 1)),
        "iou2_b": jnp.zeros((1, 1), jnp.float32),
        # per-level Scale modules (init 1.0)
        "scales": [jnp.ones((1, 1), jnp.float32) for _ in range(num_levels)],
    }
    return params


# ----------------------------------------------------------------------------
# Pure-JAX reference (straightforward per-level / per-batch math, no Pallas).
# ----------------------------------------------------------------------------
def _conv1d_k3(x_nc, w0, w1, w2, b_1c, B, T):
    Cin = x_nc.shape[-1]
    zero = jnp.zeros((1, Cin), jnp.float32)
    prev_rows, next_rows = [], []
    for b in range(B):
        xb = x_nc[b * T:(b + 1) * T, :]
        prev_rows.append(jnp.concatenate([zero, xb[:-1, :]], axis=0))
        next_rows.append(jnp.concatenate([xb[1:, :], zero], axis=0))
    x_prev = jnp.concatenate(prev_rows, axis=0)
    x_next = jnp.concatenate(next_rows, axis=0)
    dot = functools.partial(jnp.dot, preferred_element_type=jnp.float32,
                            precision=_REF_PREC)
    return dot(x_prev, w0) + dot(x_nc, w1) + dot(x_next, w2) + b_1c


def _bn_relu(y_nc, gamma_1c, beta_1c, eps=1e-5):
    mean = jnp.mean(y_nc, axis=0, keepdims=True)
    var = jnp.mean(jnp.square(y_nc - mean), axis=0, keepdims=True)
    y = (y_nc - mean) * jax.lax.rsqrt(var + eps) * gamma_1c + beta_1c
    return jnp.maximum(y, 0.0)


def ref_forward(features, params):
    L = params["cls_b"].shape[0]
    NC = params["logit_w"].shape[-1]
    dot = functools.partial(jnp.dot, preferred_element_type=jnp.float32,
                            precision=_REF_PREC)
    logits_l, bbox_l, iou_l = [], [], []
    for lvl, feat in enumerate(features):
        B, C, T = feat.shape
        x = jnp.transpose(feat, (0, 2, 1)).reshape(B * T, C)
        cls_t, box_t = x, x
        for i in range(L):
            cls_t = _bn_relu(_conv1d_k3(cls_t, params["cls_w"][3 * i],
                                        params["cls_w"][3 * i + 1],
                                        params["cls_w"][3 * i + 2],
                                        params["cls_b"][i], B, T),
                             params["cls_g"][i], params["cls_be"][i])
            box_t = _bn_relu(_conv1d_k3(box_t, params["box_w"][3 * i],
                                        params["box_w"][3 * i + 1],
                                        params["box_w"][3 * i + 2],
                                        params["box_b"][i], B, T),
                             params["box_g"][i], params["box_be"][i])
        logits = _conv1d_k3(cls_t, params["logit_w"][0], params["logit_w"][1],
                            params["logit_w"][2], params["logit_b"], B, T)
        bbox = jnp.exp(_conv1d_k3(box_t, params["bbox_w"][0],
                                  params["bbox_w"][1], params["bbox_w"][2],
                                  params["bbox_b"], B, T)
                       * params["scales"][lvl][0, 0])
        mix = dot(jnp.concatenate([cls_t, box_t], axis=-1),
                  params["mix_w"]) + params["mix_b"]
        mix = _bn_relu(mix, params["mix_g"], params["mix_be"])
        iou = _bn_relu(_conv1d_k3(mix, params["iou1_w"][0], params["iou1_w"][1],
                                  params["iou1_w"][2], params["iou1_b"], B, T),
                       params["iou1_g"], params["iou1_be"])
        iou = dot(iou, params["iou2_w"]) + params["iou2_b"]
        logits_l.append(jnp.transpose(logits.reshape(B, T, NC), (0, 2, 1)))
        bbox_l.append(jnp.transpose(bbox.reshape(B, T, 2), (0, 2, 1)))
        iou_l.append(jnp.transpose(iou.reshape(B, T, 1), (0, 2, 1)))
    return logits_l, bbox_l, [], iou_l


# ----------------------------------------------------------------------------
if __name__ == "__main__":
    # cfg: fcos_num_class=4 (=> 3 foreground classes), fcos_conv_layers=2,
    #      fcos_prior_prob=0.01 ; in_channels=32 ; 3 pyramid levels.
    IN_CHANNELS = 32
    NUM_CLASSES = 4 - 1
    CONV_LAYERS = 2
    PRIOR_PROB = 0.01
    LEVEL_T = (16, 32, 8)
    B = 2

    key = jax.random.PRNGKey(0)
    k_param, k_feat = jax.random.split(key)
    params = init_params(k_param, IN_CHANNELS, NUM_CLASSES, CONV_LAYERS,
                         PRIOR_PROB, num_levels=len(LEVEL_T))

    feat_keys = jax.random.split(k_feat, len(LEVEL_T))
    features = [jax.random.normal(fk, (B, IN_CHANNELS, T), jnp.float32)
                for fk, T in zip(feat_keys, LEVEL_T)]

    logits, bbox_reg, centerness, iou_scores = fcos_head_forward(features, params)
    jax.block_until_ready((logits, bbox_reg, iou_scores))

    # cross-check against pure-JAX fp32 reference (tolerance accounts for the
    # bf16 MXU operands in the Pallas path; accumulation stays fp32)
    r_logits, r_bbox, _, r_iou = ref_forward(features, params)
    for got, want in zip(logits + bbox_reg + iou_scores,
                         r_logits + r_bbox + r_iou):
        assert got.shape == want.shape
        assert jnp.allclose(got, want, atol=1e-2, rtol=1e-2), "mismatch vs reference"
    assert centerness == []  # matches PyTorch forward (list never appended)

    print("KERNEL_OK")
</pallas_src>

<mosaic_0001>
module attributes {stable_mosaic.version = 11 : i64} {
  func.func @fcos_head_kernel(%arg0: memref<112x32xf32, #tpu.memory_space<vmem>>, %arg1: memref<112x1xf32, #tpu.memory_space<vmem>>, %arg2: memref<112x1xf32, #tpu.memory_space<vmem>>, %arg3: memref<3x112xf32, #tpu.memory_space<vmem>>, %arg4: memref<112x3xf32, #tpu.memory_space<vmem>>, %arg5: memref<3x1xf32, #tpu.memory_space<vmem>>, %arg6: memref<6x64x64xbf16, #tpu.memory_space<vmem>>, %arg7: memref<2x1x64xf32, #tpu.memory_space<vmem>>, %arg8: memref<2x1x64xf32, #tpu.memory_space<vmem>>, %arg9: memref<2x1x64xf32, #tpu.memory_space<vmem>>, %arg10: memref<3x64x128xbf16, #tpu.memory_space<vmem>>, %arg11: memref<1x128xf32, #tpu.memory_space<vmem>>, %arg12: memref<64x32xbf16, #tpu.memory_space<vmem>>, %arg13: memref<1x32xf32, #tpu.memory_space<vmem>>, %arg14: memref<1x32xf32, #tpu.memory_space<vmem>>, %arg15: memref<1x32xf32, #tpu.memory_space<vmem>>, %arg16: memref<3x32x16xbf16, #tpu.memory_space<vmem>>, %arg17: memref<1x16xf32, #tpu.memory_space<vmem>>, %arg18: memref<1x16xf32, #tpu.memory_space<vmem>>, %arg19: memref<1x16xf32, #tpu.memory_space<vmem>>, %arg20: memref<1x16xf32, #tpu.memory_space<vmem>>, %arg21: memref<1x1xf32, #tpu.memory_space<vmem>>, %arg22: memref<112x128xf32, #tpu.memory_space<vmem>>) attributes {dimension_semantics = [], scalar_prefetch = 0 : i64, scratch_operands = 0 : i64, tpu.core_type = #tpu.core_type<tc>} {
    %c0 = arith.constant 0 : index
    %c0_0 = arith.constant 0 : index
    %0 = vector.load %arg1[%c0, %c0_0] : memref<112x1xf32, #tpu.memory_space<vmem>>, vector<112x1xf32>
    %c0_1 = arith.constant 0 : index
    %c0_2 = arith.constant 0 : index
    %1 = vector.load %arg2[%c0_1, %c0_2] : memref<112x1xf32, #tpu.memory_space<vmem>>, vector<112x1xf32>
    %c0_3 = arith.constant 0 : index
    %c0_4 = arith.constant 0 : index
    %2 = vector.load %arg3[%c0_3, %c0_4] : memref<3x112xf32, #tpu.memory_space<vmem>>, vector<3x112xf32>
    %c0_5 = arith.constant 0 : index
    %c0_6 = arith.constant 0 : index
    %3 = vector.load %arg4[%c0_5, %c0_6] : memref<112x3xf32, #tpu.memory_space<vmem>>, vector<112x3xf32>
    %c0_7 = arith.constant 0 : index
    %c0_8 = arith.constant 0 : index
    %4 = vector.load %arg0[%c0_7, %c0_8] : memref<112x32xf32, #tpu.memory_space<vmem>>, vector<112x32xf32>
    %5 = tpu.concatenate %4, %4 in 1 : vector<112x32xf32>, vector<112x32xf32> -> vector<112x64xf32>
    %c0_9 = arith.constant 0 : index
    %c0_10 = arith.constant 0 : index
    %c0_11 = arith.constant 0 : index
    %6 = vector.load %arg6[%c0_9, %c0_10, %c0_11] : memref<6x64x64xbf16, #tpu.memory_space<vmem>>, vector<1x64x64xbf16>
    %7 = vector.shape_cast %6 : vector<1x64x64xbf16> to vector<64x64xbf16>
    %c1 = arith.constant 1 : index
    %c0_12 = arith.constant 0 : index
    %c0_13 = arith.constant 0 : index
    %8 = vector.load %arg6[%c1, %c0_12, %c0_13] : memref<6x64x64xbf16, #tpu.memory_space<vmem>>, vector<1x64x64xbf16>
    %9 = vector.shape_cast %8 : vector<1x64x64xbf16> to vector<64x64xbf16>
    %c2 = arith.constant 2 : index
    %c0_14 = arith.constant 0 : index
    %c0_15 = arith.constant 0 : index
    %10 = vector.load %arg6[%c2, %c0_14, %c0_15] : memref<6x64x64xbf16, #tpu.memory_space<vmem>>, vector<1x64x64xbf16>
    %11 = vector.shape_cast %10 : vector<1x64x64xbf16> to vector<64x64xbf16>
    %c0_16 = arith.constant 0 : index
    %c0_17 = arith.constant 0 : index
    %c0_18 = arith.constant 0 : index
    %12 = vector.load %arg7[%c0_16, %c0_17, %c0_18] : memref<2x1x64xf32, #tpu.memory_space<vmem>>, vector<1x1x64xf32>
    %13 = vector.shape_cast %12 : vector<1x1x64xf32> to vector<1x64xf32>
    %c1_i32 = arith.constant 1 : i32
    %14 = tpu.dynamic_rotate %5 by %c1_i32 dim 0 : vector<112x64xf32>, i32 -> vector<112x64xf32>
    %15 = vector.broadcast %0 : vector<112x1xf32> to vector<112x64xf32>
    %16 = arith.mulf %14, %15 : vector<112x64xf32>
    %17 = arith.truncf %16 : vector<112x64xf32> to vector<112x64xbf16>
    %c111_i32 = arith.constant 111 : i32
    %18 = tpu.dynamic_rotate %5 by %c111_i32 dim 0 : vector<112x64xf32>, i32 -> vector<112x64xf32>
    %19 = vector.broadcast %1 : vector<112x1xf32> to vector<112x64xf32>
    %20 = arith.mulf %18, %19 : vector<112x64xf32>
    %21 = arith.truncf %20 : vector<112x64xf32> to vector<112x64xbf16>
    %22 = arith.truncf %5 : vector<112x64xf32> to vector<112x64xbf16>
    %cst = arith.constant dense<0.000000e+00> : vector<112x64xf32>
    %23 = tpu.matmul %17, %7, %cst {dimension_numbers = #tpu.dot_dimension_numbers<[1], [0], [0], [1], [0, 0, 1, 1], [], []>} : vector<112x64xbf16>, vector<64x64xbf16>, vector<112x64xf32> -> vector<112x64xf32>
    %cst_19 = arith.constant dense<0.000000e+00> : vector<112x64xf32>
    %24 = tpu.matmul %22, %9, %cst_19 {dimension_numbers = #tpu.dot_dimension_numbers<[1], [0], [0], [1], [0, 0, 1, 1], [], []>} : vector<112x64xbf16>, vector<64x64xbf16>, vector<112x64xf32> -> vector<112x64xf32>
    %25 = arith.addf %23, %24 : vector<112x64xf32>
    %cst_20 = arith.constant dense<0.000000e+00> : vector<112x64xf32>
    %26 = tpu.matmul %21, %11, %cst_20 {dimension_numbers = #tpu.dot_dimension_numbers<[1], [0], [0], [1], [0, 0, 1, 1], [], []>} : vector<112x64xbf16>, vector<64x64xbf16>, vector<112x64xf32> -> vector<112x64xf32>
    %27 = arith.addf %25, %26 : vector<112x64xf32>
    %28 = vector.broadcast %13 : vector<1x64xf32> to vector<112x64xf32>
    %29 = arith.addf %27, %28 : vector<112x64xf32>
    %c0_21 = arith.constant 0 : index
    %c0_22 = arith.constant 0 : index
    %c0_23 = arith.constant 0 : index
    %30 = vector.load %arg8[%c0_21, %c0_22, %c0_23] : memref<2x1x64xf32, #tpu.memory_space<vmem>>, vector<1x1x64xf32>
    %31 = vector.shape_cast %30 : vector<1x1x64xf32> to vector<1x64xf32>
    %c0_24 = arith.constant 0 : index
    %c0_25 = arith.constant 0 : index
    %c0_26 = arith.constant 0 : index
    %32 = vector.load %arg9[%c0_24, %c0_25, %c0_26] : memref<2x1x64xf32, #tpu.memory_space<vmem>>, vector<1x1x64xf32>
    %33 = vector.shape_cast %32 : vector<1x1x64xf32> to vector<1x64xf32>
    %cst_27 = arith.constant dense<0.000000e+00> : vector<3x64xf32>
    %34 = tpu.matmul %2, %29, %cst_27 {dimension_numbers = #tpu.dot_dimension_numbers<[1], [0], [0], [1], [0, 0, 1, 1], [], []>} : vector<3x112xf32>, vector<112x64xf32>, vector<3x64xf32> -> vector<3x64xf32>
    %cst_28 = arith.constant dense<0.000000e+00> : vector<112x64xf32>
    %35 = tpu.matmul %3, %34, %cst_28 {dimension_numbers = #tpu.dot_dimension_numbers<[1], [0], [0], [1], [0, 0, 1, 1], [], []>} : vector<112x3xf32>, vector<3x64xf32>, vector<112x64xf32> -> vector<112x64xf32>
    %36 = arith.subf %29, %35 : vector<112x64xf32>
    %37 = arith.mulf %36, %36 : vector<112x64xf32>
    %cst_29 = arith.constant dense<0.000000e+00> : vector<3x64xf32>
    %38 = tpu.matmul %2, %37, %cst_29 {dimension_numbers = #tpu.dot_dimension_numbers<[1], [0], [0], [1], [0, 0, 1, 1], [], []>} : vector<3x112xf32>, vector<112x64xf32>, vector<3x64xf32> -> vector<3x64xf32>
    %cst_30 = arith.constant 9.99999974E-6 : f32
    %39 = vector.broadcast %cst_30 : f32 to vector<3x64xf32>
    %40 = arith.addf %38, %39 : vector<3x64xf32>
    %41 = math.rsqrt %40 : vector<3x64xf32>
    %42 = vector.broadcast %31 : vector<1x64xf32> to vector<3x64xf32>
    %43 = arith.mulf %42, %41 : vector<3x64xf32>
    %cst_31 = arith.constant dense<0.000000e+00> : vector<112x64xf32>
    %44 = tpu.matmul %3, %43, %cst_31 {dimension_numbers = #tpu.dot_dimension_numbers<[1], [0], [0], [1], [0, 0, 1, 1], [], []>} : vector<112x3xf32>, vector<3x64xf32>, vector<112x64xf32> -> vector<112x64xf32>
    %45 = arith.mulf %36, %44 : vector<112x64xf32>
    %46 = vector.broadcast %33 : vector<1x64xf32> to vector<112x64xf32>
    %47 = arith.addf %45, %46 : vector<112x64xf32>
    %cst_32 = arith.constant 0.000000e+00 : f32
    %48 = vector.broadcast %cst_32 : f32 to vector<112x64xf32>
    %49 = arith.maximumf %47, %48 : vector<112x64xf32>
    %c3 = arith.constant 3 : index
    %c0_33 = arith.constant 0 : index
    %c0_34 = arith.constant 0 : index
    %50 = vector.load %arg6[%c3, %c0_33, %c0_34] : memref<6x64x64xbf16, #tpu.memory_space<vmem>>, vector<1x64x64xbf16>
    %51 = vector.shape_cast %50 : vector<1x64x64xbf16> to vector<64x64xbf16>
    %c4 = arith.constant 4 : index
    %c0_35 = arith.constant 0 : index
    %c0_36 = arith.constant 0 : index
    %52 = vector.load %arg6[%c4, %c0_35, %c0_36] : memref<6x64x64xbf16, #tpu.memory_space<vmem>>, vector<1x64x64xbf16>
    %53 = vector.shape_cast %52 : vector<1x64x64xbf16> to vector<64x64xbf16>
    %c5 = arith.constant 5 : index
    %c0_37 = arith.constant 0 : index
    %c0_38 = arith.constant 0 : index
    %54 = vector.load %arg6[%c5, %c0_37, %c0_38] : memref<6x64x64xbf16, #tpu.memory_space<vmem>>, vector<1x64x64xbf16>
    %55 = vector.shape_cast %54 : vector<1x64x64xbf16> to vector<64x64xbf16>
    %c1_39 = arith.constant 1 : index
    %c0_40 = arith.constant 0 : index
    %c0_41 = arith.constant 0 : index
    %56 = vector.load %arg7[%c1_39, %c0_40, %c0_41] : memref<2x1x64xf32, #tpu.memory_space<vmem>>, vector<1x1x64xf32>
    %57 = vector.shape_cast %56 : vector<1x1x64xf32> to vector<1x64xf32>
    %c1_i32_42 = arith.constant 1 : i32
    %58 = tpu.dynamic_rotate %49 by %c1_i32_42 dim 0 : vector<112x64xf32>, i32 -> vector<112x64xf32>
    %59 = vector.broadcast %0 : vector<112x1xf32> to vector<112x64xf32>
    %60 = arith.mulf %58, %59 : vector<112x64xf32>
    %61 = arith.truncf %60 : vector<112x64xf32> to vector<112x64xbf16>
    %c111_i32_43 = arith.constant 111 : i32
    %62 = tpu.dynamic_rotate %49 by %c111_i32_43 dim 0 : vector<112x64xf32>, i32 -> vector<112x64xf32>
    %63 = vector.broadcast %1 : vector<112x1xf32> to vector<112x64xf32>
    %64 = arith.mulf %62, %63 : vector<112x64xf32>
    %65 = arith.truncf %64 : vector<112x64xf32> to vector<112x64xbf16>
    %66 = arith.truncf %49 : vector<112x64xf32> to vector<112x64xbf16>
    %cst_44 = arith.constant dense<0.000000e+00> : vector<112x64xf32>
    %67 = tpu.matmul %61, %51, %cst_44 {dimension_numbers = #tpu.dot_dimension_numbers<[1], [0], [0], [1], [0, 0, 1, 1], [], []>} : vector<112x64xbf16>, vector<64x64xbf16>, vector<112x64xf32> -> vector<112x64xf32>
    %cst_45 = arith.constant dense<0.000000e+00> : vector<112x64xf32>
    %68 = tpu.matmul %66, %53, %cst_45 {dimension_numbers = #tpu.dot_dimension_numbers<[1], [0], [0], [1], [0, 0, 1, 1], [], []>} : vector<112x64xbf16>, vector<64x64xbf16>, vector<112x64xf32> -> vector<112x64xf32>
    %69 = arith.addf %67, %68 : vector<112x64xf32>
    %cst_46 = arith.constant dense<0.000000e+00> : vector<112x64xf32>
    %70 = tpu.matmul %65, %55, %cst_46 {dimension_numbers = #tpu.dot_dimension_numbers<[1], [0], [0], [1], [0, 0, 1, 1], [], []>} : vector<112x64xbf16>, vector<64x64xbf16>, vector<112x64xf32> -> vector<112x64xf32>
    %71 = arith.addf %69, %70 : vector<112x64xf32>
    %72 = vector.broadcast %57 : vector<1x64xf32> to vector<112x64xf32>
    %73 = arith.addf %71, %72 : vector<112x64xf32>
    %c1_47 = arith.constant 1 : index
    %c0_48 = arith.constant 0 : index
    %c0_49 = arith.constant 0 : index
    %74 = vector.load %arg8[%c1_47, %c0_48, %c0_49] : memref<2x1x64xf32, #tpu.memory_space<vmem>>, vector<1x1x64xf32>
    %75 = vector.shape_cast %74 : vector<1x1x64xf32> to vector<1x64xf32>
    %c1_50 = arith.constant 1 : index
    %c0_51 = arith.constant 0 : index
    %c0_52 = arith.constant 0 : index
    %76 = vector.load %arg9[%c1_50, %c0_51, %c0_52] : memref<2x1x64xf32, #tpu.memory_space<vmem>>, vector<1x1x64xf32>
    %77 = vector.shape_cast %76 : vector<1x1x64xf32> to vector<1x64xf32>
    %cst_53 = arith.constant dense<0.000000e+00> : vector<3x64xf32>
    %78 = tpu.matmul %2, %73, %cst_53 {dimension_numbers = #tpu.dot_dimension_numbers<[1], [0], [0], [1], [0, 0, 1, 1], [], []>} : vector<3x112xf32>, vector<112x64xf32>, vector<3x64xf32> -> vector<3x64xf32>
    %cst_54 = arith.constant dense<0.000000e+00> : vector<112x64xf32>
    %79 = tpu.matmul %3, %78, %cst_54 {dimension_numbers = #tpu.dot_dimension_numbers<[1], [0], [0], [1], [0, 0, 1, 1], [], []>} : vector<112x3xf32>, vector<3x64xf32>, vector<112x64xf32> -> vector<112x64xf32>
    %80 = arith.subf %73, %79 : vector<112x64xf32>
    %81 = arith.mulf %80, %80 : vector<112x64xf32>
    %cst_55 = arith.constant dense<0.000000e+00> : vector<3x64xf32>
    %82 = tpu.matmul %2, %81, %cst_55 {dimension_numbers = #tpu.dot_dimension_numbers<[1], [0], [0], [1], [0, 0, 1, 1], [], []>} : vector<3x112xf32>, vector<112x64xf32>, vector<3x64xf32> -> vector<3x64xf32>
    %cst_56 = arith.constant 9.99999974E-6 : f32
    %83 = vector.broadcast %cst_56 : f32 to vector<3x64xf32>
    %84 = arith.addf %82, %83 : vector<3x64xf32>
    %85 = math.rsqrt %84 : vector<3x64xf32>
    %86 = vector.broadcast %75 : vector<1x64xf32> to vector<3x64xf32>
    %87 = arith.mulf %86, %85 : vector<3x64xf32>
    %cst_57 = arith.constant dense<0.000000e+00> : vector<112x64xf32>
    %88 = tpu.matmul %3, %87, %cst_57 {dimension_numbers = #tpu.dot_dimension_numbers<[1], [0], [0], [1], [0, 0, 1, 1], [], []>} : vector<112x3xf32>, vector<3x64xf32>, vector<112x64xf32> -> vector<112x64xf32>
    %89 = arith.mulf %80, %88 : vector<112x64xf32>
    %90 = vector.broadcast %77 : vector<1x64xf32> to vector<112x64xf32>
    %91 = arith.addf %89, %90 : vector<112x64xf32>
    %cst_58 = arith.constant 0.000000e+00 : f32
    %92 = vector.broadcast %cst_58 : f32 to vector<112x64xf32>
    %93 = arith.maximumf %91, %92 : vector<112x64xf32>
    %c0_59 = arith.constant 0 : index
    %c0_60 = arith.constant 0 : index
    %c0_61 = arith.constant 0 : index
    %94 = vector.load %arg10[%c0_59, %c0_60, %c0_61] : memref<3x64x128xbf16, #tpu.memory_space<vmem>>, vector<1x64x128xbf16>
    %95 = vector.shape_cast %94 : vector<1x64x128xbf16> to vector<64x128xbf16>
    %c1_62 = arith.constant 1 : index
    %c0_63 = arith.constant 0 : index
    %c0_64 = arith.constant 0 : index
    %96 = vector.load %arg10[%c1_62, %c0_63, %c0_64] : memref<3x64x128xbf16, #tpu.memory_space<vmem>>, vector<1x64x128xbf16>
    %97 = vector.shape_cast %96 : vector<1x64x128xbf16> to vector<64x128xbf16>
    %c2_65 = arith.constant 2 : index
    %c0_66 = arith.constant 0 : index
    %c0_67 = arith.constant 0 : index
    %98 = vector.load %arg10[%c2_65, %c0_66, %c0_67] : memref<3x64x128xbf16, #tpu.memory_space<vmem>>, vector<1x64x128xbf16>
    %99 = vector.shape_cast %98 : vector<1x64x128xbf16> to vector<64x128xbf16>
    %c0_68 = arith.constant 0 : index
    %c0_69 = arith.constant 0 : index
    %100 = vector.load %arg11[%c0_68, %c0_69] : memref<1x128xf32, #tpu.memory_space<vmem>>, vector<1x128xf32>
    %c1_i32_70 = arith.constant 1 : i32
    %101 = tpu.dynamic_rotate %93 by %c1_i32_70 dim 0 : vector<112x64xf32>, i32 -> vector<112x64xf32>
    %102 = vector.broadcast %0 : vector<112x1xf32> to vector<112x64xf32>
    %103 = arith.mulf %101, %102 : vector<112x64xf32>
    %104 = arith.truncf %103 : vector<112x64xf32> to vector<112x64xbf16>
    %c111_i32_71 = arith.constant 111 : i32
    %105 = tpu.dynamic_rotate %93 by %c111_i32_71 dim 0 : vector<112x64xf32>, i32 -> vector<112x64xf32>
    %106 = vector.broadcast %1 : vector<112x1xf32> to vector<112x64xf32>
    %107 = arith.mulf %105, %106 : vector<112x64xf32>
    %108 = arith.truncf %107 : vector<112x64xf32> to vector<112x64xbf16>
    %109 = arith.truncf %93 : vector<112x64xf32> to vector<112x64xbf16>
    %cst_72 = arith.constant dense<0.000000e+00> : vector<112x128xf32>
    %110 = tpu.matmul %104, %95, %cst_72 {dimension_numbers = #tpu.dot_dimension_numbers<[1], [0], [0], [1], [0, 0, 1, 1], [], []>} : vector<112x64xbf16>, vector<64x128xbf16>, vector<112x128xf32> -> vector<112x128xf32>
    %cst_73 = arith.constant dense<0.000000e+00> : vector<112x128xf32>
    %111 = tpu.matmul %109, %97, %cst_73 {dimension_numbers = #tpu.dot_dimension_numbers<[1], [0], [0], [1], [0, 0, 1, 1], [], []>} : vector<112x64xbf16>, vector<64x128xbf16>, vector<112x128xf32> -> vector<112x128xf32>
    %112 = arith.addf %110, %111 : vector<112x128xf32>
    %cst_74 = arith.constant dense<0.000000e+00> : vector<112x128xf32>
    %113 = tpu.matmul %108, %99, %cst_74 {dimension_numbers = #tpu.dot_dimension_numbers<[1], [0], [0], [1], [0, 0, 1, 1], [], []>} : vector<112x64xbf16>, vector<64x128xbf16>, vector<112x128xf32> -> vector<112x128xf32>
    %114 = arith.addf %112, %113 : vector<112x128xf32>
    %115 = vector.broadcast %100 : vector<1x128xf32> to vector<112x128xf32>
    %116 = arith.addf %114, %115 : vector<112x128xf32>
    %c0_75 = arith.constant 0 : index
    %c0_76 = arith.constant 0 : index
    %117 = vector.load %arg5[%c0_75, %c0_76] : memref<3x1xf32, #tpu.memory_space<vmem>>, vector<3x1xf32>
    %cst_77 = arith.constant dense<0.000000e+00> : vector<112x1xf32>
    %118 = tpu.matmul %3, %117, %cst_77 {dimension_numbers = #tpu.dot_dimension_numbers<[1], [0], [0], [1], [0, 0, 1, 1], [], []>} : vector<112x3xf32>, vector<3x1xf32>, vector<112x1xf32> -> vector<112x1xf32>
    %119 = tpu.iota {dimensions = array<i32: 1>} : vector<112x128xi32>
    %c3_i32 = arith.constant 3 : i32
    %120 = vector.broadcast %c3_i32 : i32 to vector<112x128xi32>
    %121 = arith.cmpi sge, %119, %120 : vector<112x128xi32>
    %c5_i32 = arith.constant 5 : i32
    %122 = vector.broadcast %c5_i32 : i32 to vector<112x128xi32>
    %123 = arith.cmpi slt, %119, %122 : vector<112x128xi32>
    %124 = arith.andi %121, %123 : vector<112x128xi1>
    %125 = vector.broadcast %118 : vector<112x1xf32> to vector<112x128xf32>
    %126 = arith.mulf %116, %125 : vector<112x128xf32>
    %127 = math.exp %126 : vector<112x128xf32>
    %128 = arith.select %124, %127, %116 : vector<112x128xi1>, vector<112x128xf32>
    %129 = arith.truncf %93 : vector<112x64xf32> to vector<112x64xbf16>
    %c0_78 = arith.constant 0 : index
    %c0_79 = arith.constant 0 : index
    %130 = vector.load %arg12[%c0_78, %c0_79] : memref<64x32xbf16, #tpu.memory_space<vmem>>, vector<64x32xbf16>
    %cst_80 = arith.constant dense<0.000000e+00> : vector<112x32xf32>
    %131 = tpu.matmul %129, %130, %cst_80 {dimension_numbers = #tpu.dot_dimension_numbers<[1], [0], [0], [1], [0, 0, 1, 1], [], []>} : vector<112x64xbf16>, vector<64x32xbf16>, vector<112x32xf32> -> vector<112x32xf32>
    %c0_81 = arith.constant 0 : index
    %c0_82 = arith.constant 0 : index
    %132 = vector.load %arg13[%c0_81, %c0_82] : memref<1x32xf32, #tpu.memory_space<vmem>>, vector<1x32xf32>
    %133 = vector.broadcast %132 : vector<1x32xf32> to vector<112x32xf32>
    %134 = arith.addf %131, %133 : vector<112x32xf32>
    %c0_83 = arith.constant 0 : index
    %c0_84 = arith.constant 0 : index
    %135 = vector.load %arg14[%c0_83, %c0_84] : memref<1x32xf32, #tpu.memory_space<vmem>>, vector<1x32xf32>
    %c0_85 = arith.constant 0 : index
    %c0_86 = arith.constant 0 : index
    %136 = vector.load %arg15[%c0_85, %c0_86] : memref<1x32xf32, #tpu.memory_space<vmem>>, vector<1x32xf32>
    %cst_87 = arith.constant dense<0.000000e+00> : vector<3x32xf32>
    %137 = tpu.matmul %2, %134, %cst_87 {dimension_numbers = #tpu.dot_dimension_numbers<[1], [0], [0], [1], [0, 0, 1, 1], [], []>} : vector<3x112xf32>, vector<112x32xf32>, vector<3x32xf32> -> vector<3x32xf32>
    %cst_88 = arith.constant dense<0.000000e+00> : vector<112x32xf32>
    %138 = tpu.matmul %3, %137, %cst_88 {dimension_numbers = #tpu.dot_dimension_numbers<[1], [0], [0], [1], [0, 0, 1, 1], [], []>} : vector<112x3xf32>, vector<3x32xf32>, vector<112x32xf32> -> vector<112x32xf32>
    %139 = arith.subf %134, %138 : vector<112x32xf32>
    %140 = arith.mulf %139, %139 : vector<112x32xf32>
    %cst_89 = arith.constant dense<0.000000e+00> : vector<3x32xf32>
    %141 = tpu.matmul %2, %140, %cst_89 {dimension_numbers = #tpu.dot_dimension_numbers<[1], [0], [0], [1], [0, 0, 1, 1], [], []>} : vector<3x112xf32>, vector<112x32xf32>, vector<3x32xf32> -> vector<3x32xf32>
    %cst_90 = arith.constant 9.99999974E-6 : f32
    %142 = vector.broadcast %cst_90 : f32 to vector<3x32xf32>
    %143 = arith.addf %141, %142 : vector<3x32xf32>
    %144 = math.rsqrt %143 : vector<3x32xf32>
    %145 = vector.broadcast %135 : vector<1x32xf32> to vector<3x32xf32>
    %146 = arith.mulf %145, %144 : vector<3x32xf32>
    %cst_91 = arith.constant dense<0.000000e+00> : vector<112x32xf32>
    %147 = tpu.matmul %3, %146, %cst_91 {dimension_numbers = #tpu.dot_dimension_numbers<[1], [0], [0], [1], [0, 0, 1, 1], [], []>} : vector<112x3xf32>, vector<3x32xf32>, vector<112x32xf32> -> vector<112x32xf32>
    %148 = arith.mulf %139, %147 : vector<112x32xf32>
    %149 = vector.broadcast %136 : vector<1x32xf32> to vector<112x32xf32>
    %150 = arith.addf %148, %149 : vector<112x32xf32>
    %cst_92 = arith.constant 0.000000e+00 : f32
    %151 = vector.broadcast %cst_92 : f32 to vector<112x32xf32>
    %152 = arith.maximumf %150, %151 : vector<112x32xf32>
    %c0_93 = arith.constant 0 : index
    %c0_94 = arith.constant 0 : index
    %c0_95 = arith.constant 0 : index
    %153 = vector.load %arg16[%c0_93, %c0_94, %c0_95] : memref<3x32x16xbf16, #tpu.memory_space<vmem>>, vector<1x32x16xbf16>
    %154 = vector.shape_cast %153 : vector<1x32x16xbf16> to vector<32x16xbf16>
    %c1_96 = arith.constant 1 : index
    %c0_97 = arith.constant 0 : index
    %c0_98 = arith.constant 0 : index
    %155 = vector.load %arg16[%c1_96, %c0_97, %c0_98] : memref<3x32x16xbf16, #tpu.memory_space<vmem>>, vector<1x32x16xbf16>
    %156 = vector.shape_cast %155 : vector<1x32x16xbf16> to vector<32x16xbf16>
    %c2_99 = arith.constant 2 : index
    %c0_100 = arith.constant 0 : index
    %c0_101 = arith.constant 0 : index
    %157 = vector.load %arg16[%c2_99, %c0_100, %c0_101] : memref<3x32x16xbf16, #tpu.memory_space<vmem>>, vector<1x32x16xbf16>
    %158 = vector.shape_cast %157 : vector<1x32x16xbf16> to vector<32x16xbf16>
    %c0_102 = arith.constant 0 : index
    %c0_103 = arith.constant 0 : index
    %159 = vector.load %arg17[%c0_102, %c0_103] : memref<1x16xf32, #tpu.memory_space<vmem>>, vector<1x16xf32>
    %c1_i32_104 = arith.constant 1 : i32
    %160 = tpu.dynamic_rotate %152 by %c1_i32_104 dim 0 : vector<112x32xf32>, i32 -> vector<112x32xf32>
    %161 = vector.broadcast %0 : vector<112x1xf32> to vector<112x32xf32>
    %162 = arith.mulf %160, %161 : vector<112x32xf32>
    %163 = arith.truncf %162 : vector<112x32xf32> to vector<112x32xbf16>
    %c111_i32_105 = arith.constant 111 : i32
    %164 = tpu.dynamic_rotate %152 by %c111_i32_105 dim 0 : vector<112x32xf32>, i32 -> vector<112x32xf32>
    %165 = vector.broadcast %1 : vector<112x1xf32> to vector<112x32xf32>
    %166 = arith.mulf %164, %165 : vector<112x32xf32>
    %167 = arith.truncf %166 : vector<112x32xf32> to vector<112x32xbf16>
    %168 = arith.truncf %152 : vector<112x32xf32> to vector<112x32xbf16>
    %cst_106 = arith.constant dense<0.000000e+00> : vector<112x16xf32>
    %169 = tpu.matmul %163, %154, %cst_106 {dimension_numbers = #tpu.dot_dimension_numbers<[1], [0], [0], [1], [0, 0, 1, 1], [], []>} : vector<112x32xbf16>, vector<32x16xbf16>, vector<112x16xf32> -> vector<112x16xf32>
    %cst_107 = arith.constant dense<0.000000e+00> : vector<112x16xf32>
    %170 = tpu.matmul %168, %156, %cst_107 {dimension_numbers = #tpu.dot_dimension_numbers<[1], [0], [0], [1], [0, 0, 1, 1], [], []>} : vector<112x32xbf16>, vector<32x16xbf16>, vector<112x16xf32> -> vector<112x16xf32>
    %171 = arith.addf %169, %170 : vector<112x16xf32>
    %cst_108 = arith.constant dense<0.000000e+00> : vector<112x16xf32>
    %172 = tpu.matmul %167, %158, %cst_108 {dimension_numbers = #tpu.dot_dimension_numbers<[1], [0], [0], [1], [0, 0, 1, 1], [], []>} : vector<112x32xbf16>, vector<32x16xbf16>, vector<112x16xf32> -> vector<112x16xf32>
    %173 = arith.addf %171, %172 : vector<112x16xf32>
    %174 = vector.broadcast %159 : vector<1x16xf32> to vector<112x16xf32>
    %175 = arith.addf %173, %174 : vector<112x16xf32>
    %c0_109 = arith.constant 0 : index
    %c0_110 = arith.constant 0 : index
    %176 = vector.load %arg18[%c0_109, %c0_110] : memref<1x16xf32, #tpu.memory_space<vmem>>, vector<1x16xf32>
    %c0_111 = arith.constant 0 : index
    %c0_112 = arith.constant 0 : index
    %177 = vector.load %arg19[%c0_111, %c0_112] : memref<1x16xf32, #tpu.memory_space<vmem>>, vector<1x16xf32>
    %cst_113 = arith.constant dense<0.000000e+00> : vector<3x16xf32>
    %178 = tpu.matmul %2, %175, %cst_113 {dimension_numbers = #tpu.dot_dimension_numbers<[1], [0], [0], [1], [0, 0, 1, 1], [], []>} : vector<3x112xf32>, vector<112x16xf32>, vector<3x16xf32> -> vector<3x16xf32>
    %cst_114 = arith.constant dense<0.000000e+00> : vector<112x16xf32>
    %179 = tpu.matmul %3, %178, %cst_114 {dimension_numbers = #tpu.dot_dimension_numbers<[1], [0], [0], [1], [0, 0, 1, 1], [], []>} : vector<112x3xf32>, vector<3x16xf32>, vector<112x16xf32> -> vector<112x16xf32>
    %180 = arith.subf %175, %179 : vector<112x16xf32>
    %181 = arith.mulf %180, %180 : vector<112x16xf32>
    %cst_115 = arith.constant dense<0.000000e+00> : vector<3x16xf32>
    %182 = tpu.matmul %2, %181, %cst_115 {dimension_numbers = #tpu.dot_dimension_numbers<[1], [0], [0], [1], [0, 0, 1, 1], [], []>} : vector<3x112xf32>, vector<112x16xf32>, vector<3x16xf32> -> vector<3x16xf32>
    %cst_116 = arith.constant 9.99999974E-6 : f32
    %183 = vector.broadcast %cst_116 : f32 to vector<3x16xf32>
    %184 = arith.addf %182, %183 : vector<3x16xf32>
    %185 = math.rsqrt %184 : vector<3x16xf32>
    %186 = vector.broadcast %176 : vector<1x16xf32> to vector<3x16xf32>
    %187 = arith.mulf %186, %185 : vector<3x16xf32>
    %cst_117 = arith.constant dense<0.000000e+00> : vector<112x16xf32>
    %188 = tpu.matmul %3, %187, %cst_117 {dimension_numbers = #tpu.dot_dimension_numbers<[1], [0], [0], [1], [0, 0, 1, 1], [], []>} : vector<112x3xf32>, vector<3x16xf32>, vector<112x16xf32> -> vector<112x16xf32>
    %189 = arith.mulf %180, %188 : vector<112x16xf32>
    %190 = vector.broadcast %177 : vector<1x16xf32> to vector<112x16xf32>
    %191 = arith.addf %189, %190 : vector<112x16xf32>
    %cst_118 = arith.constant 0.000000e+00 : f32
    %192 = vector.broadcast %cst_118 : f32 to vector<112x16xf32>
    %193 = arith.maximumf %191, %192 : vector<112x16xf32>
    %c0_119 = arith.constant 0 : index
    %c0_120 = arith.constant 0 : index
    %194 = vector.load %arg20[%c0_119, %c0_120] : memref<1x16xf32, #tpu.memory_space<vmem>>, vector<1x16xf32>
    %195 = vector.broadcast %194 : vector<1x16xf32> to vector<112x16xf32>
    %196 = arith.mulf %193, %195 : vector<112x16xf32>
    %cst_121 = arith.constant dense<0.000000e+00> : vector<112xf32>
    %197 = vector.multi_reduction <add>, %196, %cst_121 [1] : vector<112x16xf32> to vector<112xf32>
    %198 = vector.shape_cast %197 : vector<112xf32> to vector<112x1xf32>
    %c0_122 = arith.constant 0 : index
    %c0_123 = arith.constant 0 : index
    %199 = vector.load %arg21[%c0_122, %c0_123] : memref<1x1xf32, #tpu.memory_space<vmem>>, vector<1x1xf32>
    %200 = vector.broadcast %199 : vector<1x1xf32> to vector<112x1xf32>
    %201 = arith.addf %198, %200 : vector<112x1xf32>
    %c5_i32_124 = arith.constant 5 : i32
    %202 = vector.broadcast %c5_i32_124 : i32 to vector<112x128xi32>
    %203 = arith.cmpi eq, %119, %202 : vector<112x128xi32>
    %204 = vector.shape_cast %201 : vector<112x1xf32> to vector<112x1xf32>
    %205 = vector.broadcast %204 : vector<112x1xf32> to vector<112x128xf32>
    %206 = arith.select %203, %205, %128 : vector<112x128xi1>, vector<112x128xf32>
    %c0_125 = arith.constant 0 : index
    %c0_126 = arith.constant 0 : index
    %207 = vector.load %arg22[%c0_125, %c0_126] : memref<112x128xf32, #tpu.memory_space<vmem>>, vector<112x128xf32>
    tpu.vector_store %arg22[%c0_125, %c0_126], %206 {strides = array<i32>} : memref<112x128xf32, #tpu.memory_space<vmem>>, vector<112x128xf32>,
    return
  }
}

</mosaic_0001>

<bundles_post_ra>
// kernel: tpu_custom_call.1
= control target key start
LH: loop header
LB: loop body
LE: loop exit
PB: predicated region body
PF: predicated region fallthrough
CT: control target
= control target key end

     0   :  { %s10235_s0 = inlined_call_operand.vmem [shape: f32[112,32], index: 0, kind: input, shape index: {}]   ;;  %s10236_s1 = inlined_call_operand.vmem [shape: f32[112,1], index: 1, kind: input, shape index: {}]   ;;  %s10237_s2 = inlined_call_operand.vmem [shape: f32[112,1], index: 2, kind: input, shape index: {}]   ;;  %s10238_s3 = inlined_call_operand.vmem [shape: f32[3,112], index: 3, kind: input, shape index: {}]   ;;  %s10239_s4 = inlined_call_operand.vmem [shape: f32[112,3], index: 4, kind: input, shape index: {}]   ;;  %s10240_s5 = inlined_call_operand.vmem [shape: f32[3,1], index: 5, kind: input, shape index: {}]   ;;  %s10241_s6 = inlined_call_operand.vmem [shape: bf16[6,64,64], index: 6, kind: input, shape index: {}]   ;;  %s10242_s7 = inlined_call_operand.vmem [shape: f32[2,1,64], index: 7, kind: input, shape index: {}]   ;;  %s10243_s8 = inlined_call_operand.vmem [shape: f32[2,1,64], index: 8, kind: input, shape index: {}]   ;;  %s10244_s9 = inlined_call_operand.vmem [shape: f32[2,1,64], index: 9, kind: input, shape index: {}]   ;;  %s10245_s10 = inlined_call_operand.vmem [shape: bf16[3,64,128], index: 10, kind: input, shape index: {}]   ;;  %s10246_s11 = inlined_call_operand.vmem [shape: f32[1,128], index: 11, kind: input, shape index: {}]   ;;  %s10247_s12 = inlined_call_operand.vmem [shape: bf16[64,32], index: 12, kind: input, shape index: {}]   ;;  %s10248_s13 = inlined_call_operand.vmem [shape: f32[1,32], index: 13, kind: input, shape index: {}]   ;;  %s10249_s14 = inlined_call_operand.vmem [shape: f32[1,32], index: 14, kind: input, shape index: {}]   ;;  %s10250_s15 = inlined_call_operand.vmem [shape: f32[1,32], index: 15, kind: input, shape index: {}]   ;;  %s10251_s16 = inlined_call_operand.vmem [shape: bf16[3,32,16], index: 16, kind: input, shape index: {}]   ;;  %s10252_s17 = inlined_call_operand.vmem [shape: f32[1,16], index: 17, kind: input, shape index: {}]   ;;  %s10253_s18 = inlined_call_operand.vmem [shape: f32[1,16], index: 18, kind: input, shape index: {}]   ;;  %s10254_s19 = inlined_call_operand.vmem [shape: f32[1,16], index: 19, kind: input, shape index: {}]   ;;  %s10255_s20 = inlined_call_operand.vmem [shape: f32[1,16], index: 20, kind: input, shape index: {}]   ;;  %s10256_s21 = inlined_call_operand.<no memory space> [shape: f32[1,1], index: 21, kind: input, shape index: {}]   ;;  %s10257_s22 = inlined_call_operand.hbm [shape: f32[112,128], index: 22, kind: output, shape index: {}]  }
   0x1   :  { %10316 = sst [smem:[#allocation49_spill]] %s10235_s0  ;;  %v27_v0 = vstv %s10256_s21 }
   0x2   :  { %10317 = sst [smem:[#allocation50_spill]] %s10236_s1  ;;  %28 = vst [vmem:[#allocation2] sm:$0x1] %v27_v0 }
   0x3   :  { %10318 = sst [smem:[#allocation51_spill]] %s10237_s2 }
   0x4   :  { %10319 = sst [smem:[#allocation52_spill]] %s10238_s3 }
   0x5   :  { %10320 = sst [smem:[#allocation53_spill]] %s10239_s4 }
   0x6   :  { %10321 = sst [smem:[#allocation54_spill]] %s10240_s5 }
   0x7   :  { %10322 = sst [smem:[#allocation55_spill]] %s10241_s6 }
   0x8   :  { %s10323_s4 = sld [smem:[#allocation49_spill]]  ;;  %s7056_s1 = smov 32   ;;  %v7057_v5 = vmov 0   ;;  %v10265_v6 = vmov 0.0   ;;  %vm7059_vm0 = vmmov 0  }
   0x9   :  { %6905 = vset.pattern.permute.xlu1 %v7057_v5  ;;  %6904 = vset.pattern.permute.xlu0 %v7057_v5  ;;  %s10324_s2 = sld [smem:[#allocation55_spill]] }
   0xa   :  { %5984 = vmatprep.subr.bf16.mxu0 %v10265_v6  ;;  %5992 = vmatprep.mubr.msk.bf16.mxu0 %vm7059_vm0, %v10265_v6  ;;  %s10325_s28 = sld [smem:[#allocation50_spill]] }
   0xb   :  { %6020 = vmatprep.subr.bf16.mxu1 %v10265_v6  ;;  %6028 = vmatprep.mubr.msk.bf16.mxu1 %vm7059_vm0, %v10265_v6  ;;  %s10326_s25 = sld [smem:[#allocation51_spill]] }
   0xe   :  { %v7184_v1 = vld [vmem:[%s10323_s4 + $0x10] sm:$0xff]  ;;  %v7189_v2 = vld [vmem:[%s10323_s4] sm:$0xff]  ;;  %v7198_v3 = vld [vmem:[%s10323_s4 + $0x18] sm:$0xff] }
   0xf   :  { %150 = vrot.lane.b32.xlu1 %v7184_v1, %s7056_s1  ;;  %146 = vrot.lane.b32.xlu0 %v7189_v2, %s7056_s1  ;;  %v7203_v4 = vld [vmem:[%s10323_s4 + $0x8] sm:$0xff]  ;;  %v7223_v8 = vld [vmem:[%s10323_s4 + $0x20] sm:$0xff] }
  0x10   :  { %v7218_v7 = vld [vmem:[%s10323_s4 + $0x28] sm:$0xff]  ;;  %v7232_v9 = vld [vmem:[%s10323_s4 + $0x38] sm:$0xff]  ;;  %v7237_v10 = vld [vmem:[%s10323_s4 + $0x30] sm:$0xff] }
  0x11   :  { %v7246_v11 = vld [vmem:[%s10323_s4 + $0x48] sm:$0xff]  ;;  %v7251_v12 = vld [vmem:[%s10323_s4 + $0x40] sm:$0xff]  ;;  %v7256_v13 = vld [vmem:[%s10323_s4 + $0x58] sm:$0xff] }
  0x12   :  { %v6906_v14 = vld [vmem:[%s10324_s2 + $0x38] sm:$0xff]   ;;  %v7268_v15 = vld [vmem:[%s10323_s4 + $0x50] sm:$0xff]  ;;  %v7277_v17 = vld [vmem:[%s10323_s4 + $0x68] sm:$0xff] }
  0x13   :  { %152 = vrot.lane.b32.xlu1 %v7198_v3, %s7056_s1  ;;  %148 = vrot.lane.b32.xlu0 %v7203_v4, %s7056_s1  ;;  %v6907_v16 = vld [vmem:[%s10324_s2 + $0x30] sm:$0xff]   ;;  %v7282_v18 = vld [vmem:[%s10323_s4 + $0x60] sm:$0xff] }
  0x14   :  { %5985 = vmatpush3.bf16.msra.mxu0 %v6906_v14  ;;  %v6910_v19 = vld [vmem:[%s10324_s2 + $0x18] sm:$0xff]   ;;  %v6908_v20 = vld [vmem:[%s10324_s2 + $0x28] sm:$0xff]   ;;  %v6911_v21 = vld [vmem:[%s10324_s2 + $0x10] sm:$0xff]  }
  0x15   :  { %5986 = vmatprep.subr.bf16.mxu0 %v10265_v6  ;;  %6021 = vmatpush3.bf16.msra.mxu1 %v6910_v19  ;;  %v76_v22 = vld [vmem:[%s10325_s28 + $0x8] sm:$0xff]  ;;  %v75_v23 = vld [vmem:[%s10325_s28] sm:$0xff]  ;;  %v77_v29 = vld [vmem:[%s10325_s28 + $0x10] sm:$0xff] }
  0x16   :  { %6022 = vmatprep.subr.bf16.mxu1 %v10265_v6  ;;  %v6909_v24 = vld [vmem:[%s10324_s2 + $0x20] sm:$0xff]   ;;  %v6912_v25 = vld [vmem:[%s10324_s2 + $0x8] sm:$0xff]   ;;  %v78_v30 = vld [vmem:[%s10325_s28 + $0x18] sm:$0xff] }
  0x17   :  { %156 = vrot.lane.b32.xlu1 %v7218_v7, %s7056_s1  ;;  %154 = vrot.lane.b32.xlu0 %v7223_v8, %s7056_s1  ;;  %v89_v26 = vld [vmem:[%s10326_s25] sm:$0xff]  ;;  %v90_v27 = vld [vmem:[%s10326_s25 + $0x8] sm:$0xff] }
  0x18   :  { %5987 = vmatpush3.bf16.msra.mxu0 %v6907_v16  ;;  %v6914_v28 = vld [vmem:[%s10324_s2] sm:$0xff]   ;;  %v91_v31 = vld [vmem:[%s10326_s25 + $0x10] sm:$0xff]  ;;  %v92_v32 = vld [vmem:[%s10326_s25 + $0x18] sm:$0xff] }
  0x19   :  { %5988 = vmatprep.subr.bf16.mxu0 %v10265_v6  ;;  %6023 = vmatpush3.bf16.msra.mxu1 %v6911_v21  ;;  %v79_v33 = vld [vmem:[%s10325_s28 + $0x20] sm:$0xff]  ;;  %v80_v34 = vld [vmem:[%s10325_s28 + $0x28] sm:$0xff]  ;;  %v81_v37 = vld [vmem:[%s10325_s28 + $0x30] sm:$0xff] }
  0x1a   :  { %6024 = vmatprep.subr.bf16.mxu1 %v10265_v6  ;;  %v93_v35 = vld [vmem:[%s10326_s25 + $0x20] sm:$0xff]  ;;  %v94_v36 = vld [vmem:[%s10326_s25 + $0x28] sm:$0xff]  ;;  %v82_v38 = vld [vmem:[%s10325_s28 + $0x38] sm:$0xff] }
  0x1b   :  { %160 = vrot.lane.b32.xlu1 %v7232_v9, %s7056_s1  ;;  %158 = vrot.lane.b32.xlu0 %v7237_v10, %s7056_s1 }
  0x1c   :  { %5989 = vmatpush3.bf16.msra.mxu0 %v6908_v20 }
  0x1d   :  { %5990 = vmatprep.subr.bf16.mxu0 %v10265_v6  ;;  %6025 = vmatpush3.bf16.msra.mxu1 %v6912_v25 }
  0x1e   :  { %6026 = vmatprep.subr.bf16.mxu1 %v10265_v6 }
  0x1f   :  { %164 = vrot.lane.b32.xlu1 %v7246_v11, %s7056_s1  ;;  %162 = vrot.lane.b32.xlu0 %v7251_v12, %s7056_s1 }
  0x20   :  { %5991 = vmatpush3.bf16.msra.mxu0 %v6909_v24 }
  0x21   :  { %6056 = vmatprep.subr.bf16.mxu0 %v10265_v6  ;;  %6027 = vmatpush3.bf16.msra.mxu1 %v6914_v28 }
  0x22   :  { %6092 = vmatprep.subr.mxu1 %v10265_v6 }
  0x23   :  { %168 = vrot.lane.b32.xlu1 %v7256_v13, %s7056_s1  ;;  %166 = vrot.lane.b32.xlu0 %v7268_v15, %s7056_s1 }
  0x27   :  { %172 = vrot.lane.b32.xlu1 %v7277_v17, %s7056_s1  ;;  %170 = vrot.lane.b32.xlu0 %v7282_v18, %s7056_s1 }
  0x2b   :  { %268 = vperm.xlu1 %6905, %v76_v22   ;;  %263 = vperm.xlu0 %6904, %v75_v23  }
  0x2f   :  { %383 = vperm.xlu1 %6905, %v89_v26   ;;  %388 = vperm.xlu0 %6904, %v90_v27  }
  0x33   :  { %273 = vperm.xlu1 %6905, %v77_v29   ;;  %278 = vperm.xlu0 %6904, %v78_v30  }
  0x37   :  { %393 = vperm.xlu1 %6905, %v91_v31   ;;  %398 = vperm.xlu0 %6904, %v92_v32  }
  0x3b   :  { %283 = vperm.xlu1 %6905, %v79_v33   ;;  %288 = vperm.xlu0 %6904, %v80_v34  }
  0x3f   :  { %403 = vperm.xlu1 %6905, %v93_v35   ;;  %408 = vperm.xlu0 %6904, %v94_v36  }
  0x40   :  { %29 = vsyncpa [#allocation4], 0  ;;  %v95_v39 = vld [vmem:[%s10326_s25 + $0x30] sm:$0xff]  ;;  %v96_v40 = vld [vmem:[%s10326_s25 + $0x38] sm:$0xff]  ;;  %vm188_vm1 = vcmask 261120   ;;  %vm503_vm2 = vcmask 523264   ;;  %v10264_v25 = vlaneseq }
  0x41   :  { %v83_v41 = vld [vmem:[%s10325_s28 + $0x40] sm:$0xff]  ;;  %v84_v42 = vld [vmem:[%s10325_s28 + $0x48] sm:$0xff]  ;;  %v85_v45 = vld [vmem:[%s10325_s28 + $0x50] sm:$0xff]  ;;  %s10345_s21 = sld [smem:[#allocation52_spill]]  ;;  %vm918_vm5 = vcmask 916480   ;;  %vm992_vm6 = vcmask 23552  }
  0x42   :  { %v97_v43 = vld [vmem:[%s10326_s25 + $0x40] sm:$0xff]  ;;  %v98_v44 = vld [vmem:[%s10326_s25 + $0x48] sm:$0xff]  ;;  %v86_v46 = vld [vmem:[%s10325_s28 + $0x58] sm:$0xff]  ;;  %v7471_v29 = vshrl.u32 %v10264_v25, 7  ;;  %vm1035_vm7 = vcmask 1042432   ;;  %s10362_s3 = sld [smem:[#allocation54_spill]] }
  0x43   :  { %293 = vperm.xlu1 %6905, %v81_v37   ;;  %298 = vperm.xlu0 %6904, %v82_v38   ;;  %v99_v47 = vld [vmem:[%s10326_s25 + $0x50] sm:$0xff]  ;;  %v100_v48 = vld [vmem:[%s10326_s25 + $0x58] sm:$0xff]  ;;  %v87_v49 = vld [vmem:[%s10325_s28 + $0x60] sm:$0xff]  ;;  %vm5051_vm11 = vcmask 130048  }
  0x44   :  { %v88_v50 = vld [vmem:[%s10325_s28 + $0x68] sm:$0xff]  ;;  %v101_v51 = vld [vmem:[%s10326_s25 + $0x60] sm:$0xff]  ;;  %v6913_v59 = vld [vmem:[%s10324_s2 + $0x58] sm:$0xff]   ;;  %vm246_vm3 = vcmp.lt.s32.totalorder %v7471_v29, 1  ;;  %vm366_vm4 = vcmp.lt.s32.totalorder %v7471_v29, 7  ;;  %s10346_s28 = sld [smem:[#allocation53_spill]] }
  0x45   :  { %v102_v52 = vld [vmem:[%s10326_s25 + $0x68] sm:$0xff]  ;;  %v6915_v63 = vld [vmem:[%s10324_s2 + $0x50] sm:$0xff]  }
  0x46   :  { %v6916_v14 = vld [vmem:[%s10324_s2 + $0x48] sm:$0xff]  }
  0x47   :  { %413 = vperm.xlu1 %6905, %v95_v39   ;;  %418 = vperm.xlu0 %6904, %v96_v40  }
  0x4b   :  { %303 = vperm.xlu1 %6905, %v83_v41   ;;  %308 = vperm.xlu0 %6904, %v84_v42  }
  0x4f   :  { %423 = vperm.xlu1 %6905, %v97_v43   ;;  %428 = vperm.xlu0 %6904, %v98_v44  }
  0x53   :  { %313 = vperm.xlu1 %6905, %v85_v45   ;;  %318 = vperm.xlu0 %6904, %v86_v46  }
  0x57   :  { %433 = vperm.xlu1 %6905, %v99_v47   ;;  %438 = vperm.xlu0 %6904, %v100_v48  }
  0x5b   :  { %323 = vperm.xlu1 %6905, %v87_v49   ;;  %328 = vperm.xlu0 %6904, %v88_v50  }
  0x5f   :  { %443 = vperm.xlu1 %6905, %v101_v51   ;;  %448 = vperm.xlu0 %6904, %v102_v52  }
  0x81   :  { %v151_v53 = vpop.permute.xlu1 %150  ;;  %v147_v54 = vpop.permute.xlu0 %146 }
  0x82   :  { %v7407_v58 = vsel %vm188_vm1, %v7189_v2, %v147_v54  ;;  %v7427_v5 = vsel %vm188_vm1, %v7184_v1, %v151_v53  ;;  %v6917_v1 = vld [vmem:[%s10324_s2 + $0x40] sm:$0xff]  }
  0x83   :  { %v232_v40 = vrot.slane %v7427_v5, 7 }
  0x85   :  { %v153_v55 = vpop.permute.xlu1 %152  ;;  %v149_v56 = vpop.permute.xlu0 %148 }
  0x86   :  { %v7403_v57 = vsel %vm188_vm1, %v7203_v4, %v149_v56  ;;  %v7423_v0 = vsel %vm188_vm1, %v7198_v3, %v153_v55 }
  0x87   :  { %v472_v60 = vpack.c.bf16 %v7403_v57, %v7407_v58  ;;  %v473_v16 = vpack.c.bf16 %v7423_v0, %v7427_v5  ;;  %v231_v30 = vrot.slane %v7403_v57, 7  ;;  %v233_v41 = vrot.slane %v7423_v0, 7 }
  0x89   :  { %v157_v61 = vpop.permute.xlu1 %156  ;;  %5993 = vmatmul.mubr.msk.bf16.vlgmr.msra.gmra.mxu0 %vm503_vm2, %v472_v60  ;;  %v155_v62 = vpop.permute.xlu0 %154  ;;  %v258_v44 = vsel %vm246_vm3, %v231_v30, %v232_v40  ;;  %v257_v46 = vsel %vm246_vm3, %v232_v40, %v233_v41 }
  0x8a   :  { %5996 = vmatprep.mubr.msk.bf16.mxu0 %vm7059_vm0, %v10265_v6  ;;  %6057 = vmatpush3.bf16.msra.mxu0 %v6913_v59  ;;  %v7438_v3 = vsel %vm188_vm1, %v7218_v7, %v157_v61  ;;  %v7448_v21 = vsel %vm188_vm1, %v7223_v8, %v155_v62  ;;  %v353_v62 = vrot.slane %v7403_v57, 1 }
  0x8b   :  { %6058 = vmatprep.subr.bf16.mxu0 %v10265_v6  ;;  %v474_v22 = vpack.c.bf16 %v7438_v3, %v7448_v21  ;;  %v235_v52 = vrot.slane %v7438_v3, 7  ;;  %v234_v53 = vrot.slane %v7448_v21, 7 }
  0x8d   :  { %v161_v2 = vpop.permute.xlu1 %160  ;;  %v159_v4 = vpop.permute.xlu0 %158  ;;  %v256_v56 = vsel %vm246_vm3, %v233_v41, %v234_v53  ;;  %v255_v60 = vsel %vm246_vm3, %v234_v53, %v235_v52  ;;  %v357_v53 = vrot.slane %v7438_v3, 1 }
  0x8e   :  { %6059 = vmatpush3.bf16.msra.mxu0 %v6915_v63  ;;  %v7456_v24 = vsel %vm188_vm1, %v7232_v9, %v161_v2  ;;  %v7462_v26 = vsel %vm188_vm1, %v7237_v10, %v159_v4  ;;  %v230_v10 = vrot.slane %v7407_v58, 7 }
  0x8f   :  { %6060 = vmatprep.subr.bf16.mxu0 %v10265_v6  ;;  %v475_v27 = vpack.c.bf16 %v7456_v24, %v7462_v26  ;;  %v236_v57 = vrot.slane %v7462_v26, 7 }
  0x90   :  { %v259_v32 = vsel %vm246_vm3, %v230_v10, %v231_v30 }
  0x91   :  { %v165_v19 = vpop.permute.xlu1 %164  ;;  %5997 = vmatmul.mubr.msk.bf16.gmra.mxu0 %vm503_vm2, %v473_v16  ;;  %v163_v20 = vpop.permute.xlu0 %162 }
  0x92   :  { %6000 = vmatprep.mubr.msk.bf16.mxu0 %vm7059_vm0, %v10265_v6  ;;  %6061 = vmatpush3.bf16.msra.mxu0 %v6916_v14  ;;  %v7496_v36 = vsel %vm188_vm1, %v7251_v12, %v163_v20  ;;  %v352_v14 = vrot.slane %v7407_v58, 1 }
  0x93   :  { %6062 = vmatprep.subr.bf16.mxu0 %v10265_v6  ;;  %v238_v40 = vrot.slane %v7496_v36, 7 }
  0x94   :  { %v379_v20 = vsel %vm366_vm4, %v352_v14, %v353_v62 }
  0x95   :  { %v169_v7 = vpop.permute.xlu1 %168  ;;  %v167_v23 = vpop.permute.xlu0 %166 }
  0x96   :  { %6063 = vmatpush3.bf16.msra.mxu0 %v6917_v1  ;;  %v7516_v12 = vsel %vm188_vm1, %v7256_v13, %v169_v7  ;;  %v7528_v48 = vsel %vm188_vm1, %v7268_v15, %v167_v23  ;;  %v354_v15 = vrot.slane %v7427_v5, 1 }
  0x97   :  { %6200 = vmatprep.subr.bf16.mxu0 %v10265_v6  ;;  %v477_v13 = vpack.c.bf16 %v7516_v12, %v7528_v48 }
  0x99   :  { %6001 = vmatmul.mubr.msk.bf16.gmra.mxu0 %vm503_vm2, %v474_v22  ;;  %v173_v8 = vpop.permute.xlu1 %172  ;;  %v171_v9 = vpop.permute.xlu0 %170  ;;  %v378_v22 = vsel %vm366_vm4, %v353_v62, %v354_v15 }
  0x9a   :  { %6004 = vmatprep.mubr.msk.bf16.mxu0 %vm7059_vm0, %v10265_v6  ;;  %v7468_v28 = vsel %vm188_vm1, %v7277_v17, %v173_v8  ;;  %v7482_v17 = vsel %vm188_vm1, %v7246_v11, %v165_v19  ;;  %v7558_v63 = vsel %vm188_vm1, %v7282_v18, %v171_v9  ;;  %v237_v19 = vrot.slane %v7456_v24, 7 }
  0x9b   :  { %v243_v31 = vrot.slane %v7468_v28, 7  ;;  %v476_v38 = vpack.c.bf16 %v7482_v17, %v7496_v36  ;;  %v478_v5 = vpack.c.bf16 %v7468_v28, %v7558_v63  ;;  %v254_v8 = vsel %vm246_vm3, %v235_v52, %v236_v57 }
  0x9c   :  { %v253_v9 = vsel %vm246_vm3, %v236_v57, %v237_v19 }
  0x9d   :  { %v260_v34 = vsel %vm246_vm3, %v243_v31, %v230_v10  ;;  %v355_v10 = vrot.slane %v7423_v0, 1 }
  0x9f   :  { %v377_v0 = vsel %vm366_vm4, %v354_v15, %v355_v10  ;;  %v358_v15 = vrot.slane %v7462_v26, 1 }
  0xa1   :  { %6005 = vmatmul.mubr.msk.bf16.gmra.mxu0 %vm503_vm2, %v475_v27  ;;  %v374_v26 = vsel %vm366_vm4, %v357_v53, %v358_v15 }
  0xa2   :  { %6008 = vmatprep.mubr.msk.bf16.mxu0 %vm7059_vm0, %v10265_v6 }
  0xa6   :  { %v7486_v33 = vpop.permute.xlu1 %268  ;;  %v7492_v35 = vpop.permute.xlu0 %263 }
  0xa7   :  { %v332_v37 = vmul.f32 %v7486_v33, %v259_v32  ;;  %v331_v11 = vmul.f32 %v7492_v35, %v260_v34  ;;  %v356_v32 = vrot.slane %v7448_v21, 1 }
  0xa9   :  { %v345_v39 = vpack.c.bf16 %v332_v37, %v331_v11  ;;  %6009 = vmatmul.mubr.msk.bf16.gmra.mxu0 %vm503_vm2, %v476_v38  ;;  %v376_v21 = vsel %vm366_vm4, %v355_v10, %v356_v32  ;;  %v375_v3 = vsel %vm366_vm4, %v356_v32, %v357_v53  ;;  %v360_v10 = vrot.slane %v7496_v36, 1 }
  0xaa   :  { %v7505_v42 = vpop.permute.xlu1 %383  ;;  %v7507_v43 = vpop.permute.xlu0 %388  ;;  %6012 = vmatprep.mubr.msk.bf16.mxu0 %vm7059_vm0, %v10265_v6  ;;  %v361_v53 = vrot.slane %v7482_v17, 1 }
  0xab   :  { %6029 = vmatmul.mubr.msk.bf16.vlgmr.msra.gmra.mxu1 %vm503_vm2, %v345_v39  ;;  %v451_v7 = vmul.f32 %v7505_v42, %v379_v20  ;;  %v452_v23 = vmul.f32 %v7507_v43, %v378_v22  ;;  %v239_v39 = vrot.slane %v7482_v17, 7 }
  0xac   :  { %6032 = vmatprep.mubr.msk.bf16.mxu1 %vm7059_vm0, %v10265_v6 }
  0xad   :  { %v465_v11 = vpack.c.bf16 %v452_v23, %v451_v7 }
  0xae   :  { %v7520_v45 = vpop.permute.xlu1 %273  ;;  %v7524_v47 = vpop.permute.xlu0 %278 }
  0xaf   :  { %v333_v49 = vmul.f32 %v7520_v45, %v258_v44  ;;  %v334_v50 = vmul.f32 %v7524_v47, %v257_v46 }
  0xb1   :  { %v346_v51 = vpack.c.bf16 %v334_v50, %v333_v49  ;;  %6013 = vmatmul.mubr.msk.bf16.gmra.mxu0 %vm503_vm2, %v477_v13  ;;  %v252_v50 = vsel %vm246_vm3, %v237_v19, %v238_v40 }
  0xb2   :  { %v7537_v54 = vpop.permute.xlu1 %393  ;;  %v7539_v55 = vpop.permute.xlu0 %398  ;;  %6016 = vmatprep.mubr.msk.bf16.mxu0 %vm7059_vm0, %v10265_v6 }
  0xb3   :  { %10327 = vst [vmem:[#allocation6_spill] sm:$0xff] %v7537_v54  ;;  %10328 = vst [vmem:[#allocation7_spill] sm:$0xff] %v7539_v55  ;;  %6033 = vmatmul.mubr.msk.bf16.gmra.mxu1 %vm503_vm2, %v346_v51  ;;  %v453_v46 = vmul.f32 %v7537_v54, %v377_v0  ;;  %v454_v49 = vmul.f32 %v7539_v55, %v376_v21  ;;  %v251_v51 = vsel %vm246_vm3, %v238_v40, %v239_v39 }
  0xb4   :  { %6036 = vmatprep.mubr.msk.bf16.mxu1 %vm7059_vm0, %v10265_v6 }
  0xb5   :  { %v466_v62 = vpack.c.bf16 %v454_v49, %v453_v46 }
  0xb6   :  { %v7549_v59 = vpop.permute.xlu1 %283  ;;  %v7553_v61 = vpop.permute.xlu0 %288 }
  0xb7   :  { %10329 = vst [vmem:[#allocation8_spill] sm:$0xff] %v7553_v61  ;;  %v335_v2 = vmul.f32 %v7549_v59, %v256_v56  ;;  %v336_v4 = vmul.f32 %v7553_v61, %v255_v60 }
  0xb9   :  { %v347_v16 = vpack.c.bf16 %v336_v4, %v335_v2  ;;  %6017 = vmatmul.mubr.msk.bf16.gmra.mxu0 %vm503_vm2, %v478_v5  ;;  %v241_v4 = vrot.slane %v7516_v12, 7  ;;  %v240_v5 = vrot.slane %v7528_v48, 7 }
  0xba   :  { %v7569_v18 = vpop.permute.xlu1 %403  ;;  %v7571_v1 = vpop.permute.xlu0 %408  ;;  %6064 = vmatprep.mubr.msk.bf16.mxu0 %vm7059_vm0, %v10265_v6 }
  0xbb   :  { %10330 = vst [vmem:[#allocation9_spill] sm:$0xff] %v7569_v18  ;;  %10331 = vst [vmem:[#allocation10_spill] sm:$0xff] %v7571_v1  ;;  %6037 = vmatmul.mubr.msk.bf16.gmra.mxu1 %vm503_vm2, %v347_v16  ;;  %v455_v57 = vmul.f32 %v7569_v18, %v375_v3  ;;  %v456_v20 = vmul.f32 %v7571_v1, %v374_v26  ;;  %v250_v22 = vsel %vm246_vm3, %v239_v39, %v240_v5 }
  0xbc   :  { %6040 = vmatprep.mubr.msk.bf16.mxu1 %vm7059_vm0, %v10265_v6  ;;  %v249_v23 = vsel %vm246_vm3, %v240_v5, %v241_v4  ;;  %v363_v5 = vrot.slane %v7516_v12, 1  ;;  %v364_v3 = vrot.slane %v7558_v63, 1  ;;  %v365_v12 = vrot.slane %v7468_v28, 1 }
  0xbe   :  { %v7588_v27 = vpop.permute.xlu1 %293  ;;  %v7592_v30 = vpop.permute.xlu0 %298 }
  0xbf   :  { %v337_v34 = vmul.f32 %v7588_v27, %v254_v8  ;;  %v338_v37 = vmul.f32 %v7592_v30, %v253_v9  ;;  %v359_v9 = vrot.slane %v7456_v24, 1 }
  0xc1   :  { %v348_v38 = vpack.c.bf16 %v338_v37, %v337_v34  ;;  %6065 = vmatmul.mubr.msk.bf16.vlgmr.msra.gmra.mxu0 %vm503_vm2, %v465_v11  ;;  %v467_v37 = vpack.c.bf16 %v456_v20, %v455_v57  ;;  %v373_v0 = vsel %vm366_vm4, %v358_v15, %v359_v9  ;;  %v372_v24 = vsel %vm366_vm4, %v359_v9, %v360_v10 }
  0xc2   :  { %v7601_v41 = vpop.permute.xlu1 %413  ;;  %v7603_v44 = vpop.permute.xlu0 %418  ;;  %6068 = vmatprep.mubr.msk.bf16.mxu0 %vm7059_vm0, %v10265_v6  ;;  %v362_v15 = vrot.slane %v7528_v48, 1  ;;  %v368_v20 = vsel %vm366_vm4, %v363_v5, %v364_v3 }
  0xc3   :  { %10332 = vst [vmem:[#allocation11_spill] sm:$0xff] %v7601_v41  ;;  %10333 = vst [vmem:[#allocation12_spill] sm:$0xff] %v7603_v44  ;;  %6041 = vmatmul.mubr.msk.bf16.gmra.mxu1 %vm503_vm2, %v348_v38  ;;  %v242_v38 = vrot.slane %v7558_v63, 7  ;;  %v457_v36 = vmul.f32 %v7601_v41, %v373_v0  ;;  %v458_v21 = vmul.f32 %v7603_v44, %v372_v24 }
  0xc4   :  { %6044 = vmatprep.mubr.msk.bf16.mxu1 %vm7059_vm0, %v10265_v6  ;;  %v369_v57 = vsel %vm366_vm4, %v362_v15, %v363_v5 }
  0xc5   :  { %v248_v46 = vsel %vm246_vm3, %v241_v4, %v242_v38  ;;  %v371_v4 = vsel %vm366_vm4, %v360_v10, %v361_v53 }
  0xc6   :  { %v7618_v13 = vpop.permute.xlu1 %303  ;;  %v7622_v52 = vpop.permute.xlu0 %308 }
  0xc7   :  { %v339_v56 = vmul.f32 %v7618_v13, %v252_v50  ;;  %v340_v60 = vmul.f32 %v7622_v52, %v251_v51  ;;  %v247_v50 = vsel %vm246_vm3, %v242_v38, %v243_v31  ;;  %v370_v31 = vsel %vm366_vm4, %v361_v53, %v362_v15 }
  0xc9   :  { %v349_v2 = vpack.c.bf16 %v340_v60, %v339_v56  ;;  %6069 = vmatmul.mubr.msk.bf16.gmra.mxu0 %vm503_vm2, %v466_v62  ;;  %v468_v62 = vpack.c.bf16 %v458_v21, %v457_v36 }
  0xca   :  { %v7631_v16 = vpop.permute.xlu1 %423  ;;  %v7633_v19 = vpop.permute.xlu0 %428  ;;  %6072 = vmatprep.mubr.msk.bf16.mxu0 %vm7059_vm0, %v10265_v6 }
  0xcb   :  { %10334 = vst [vmem:[#allocation13_spill] sm:$0xff] %v7631_v16  ;;  %10335 = vst [vmem:[#allocation14_spill] sm:$0xff] %v7633_v19  ;;  %6045 = vmatmul.mubr.msk.bf16.gmra.mxu1 %vm503_vm2, %v349_v2  ;;  %v459_v17 = vmul.f32 %v7631_v16, %v371_v4  ;;  %v460_v48 = vmul.f32 %v7633_v19, %v370_v31 }
  0xcc   :  { %6048 = vmatprep.mubr.msk.bf16.mxu1 %vm7059_vm0, %v10265_v6 }
  0xcd   :  { %v469_v26 = vpack.c.bf16 %v460_v48, %v459_v17 }
  0xce   :  { %v7648_v7 = vpop.permute.xlu1 %313  ;;  %v7652_v8 = vpop.permute.xlu0 %318 }
  0xcf   :  { %10336 = vst [vmem:[#allocation15_spill] sm:$0xff] %v7648_v7  ;;  %10337 = vst [vmem:[#allocation16_spill] sm:$0xff] %v7652_v8  ;;  %v341_v32 = vmul.f32 %v7648_v7, %v250_v22  ;;  %v342_v34 = vmul.f32 %v7652_v8, %v249_v23 }
  0xd1   :  { %v350_v11 = vpack.c.bf16 %v342_v34, %v341_v32  ;;  %6073 = vmatmul.mubr.msk.bf16.gmra.mxu0 %vm503_vm2, %v467_v37  ;;  %v367_v32 = vsel %vm366_vm4, %v364_v3, %v365_v12  ;;  %v380_v34 = vsel %vm366_vm4, %v365_v12, %v352_v14 }
  0xd2   :  { %v7660_v39 = vpop.permute.xlu1 %433  ;;  %v7662_v40 = vpop.permute.xlu0 %438  ;;  %6076 = vmatprep.mubr.msk.bf16.mxu0 %vm7059_vm0, %v10265_v6 }
  0xd3   :  { %10338 = vst [vmem:[#allocation17_spill] sm:$0xff] %v7660_v39  ;;  %10339 = vst [vmem:[#allocation18_spill] sm:$0xff] %v7662_v40  ;;  %6049 = vmatmul.mubr.msk.bf16.gmra.mxu1 %vm503_vm2, %v350_v11  ;;  %v461_v22 = vmul.f32 %v7660_v39, %v369_v57  ;;  %v462_v23 = vmul.f32 %v7662_v40, %v368_v20 }
  0xd4   :  { %6052 = vmatprep.mubr.msk.bf16.mxu1 %vm7059_vm0, %v10265_v6 }
  0xd5   :  { %v470_v9 = vpack.c.bf16 %v462_v23, %v461_v22 }
  0xd6   :  { %v7677_v49 = vpop.permute.xlu1 %323  ;;  %v7683_v51 = vpop.permute.xlu0 %328 }
  0xd7   :  { %10340 = vst [vmem:[#allocation19_spill] sm:$0xff] %v7677_v49  ;;  %10341 = vst [vmem:[#allocation20_spill] sm:$0xff] %v7683_v51  ;;  %v343_v56 = vmul.f32 %v7677_v49, %v248_v46  ;;  %v344_v60 = vmul.f32 %v7683_v51, %v247_v50 }
  0xd9   :  { %v351_v2 = vpack.c.bf16 %v344_v60, %v343_v56  ;;  %6077 = vmatmul.mubr.msk.bf16.gmra.mxu0 %vm503_vm2, %v468_v62 }
  0xda   :  { %6080 = vmatprep.mubr.msk.bf16.mxu0 %vm7059_vm0, %v10265_v6  ;;  %v7713_v63 = vpop.permute.xlu1 %443  ;;  %v7715_v10 = vpop.permute.xlu0 %448 }
  0xdb   :  { %6053 = vmatmul.mubr.msk.bf16.gmra.mxu1 %vm503_vm2, %v351_v2  ;;  %10342 = vst [vmem:[#allocation21_spill] sm:$0xff] %v7713_v63  ;;  %10343 = vst [vmem:[#allocation22_spill] sm:$0xff] %v7715_v10  ;;  %v463_v28 = vmul.f32 %v7713_v63, %v367_v32  ;;  %v464_v37 = vmul.f32 %v7715_v10, %v380_v34 }
  0xdc   :  { %6120 = vmatprep.mubr.msk.f32.mxu1 %vm7059_vm0, %v10265_v6 }
  0xdd   :  { %v471_v11 = vpack.c.bf16 %v464_v37, %v463_v28 }
  0xe1   :  { %6081 = vmatmul.mubr.msk.bf16.gmra.mxu0 %vm503_vm2, %v469_v26 }
  0xe2   :  { %6084 = vmatprep.mubr.msk.bf16.mxu0 %vm7059_vm0, %v10265_v6 }
  0xe9   :  { %6085 = vmatmul.mubr.msk.bf16.gmra.mxu0 %vm503_vm2, %v470_v9 }
  0xea   :  { %6088 = vmatprep.mubr.msk.bf16.mxu0 %vm7059_vm0, %v10265_v6 }
  0xf1   :  { %6089 = vmatmul.mubr.msk.bf16.gmra.mxu0 %vm503_vm2, %v471_v11 }
  0xf2   :  { %6208 = vmatprep.mubr.msk.bf16.mxu0 %vm7059_vm0, %v10265_v6 }
 0x149   :  { %v559_v38 = vpop.f32.mrf.mxu0 }
 0x14b   :  { %v5994_v0 = vpop.f32.mrf.mxu0 }
 0x14d   :  { %v562_v24 = vpop.f32.mrf.mxu0 }
 0x14f   :  { %v5995_v58 = vpop.f32.mrf.mxu0 }
 0x151   :  { %v567_v36 = vpop.f32.mrf.mxu0 }
 0x153   :  { %v5998_v21 = vpop.f32.mrf.mxu0 }
 0x155   :  { %v570_v14 = vpop.f32.mrf.mxu0 }
 0x157   :  { %v5999_v46 = vpop.f32.mrf.mxu0 }
 0x159   :  { %v575_v50 = vpop.f32.mrf.mxu0 }
 0x15b   :  { %v6002_v53 = vpop.f32.mrf.mxu0 }
 0x15d   :  { %v578_v15 = vpop.f32.mrf.mxu0 }
 0x15f   :  { %v6003_v56 = vpop.f32.mrf.mxu0 }
 0x161   :  { %v7731_v60 = vpop.f32.mrf.mxu0 }
 0x163   :  { %v6006_v62 = vpop.f32.mrf.mxu0 }
 0x165   :  { %v7733_v2 = vpop.f32.mrf.mxu0 }
 0x167   :  { %v6007_v4 = vpop.f32.mrf.mxu0 }
 0x169   :  { %v7735_v31 = vpop.f32.mrf.mxu0 }
 0x16b   :  { %v693_v17 = vpop.f32.mrf.mxu1  ;;  %v6010_v48 = vpop.f32.mrf.mxu0 }
 0x16c   :  { %v694_v5 = vadd.f32 %v693_v17, %v559_v38 }
 0x16d   :  { %v6030_v3 = vpop.f32.mrf.mxu1  ;;  %v7737_v26 = vpop.f32.mrf.mxu0 }
 0x16f   :  { %v696_v57 = vpop.f32.mrf.mxu1  ;;  %v6011_v20 = vpop.f32.mrf.mxu0 }
 0x170   :  { %v697_v22 = vadd.f32 %v696_v57, %v562_v24 }
 0x171   :  { %v6031_v23 = vpop.f32.mrf.mxu1  ;;  %v7739_v12 = vpop.f32.mrf.mxu0 }
 0x173   :  { %v701_v9 = vpop.f32.mrf.mxu1  ;;  %v6014_v32 = vpop.f32.mrf.mxu0 }
 0x174   :  { %v702_v34 = vadd.f32 %v701_v9, %v567_v36 }
 0x175   :  { %v6034_v28 = vpop.f32.mrf.mxu1  ;;  %v7741_v37 = vpop.f32.mrf.mxu0 }
 0x177   :  { %v704_v11 = vpop.f32.mrf.mxu1  ;;  %v6015_v0 = vpop.f32.mrf.mxu0 }
 0x178   :  { %v7743_v58 = vadd.f32 %v704_v11, %v570_v14 }
 0x179   :  { %v6035_v38 = vpop.f32.mrf.mxu1  ;;  %v607_v21 = vpop.f32.mrf.mxu0 }
 0x17b   :  { %v709_v46 = vpop.f32.mrf.mxu1  ;;  %v6018_v53 = vpop.f32.mrf.mxu0 }
 0x17c   :  { %v7745_v56 = vadd.f32 %v709_v46, %v575_v50 }
 0x17d   :  { %v6038_v24 = vpop.f32.mrf.mxu1  ;;  %v610_v62 = vpop.f32.mrf.mxu0 }
 0x17f   :  { %v712_v4 = vpop.f32.mrf.mxu1  ;;  %v6019_v17 = vpop.f32.mrf.mxu0 }
 0x180   :  { %v7747_v48 = vadd.f32 %v712_v4, %v578_v15 }
 0x181   :  { %v6039_v36 = vpop.f32.mrf.mxu1  ;;  %v827_v3 = vpop.f32.mrf.mxu0 }
 0x182   :  { %v7749_v57 = vadd.f32 %v827_v3, %v694_v5 }
 0x183   :  { %v7751_v20 = vpop.f32.mrf.mxu1  ;;  %v6066_v14 = vpop.f32.mrf.mxu0 }
 0x185   :  { %v6042_v23 = vpop.f32.mrf.mxu1  ;;  %v830_v9 = vpop.f32.mrf.mxu0 }
 0x186   :  { %v7753_v32 = vadd.f32 %v830_v9, %v697_v22 }
 0x187   :  { %v720_v28 = vpop.f32.mrf.mxu1  ;;  %v6067_v50 = vpop.f32.mrf.mxu0 }
 0x189   :  { %v6043_v11 = vpop.f32.mrf.mxu1  ;;  %v835_v0 = vpop.f32.mrf.mxu0 }
 0x18a   :  { %v7755_v38 = vadd.f32 %v835_v0, %v702_v34 }
 0x18b   :  { %v725_v46 = vpop.f32.mrf.mxu1  ;;  %v6070_v15 = vpop.f32.mrf.mxu0 }
 0x18d   :  { %v6046_v53 = vpop.f32.mrf.mxu1  ;;  %v7757_v24 = vpop.f32.mrf.mxu0 }
 0x18f   :  { %v728_v5 = vpop.f32.mrf.mxu1  ;;  %v6071_v4 = vpop.f32.mrf.mxu0 }
 0x191   :  { %v6047_v17 = vpop.f32.mrf.mxu1  ;;  %v7759_v36 = vpop.f32.mrf.mxu0 }
 0x193   :  { %v733_v3 = vpop.f32.mrf.mxu1  ;;  %v6074_v14 = vpop.f32.mrf.mxu0 }
 0x195   :  { %v6050_v22 = vpop.f32.mrf.mxu1  ;;  %v846_v23 = vpop.f32.mrf.mxu0 }
 0x197   :  { %v736_v9 = vpop.f32.mrf.mxu1  ;;  %v6075_v50 = vpop.f32.mrf.mxu0 }
 0x199   :  { %v6051_v11 = vpop.f32.mrf.mxu1  ;;  %v851_v25 = vpop.f32.mrf.mxu0 }
 0x19b   :  { %v741_v34 = vpop.f32.mrf.mxu1  ;;  %v6078_v0 = vpop.f32.mrf.mxu0 }
 0x19c   :  { %v742_v50 = vadd.f32 %v741_v34, %v607_v21  ;;  %v737_v0 = vadd.f32 %v736_v9, %v7741_v37  ;;  %v10344_v37 = vmov 0.0   ;;  %v7857_v9 = vld [vmem:[%s10346_s28 + $0x10] sm:$0xff] }
 0x19d   :  { %v6054_v6 = vpop.f32.mrf.mxu1  ;;  %v854_v15 = vpop.f32.mrf.mxu0 }
 0x19f   :  { %v744_v53 = vpop.f32.mrf.mxu1  ;;  %v6079_v10 = vpop.f32.mrf.mxu0 }
 0x1a0   :  { %v745_v11 = vadd.f32 %v744_v53, %v610_v62  ;;  %v7873_v53 = vld [vmem:[%s10346_s28 + $0x20] sm:$0xff] }
 0x1a1   :  { %v6055_v63 = vpop.f32.mrf.mxu1  ;;  %v859_v39 = vpop.f32.mrf.mxu0 }
 0x1a2   :  { %v5279_v63 = vld [vmem:[%s10242_s7] ss:$0 sm:$0xff] }
 0x1a3   :  { %v6082_v4 = vpop.f32.mrf.mxu0 }
 0x1a5   :  { %v862_v17 = vpop.f32.mrf.mxu0 }
 0x1a7   :  { %v6083_v40 = vpop.f32.mrf.mxu0 }
 0x1a8   :  { %v734_v40 = vadd.f32 %v733_v3, %v7739_v12 }
 0x1a9   :  { %v867_v16 = vpop.f32.mrf.mxu0 }
 0x1ab   :  { %v6086_v19 = vpop.f32.mrf.mxu0 }
 0x1ad   :  { %v870_v14 = vpop.f32.mrf.mxu0 }
 0x1ae   :  { %v893_v4 = vadd.f32 %v870_v14, %v737_v0  ;;  %v7887_v14 = vld [vmem:[%s10346_s28 + $0x30] sm:$0xff]  ;;  %v7910_v0 = vld [vmem:[%s10346_s28 + $0x48] sm:$0xff] }
 0x1af   :  { %v6087_v22 = vpop.f32.mrf.mxu0 }
 0x1b0   :  { %v729_v22 = vadd.f32 %v728_v5, %v7737_v26  ;;  %v7774_v62 = vadd.f32 %v5279_v63, %v893_v4 }
 0x1b1   :  { %v875_v41 = vpop.f32.mrf.mxu0 }
 0x1b2   :  { %v894_v6 = vadd.f32 %v875_v41, %v742_v50  ;;  %v726_v41 = vadd.f32 %v725_v46, %v7735_v31  ;;  %v7896_v50 = vld [vmem:[%s10346_s28 + $0x38] sm:$0xff] }
 0x1b3   :  { %v6090_v44 = vpop.f32.mrf.mxu0 }
 0x1b4   :  { %v892_v44 = vadd.f32 %v867_v16, %v734_v40  ;;  %v7769_v21 = vadd.f32 %v5279_v63, %v894_v6  ;;  %v890_v12 = vadd.f32 %v859_v39, %v726_v41  ;;  %v718_v16 = vadd.f32 %v7751_v20, %v7731_v60  ;;  %v7915_v6 = vld [vmem:[%s10346_s28 + $0x50] sm:$0xff]  ;;  %v7938_v40 = vld [vmem:[%s10346_s28 + $0x68] sm:$0xff] }
 0x1b5   :  { %v878_v51 = vpop.f32.mrf.mxu0  ;;  %v887_v39 = vadd.f32 %v846_v23, %v7747_v48  ;;  %v886_v60 = vadd.f32 %v7759_v36, %v7745_v56  ;;  %v7829_v36 = vadd.f32 %v5279_v63, %v7749_v57  ;;  %v7844_v57 = vld [vmem:[%s10346_s28] sm:$0xff]  ;;  %v7851_v23 = vld [vmem:[%s10346_s28 + $0x8] sm:$0xff] }
 0x1b6   :  { %v895_v49 = vadd.f32 %v878_v51, %v745_v11  ;;  %v891_v51 = vadd.f32 %v862_v17, %v729_v22  ;;  %v7779_v26 = vadd.f32 %v5279_v63, %v892_v44  ;;  %v888_v5 = vadd.f32 %v851_v25, %v718_v16  ;;  %v7882_v17 = vld [vmem:[%s10346_s28 + $0x28] sm:$0xff]  ;;  %v7901_v11 = vld [vmem:[%s10346_s28 + $0x40] sm:$0xff] }
 0x1b7   :  { %v6091_v10 = vpop.f32.mrf.mxu0  ;;  %v7789_v3 = vadd.f32 %v5279_v63, %v890_v12  ;;  %v885_v25 = vadd.f32 %v7757_v24, %v7743_v58  ;;  %v7810_v48 = vadd.f32 %v5279_v63, %v886_v60  ;;  %v7819_v58 = vadd.f32 %v5279_v63, %v7755_v38  ;;  %v7835_v38 = vld [vmem:[%s10345_s21] sm:$0x7] }
 0x1b8   :  { %v7766_v19 = vadd.f32 %v5279_v63, %v895_v49  ;;  %v721_v49 = vadd.f32 %v720_v28, %v7733_v2  ;;  %v7785_v46 = vadd.f32 %v5279_v63, %v891_v51  ;;  %v7800_v20 = vadd.f32 %v5279_v63, %v888_v5  ;;  %v7929_v10 = vld [vmem:[%s10346_s28 + $0x60] sm:$0xff] }
 0x1b9   :  { %v7806_v28 = vadd.f32 %v5279_v63, %v887_v39  ;;  %v7814_v56 = vadd.f32 %v5279_v63, %v885_v25  ;;  %v7824_v24 = vadd.f32 %v5279_v63, %v7753_v32 }
 0x1ba   :  { %6093 = vmatpush3.msra.mxu1 %v7766_v19  ;;  %v889_v31 = vadd.f32 %v854_v15, %v721_v49  ;;  %v7868_v15 = vld [vmem:[%s10346_s28 + $0x18] sm:$0xff] }
 0x1bb   :  { %6094 = vmatprep.subr.mxu1 %v10344_v37 }
 0x1bc   :  { %6095 = vmatpush3.msra.mxu1 %v7769_v21  ;;  %v7794_v2 = vadd.f32 %v5279_v63, %v889_v31  ;;  %v7924_v63 = vld [vmem:[%s10346_s28 + $0x58] sm:$0xff] }
 0x1bd   :  { %6096 = vmatprep.subr.mxu1 %v10344_v37 }
 0x1be   :  { %6097 = vmatpush3.msra.mxu1 %v7774_v62 }
 0x1bf   :  { %6098 = vmatprep.subr.mxu1 %v10344_v37 }
 0x1c0   :  { %6099 = vmatpush3.msra.mxu1 %v7779_v26 }
 0x1c1   :  { %6100 = vmatprep.subr.mxu1 %v10344_v37 }
 0x1c2   :  { %6101 = vmatpush3.msra.mxu1 %v7785_v46 }
 0x1c3   :  { %6102 = vmatprep.subr.mxu1 %v10344_v37 }
 0x1c4   :  { %6103 = vmatpush3.msra.mxu1 %v7789_v3 }
 0x1c5   :  { %6104 = vmatprep.subr.mxu1 %v10344_v37 }
 0x1c6   :  { %6105 = vmatpush3.msra.mxu1 %v7794_v2 }
 0x1c7   :  { %6106 = vmatprep.subr.mxu1 %v10344_v37 }
 0x1c8   :  { %6107 = vmatpush3.msra.mxu1 %v7800_v20 }
 0x1c9   :  { %6108 = vmatprep.subr.mxu1 %v10344_v37 }
 0x1ca   :  { %6109 = vmatpush3.msra.mxu1 %v7806_v28 }
 0x1cb   :  { %6110 = vmatprep.subr.mxu1 %v10344_v37 }
 0x1cc   :  { %6111 = vmatpush3.msra.mxu1 %v7810_v48 }
 0x1cd   :  { %6112 = vmatprep.subr.mxu1 %v10344_v37 }
 0x1ce   :  { %6113 = vmatpush3.msra.mxu1 %v7814_v56 }
 0x1cf   :  { %6114 = vmatprep.subr.mxu1 %v10344_v37 }
 0x1d0   :  { %6115 = vmatpush3.msra.mxu1 %v7819_v58 }
 0x1d1   :  { %6116 = vmatprep.subr.mxu1 %v10344_v37 }
 0x1d2   :  { %6117 = vmatpush3.msra.mxu1 %v7824_v24 }
 0x1d3   :  { %6118 = vmatprep.subr.mxu1 %v10344_v37 }
 0x1d4   :  { %6119 = vmatpush3.msra.mxu1 %v7829_v36 }
 0x1d5   :  { %6121 = vmatmul.mubr.msk.f32.vlgmr.msra.gmra.mxu1 %vm918_vm5, %v7835_v38 }
 0x1d6   :  { %6125 = vmatprep.mubr.msk.f32.mxu1 %vm992_vm6, %v7844_v57 }
 0x295   :  { %v988_v32 = vpop.f32.mrf.mxu1 }
 0x296   :  { %6123 = vmatprep.subr.msk.mxu1 %vm1035_vm7, %v988_v32 }
 0x297   :  { %v6122_v34 = vpop.f32.mrf.mxu1  ;;  %6124 = vmatpush3.msk.msra.mxu1 %vm1035_vm7, %v988_v32 }
 0x298   :  { %6126 = vmatmul.mubr.msk.f32.vlgmr.msra.gmra.mxu1 %vm992_vm6, %v7851_v23  ;;  %6146 = vmatprep.subr.mxu1 %v10344_v37 }
 0x299   :  { %6128 = vmatprep.mubr.msk.f32.mxu1 %vm992_vm6, %v7857_v9 }
 0x29c   :  { %6129 = vmatmul.mubr.msk.f32.gmra.mxu1 %vm992_vm6, %v7868_v15 }
 0x29d   :  { %6131 = vmatprep.mubr.msk.f32.mxu1 %vm992_vm6, %v7873_v53 }
 0x2a0   :  { %6132 = vmatmul.mubr.msk.f32.gmra.mxu1 %vm992_vm6, %v7882_v17 }
 0x2a1   :  { %6134 = vmatprep.mubr.msk.f32.mxu1 %vm992_vm6, %v7887_v14 }
 0x2a4   :  { %6135 = vmatmul.mubr.msk.f32.gmra.mxu1 %vm992_vm6, %v7896_v50 }
 0x2a5   :  { %6137 = vmatprep.mubr.msk.f32.mxu1 %vm992_vm6, %v7901_v11 }
 0x2a8   :  { %6138 = vmatmul.mubr.msk.f32.gmra.mxu1 %vm992_vm6, %v7910_v0 }
 0x2a9   :  { %6140 = vmatprep.mubr.msk.f32.mxu1 %vm992_vm6, %v7915_v6 }
 0x2ac   :  { %6141 = vmatmul.mubr.msk.f32.gmra.mxu1 %vm992_vm6, %v7924_v63 }
 0x2ad   :  { %6143 = vmatprep.mubr.msk.f32.mxu1 %vm992_vm6, %v7929_v10 }
 0x2b0   :  { %6144 = vmatmul.mubr.msk.f32.gmra.mxu1 %vm992_vm6, %v7938_v40 }
 0x2b1   :  { %6174 = vmatprep.mubr.msk.f32.mxu1 %vm7059_vm0, %v10344_v37 }
 0x358   :  { %v6127_v4 = vpop.f32.mrf.mxu1 }
 0x35a   :  { %v1105_v22 = vpop.f32.mrf.mxu1 }
 0x35c   :  { %v6130_v44 = vpop.f32.mrf.mxu1 }
 0x35e   :  { %v1115_v41 = vpop.f32.mrf.mxu1 }
 0x360   :  { %v6133_v51 = vpop.f32.mrf.mxu1 }
 0x362   :  { %v1125_v49 = vpop.f32.mrf.mxu1 }
 0x364   :  { %v6136_v12 = vpop.f32.mrf.mxu1 }
 0x366   :  { %v1135_v16 = vpop.f32.mrf.mxu1 }
 0x368   :  { %v6139_v31 = vpop.f32.mrf.mxu1 }
 0x36a   :  { %v1145_v5 = vpop.f32.mrf.mxu1 }
 0x36c   :  { %v6142_v39 = vpop.f32.mrf.mxu1 }
 0x36d   :  { %v7948_v18 = vsub.f32 %v7774_v62, %v6142_v39 }
 0x36e   :  { %v1155_v60 = vpop.f32.mrf.mxu1 }
 0x36f   :  { %v7956_v7 = vsub.f32 %v7779_v26, %v1155_v60  ;;  %v1199_v62 = vmul.f32 %v7948_v18, %v7948_v18 }
 0x370   :  { %v6145_v25 = vpop.f32.mrf.mxu1 }
 0x371   :  { %v7945_v32 = vsub.f32 %v7766_v19, %v6145_v25  ;;  %v7962_v19 = vsub.f32 %v7785_v46, %v6139_v31  ;;  %v1198_v26 = vmul.f32 %v7956_v7, %v7956_v7  ;;  %v7986_v31 = vsub.f32 %v7806_v28, %v6133_v51 }
 0x372   :  { %v1165_v34 = vpop.f32.mrf.mxu1  ;;  %v8004_v51 = vsub.f32 %v7819_v58, %v1115_v41 }
 0x373   :  { %v1201_v1 = vmul.f32 %v7945_v32, %v7945_v32  ;;  %v7953_v8 = vsub.f32 %v7769_v21, %v1165_v34  ;;  %v7968_v21 = vsub.f32 %v7789_v3, %v1145_v5  ;;  %v1197_v46 = vmul.f32 %v7962_v19, %v7962_v19 }
 0x374   :  { %v1193_v28 = vmul.f32 %v7986_v31, %v7986_v31  ;;  %v1190_v58 = vmul.f32 %v8004_v51, %v8004_v51 }
 0x375   :  { %v1200_v54 = vmul.f32 %v7953_v8, %v7953_v8  ;;  %6147 = vmatpush3.msra.mxu1 %v1201_v1  ;;  %v7974_v1 = vsub.f32 %v7794_v2, %v6136_v12  ;;  %v1196_v3 = vmul.f32 %v7968_v21, %v7968_v21  ;;  %v7992_v12 = vsub.f32 %v7810_v48, %v1125_v49 }
 0x376   :  { %6148 = vmatprep.subr.mxu1 %v10344_v37  ;;  %v8010_v49 = vsub.f32 %v7824_v24, %v6127_v4  ;;  %v6919_v4 = vld [vmem:[%s10324_s2 + $0x90] sm:$0xff]  }
 0x377   :  { %6149 = vmatpush3.msra.mxu1 %v1200_v54  ;;  %v7980_v54 = vsub.f32 %v7800_v20, %v1135_v16  ;;  %v1195_v2 = vmul.f32 %v7974_v1, %v7974_v1  ;;  %v7998_v16 = vsub.f32 %v7814_v56, %v6130_v44  ;;  %v1192_v48 = vmul.f32 %v7992_v12, %v7992_v12 }
 0x378   :  { %6150 = vmatprep.subr.mxu1 %v10344_v37  ;;  %v8016_v44 = vsub.f32 %v7829_v36, %v1105_v22  ;;  %v1189_v41 = vmul.f32 %v8010_v49, %v8010_v49  ;;  %v6918_v36 = vld [vmem:[%s10324_s2 + $0x98] sm:$0xff]  }
 0x379   :  { %6151 = vmatpush3.msra.mxu1 %v1199_v62  ;;  %v1194_v20 = vmul.f32 %v7980_v54, %v7980_v54  ;;  %v1191_v56 = vmul.f32 %v7998_v16, %v7998_v16  ;;  %6201 = vmatpush3.bf16.msra.mxu0 %v6918_v36 }
 0x37a   :  { %6152 = vmatprep.subr.mxu1 %v10344_v37  ;;  %v1188_v24 = vmul.f32 %v8016_v44, %v8016_v44  ;;  %6202 = vmatprep.subr.bf16.mxu0 %v10344_v37 }
 0x37b   :  { %6153 = vmatpush3.msra.mxu1 %v1198_v26 }
 0x37c   :  { %6154 = vmatprep.subr.mxu1 %v10344_v37 }
 0x37d   :  { %6155 = vmatpush3.msra.mxu1 %v1197_v46  ;;  %6203 = vmatpush3.bf16.msra.mxu0 %v6919_v4 }
 0x37e   :  { %6156 = vmatprep.subr.mxu1 %v10344_v37  ;;  %6204 = vmatprep.subr.bf16.mxu0 %v10344_v37 }
 0x37f   :  { %6157 = vmatpush3.msra.mxu1 %v1196_v3 }
 0x380   :  { %6158 = vmatprep.subr.mxu1 %v10344_v37 }
 0x381   :  { %6159 = vmatpush3.msra.mxu1 %v1195_v2 }
 0x382   :  { %6160 = vmatprep.subr.mxu1 %v10344_v37 }
 0x383   :  { %6161 = vmatpush3.msra.mxu1 %v1194_v20 }
 0x384   :  { %6162 = vmatprep.subr.mxu1 %v10344_v37 }
 0x385   :  { %6163 = vmatpush3.msra.mxu1 %v1193_v28  ;;  %v6926_v28 = vld [vmem:[%s10324_s2 + $0xb8] sm:$0xff]  }
 0x386   :  { %6164 = vmatprep.subr.mxu1 %v10344_v37 }
 0x387   :  { %6165 = vmatpush3.msra.mxu1 %v1192_v48 }
 0x388   :  { %6166 = vmatprep.subr.mxu1 %v10344_v37 }
 0x389   :  { %6167 = vmatpush3.msra.mxu1 %v1191_v56 }
 0x38a   :  { %6168 = vmatprep.subr.mxu1 %v10344_v37 }
 0x38b   :  { %6169 = vmatpush3.msra.mxu1 %v1190_v58 }
 0x38c   :  { %6170 = vmatprep.subr.mxu1 %v10344_v37 }
 0x38d   :  { %6171 = vmatpush3.msra.mxu1 %v1189_v41 }
 0x38e   :  { %6172 = vmatprep.subr.mxu1 %v10344_v37 }
 0x38f   :  { %6173 = vmatpush3.msra.mxu1 %v1188_v24 }
 0x390   :  { %6175 = vmatmul.mubr.msk.f32.vlgmr.msra.gmra.mxu1 %vm918_vm5, %v7835_v38 }
 0x391   :  { %6179 = vmatprep.mubr.msk.f32.mxu1 %vm992_vm6, %v7844_v57  ;;  %v5297_v57 = vld [vmem:[%s10243_s8] ss:$0 sm:$0xff] }
 0x450   :  { %v1268_v22 = vpop.f32.mrf.mxu1 }
 0x451   :  { %v1269_v5 = vadd.f32 1e-05, %v1268_v22 }
 0x452   :  { %v6176_v38 = vpop.f32.mrf.mxu1 }
 0x453   :  { %6952 = vrsqrt.f32 %v1269_v5  ;;  %v6928_v5 = vld [vmem:[%s10324_s2 + $0xa8] sm:$0xff]  }
 0x460   :  { %v6953_v39 = vpop.eup %6952 }
 0x461   :  { %v1279_v60 = vmul.f32 %v6953_v39, %v5297_v57 }
 0x463   :  { %6177 = vmatprep.subr.msk.mxu1 %vm1035_vm7, %v1279_v60 }
 0x464   :  { %6178 = vmatpush3.msk.msra.mxu1 %vm1035_vm7, %v1279_v60 }
 0x465   :  { %6180 = vmatmul.mubr.msk.f32.vlgmr.msra.gmra.mxu1 %vm992_vm6, %v7851_v23  ;;  %6236 = vmatprep.subr.bf16.mxu1 %v10344_v37  ;;  %v6920_v23 = vld [vmem:[%s10324_s2 + $0x88] sm:$0xff]  }
 0x466   :  { %6182 = vmatprep.mubr.msk.f32.mxu1 %vm992_vm6, %v7857_v9  ;;  %6205 = vmatpush3.bf16.msra.mxu0 %v6920_v23  ;;  %v6921_v9 = vld [vmem:[%s10324_s2 + $0x80] sm:$0xff]  }
 0x467   :  { %6206 = vmatprep.subr.bf16.mxu0 %v10344_v37 }
 0x469   :  { %6183 = vmatmul.mubr.msk.f32.gmra.mxu1 %vm992_vm6, %v7868_v15  ;;  %v6922_v15 = vld [vmem:[%s10324_s2 + $0x78] sm:$0xff]  }
 0x46a   :  { %6185 = vmatprep.mubr.msk.f32.mxu1 %vm992_vm6, %v7873_v53  ;;  %6207 = vmatpush3.bf16.msra.mxu0 %v6921_v9  ;;  %v6923_v53 = vld [vmem:[%s10324_s2 + $0x70] sm:$0xff]  }
 0x46b   :  { %6272 = vmatprep.subr.bf16.mxu0 %v10344_v37  ;;  %6237 = vmatpush3.bf16.msra.mxu1 %v6922_v15 }
 0x46c   :  { %6238 = vmatprep.subr.bf16.mxu1 %v10344_v37 }
 0x46d   :  { %6186 = vmatmul.mubr.msk.f32.gmra.mxu1 %vm992_vm6, %v7882_v17  ;;  %v6924_v17 = vld [vmem:[%s10324_s2 + $0x68] sm:$0xff]  }
 0x46e   :  { %6188 = vmatprep.mubr.msk.f32.mxu1 %vm992_vm6, %v7887_v14  ;;  %v6925_v14 = vld [vmem:[%s10324_s2 + $0x60] sm:$0xff]  }
 0x46f   :  { %6239 = vmatpush3.bf16.msra.mxu1 %v6923_v53 }
 0x470   :  { %6240 = vmatprep.subr.bf16.mxu1 %v10344_v37 }
 0x471   :  { %6189 = vmatmul.mubr.msk.f32.gmra.mxu1 %vm992_vm6, %v7896_v50  ;;  %v8100_v50 = vld [vmem:[%s10244_s9] ss:$0 sm:$0xff] }
 0x472   :  { %6191 = vmatprep.mubr.msk.f32.mxu1 %vm992_vm6, %v7901_v11 }
 0x473   :  { %6241 = vmatpush3.bf16.msra.mxu1 %v6924_v17 }
 0x474   :  { %6242 = vmatprep.subr.bf16.mxu1 %v10344_v37 }
 0x475   :  { %6192 = vmatmul.mubr.msk.f32.gmra.mxu1 %vm992_vm6, %v7910_v0 }
 0x476   :  { %6194 = vmatprep.mubr.msk.f32.mxu1 %vm992_vm6, %v7915_v6 }
 0x477   :  { %6243 = vmatpush3.bf16.msra.mxu1 %v6925_v14 }
 0x478   :  { %6308 = vmatprep.subr.mxu1 %v10344_v37 }
 0x479   :  { %6195 = vmatmul.mubr.msk.f32.gmra.mxu1 %vm992_vm6, %v7924_v63 }
 0x47a   :  { %6197 = vmatprep.mubr.msk.f32.mxu1 %vm992_vm6, %v7929_v10 }
 0x47d   :  { %6198 = vmatmul.mubr.msk.f32.gmra.mxu1 %vm992_vm6, %v7938_v40 }
 0x47e   :  { %6244 = vmatprep.mubr.msk.bf16.mxu1 %vm7059_vm0, %v10344_v37 }
 0x525   :  { %v6181_v11 = vpop.f32.mrf.mxu1 }
 0x526   :  { %v1419_v0 = vmul.f32 %v6181_v11, %v8010_v49 }
 0x527   :  { %v1349_v6 = vpop.f32.mrf.mxu1 }
 0x528   :  { %v1439_v63 = vadd.f32 %v8100_v50, %v1419_v0  ;;  %v1418_v10 = vmul.f32 %v1349_v6, %v8016_v44 }
 0x529   :  { %v6184_v25 = vpop.f32.mrf.mxu1 }
 0x52a   :  { %v1438_v34 = vadd.f32 %v8100_v50, %v1418_v10  ;;  %v8106_v26 = vmax.f32 %v1439_v63, 0.0  ;;  %v1421_v3 = vmul.f32 %v6184_v25, %v7998_v16  ;;  %v6927_v16 = vld [vmem:[%s10324_s2 + $0xb0] sm:$0xff]  }
 0x52b   :  { %v1359_v62 = vpop.f32.mrf.mxu1 }
 0x52c   :  { %v8108_v46 = vmax.f32 %v1438_v34, 0.0  ;;  %v1420_v2 = vmul.f32 %v1359_v62, %v8004_v51  ;;  %v1441_v44 = vadd.f32 %v8100_v50, %v1421_v3 }
 0x52d   :  { %v6187_v20 = vpop.f32.mrf.mxu1 }
 0x52e   :  { %v1593_v48 = vpack.c.bf16 %v8106_v26, %v8108_v46  ;;  %v1440_v49 = vadd.f32 %v8100_v50, %v1420_v2  ;;  %v8129_v36 = vmax.f32 %v1441_v44, 0.0  ;;  %v1423_v4 = vmul.f32 %v6187_v20, %v7986_v31  ;;  %v6929_v31 = vld [vmem:[%s10324_s2 + $0xa0] sm:$0xff]  }
 0x52f   :  { %v1369_v56 = vpop.f32.mrf.mxu1 }
 0x530   :  { %6209 = vmatmul.mubr.msk.bf16.vlgmr.msra.gmra.mxu0 %vm503_vm2, %v1593_v48  ;;  %v8125_v51 = vmax.f32 %v1440_v49, 0.0  ;;  %v1422_v41 = vmul.f32 %v1369_v56, %v7992_v12  ;;  %v1443_v39 = vadd.f32 %v8100_v50, %v1423_v4 }
 0x531   :  { %v6190_v58 = vpop.f32.mrf.mxu1  ;;  %6212 = vmatprep.mubr.msk.bf16.mxu0 %vm7059_vm0, %v10344_v37  ;;  %6273 = vmatpush3.bf16.msra.mxu0 %v6926_v28 }
 0x532   :  { %6274 = vmatprep.subr.bf16.mxu0 %v10344_v37  ;;  %v1442_v38 = vadd.f32 %v8100_v50, %v1422_v41  ;;  %v1594_v57 = vpack.c.bf16 %v8129_v36, %v8125_v51  ;;  %v8150_v53 = vmax.f32 %v1443_v39, 0.0  ;;  %v1425_v17 = vmul.f32 %v6190_v58, %v7974_v1 }
 0x533   :  { %v1379_v24 = vpop.f32.mrf.mxu1  ;;  %v1496_v1 = vrot.slane %v8106_v26, 7  ;;  %v1497_v28 = vrot.slane %v8125_v51, 7 }
 0x534   :  { %v8146_v23 = vmax.f32 %v1442_v38, 0.0  ;;  %v1424_v9 = vmul.f32 %v1379_v24, %v7980_v54  ;;  %v1495_v54 = vrot.slane %v8108_v46, 7  ;;  %v1445_v63 = vadd.f32 %v8100_v50, %v1425_v17 }
 0x535   :  { %v6193_v22 = vpop.f32.mrf.mxu1  ;;  %6275 = vmatpush3.bf16.msra.mxu0 %v6927_v16 }
 0x536   :  { %6276 = vmatprep.subr.bf16.mxu0 %v10344_v37  ;;  %v1444_v11 = vadd.f32 %v8100_v50, %v1424_v9  ;;  %v1595_v6 = vpack.c.bf16 %v8150_v53, %v8146_v23  ;;  %v1521_v62 = vsel %vm246_vm3, %v1495_v54, %v1496_v1  ;;  %v8172_v3 = vmax.f32 %v1445_v63, 0.0 }
 0x537   :  { %v1389_v12 = vpop.f32.mrf.mxu1  ;;  %v1427_v2 = vmul.f32 %v6193_v22, %v7962_v19  ;;  %v1524_v56 = vmul.f32 %v1521_v62, %v7486_v33  ;;  %v1498_v19 = vrot.slane %v8129_v36, 7  ;;  %v1520_v22 = vsel %vm246_vm3, %v1496_v1, %v1497_v28 }
 0x538   :  { %6213 = vmatmul.mubr.msk.bf16.gmra.mxu0 %vm503_vm2, %v1594_v57  ;;  %v8165_v25 = vmax.f32 %v1444_v11, 0.0  ;;  %v1525_v57 = vmul.f32 %v1520_v22, %v7520_v45 }
 0x539   :  { %v6196_v60 = vpop.f32.mrf.mxu1  ;;  %6216 = vmatprep.mubr.msk.bf16.mxu0 %vm7059_vm0, %v10344_v37  ;;  %6277 = vmatpush3.bf16.msra.mxu0 %v6928_v5  ;;  %v1447_v58 = vadd.f32 %v8100_v50, %v1427_v2  ;;  %v1519_v4 = vsel %vm246_vm3, %v1497_v28, %v1498_v19 }
 0x53a   :  { %6278 = vmatprep.subr.bf16.mxu0 %v10344_v37  ;;  %v1596_v49 = vpack.c.bf16 %v8172_v3, %v8165_v25  ;;  %v1429_v38 = vmul.f32 %v6196_v60, %v7948_v18 }
 0x53b   :  { %v1399_v15 = vpop.f32.mrf.mxu1  ;;  %v8199_v5 = vmax.f32 %v1447_v58, 0.0 }
 0x53c   :  { %v1428_v24 = vmul.f32 %v1399_v15, %v7956_v7  ;;  %v1499_v7 = vrot.slane %v8146_v23, 7  ;;  %v1500_v15 = vrot.slane %v8150_v53, 7  ;;  %v1449_v17 = vadd.f32 %v8100_v50, %v1429_v38 }
 0x53d   :  { %v6199_v14 = vpop.f32.mrf.mxu1  ;;  %6279 = vmatpush3.bf16.msra.mxu0 %v6929_v31 }
 0x53e   :  { %v1431_v0 = vmul.f32 %v6199_v14, %v7945_v32  ;;  %6416 = vmatprep.subr.bf16.mxu0 %v10344_v37  ;;  %v1426_v32 = vmul.f32 %v1389_v12, %v7968_v21  ;;  %v1526_v12 = vmul.f32 %v1519_v4, %v7524_v47  ;;  %v1448_v39 = vadd.f32 %v8100_v50, %v1428_v24 }
 0x53f   :  { %v1409_v9 = vpop.f32.mrf.mxu1  ;;  %v1517_v11 = vsel %vm246_vm3, %v1499_v7, %v1500_v15 }
 0x540   :  { %v1451_v10 = vadd.f32 %v8100_v50, %v1431_v0  ;;  %6217 = vmatmul.mubr.msk.bf16.gmra.mxu0 %vm503_vm2, %v1595_v6  ;;  %v1446_v48 = vadd.f32 %v8100_v50, %v1426_v32  ;;  %v1538_v18 = vpack.c.bf16 %v1526_v12, %v1525_v57  ;;  %v8215_v60 = vmax.f32 %v1448_v39, 0.0 }
 0x541   :  { %6220 = vmatprep.mubr.msk.bf16.mxu0 %vm7059_vm0, %v10344_v37  ;;  %v1430_v14 = vmul.f32 %v1409_v9, %v7953_v8  ;;  %v1518_v0 = vsel %vm246_vm3, %v1498_v19, %v1499_v7  ;;  %v8223_v6 = vmax.f32 %v1449_v17, 0.0  ;;  %v1528_v63 = vmul.f32 %v1517_v11, %v7553_v61 }
 0x542   :  { %v8168_v34 = vmax.f32 %v1451_v10, 0.0  ;;  %v8191_v41 = vmax.f32 %v1446_v48, 0.0  ;;  %v1501_v10 = vrot.slane %v8165_v25, 7  ;;  %v1502_v32 = vrot.slane %v8172_v3, 7 }
 0x543   :  { %v1450_v8 = vadd.f32 %v8100_v50, %v1430_v14  ;;  %v1598_v1 = vpack.c.bf16 %v8223_v6, %v8215_v60  ;;  %v1546_v50 = vrot.slane %v8125_v51, 1  ;;  %v1548_v57 = vrot.slane %v8146_v23, 1 }
 0x544   :  { %v1508_v20 = vrot.slane %v8168_v34, 7  ;;  %v1597_v31 = vpack.c.bf16 %v8199_v5, %v8191_v41  ;;  %v1515_v28 = vsel %vm246_vm3, %v1501_v10, %v1502_v32  ;;  %v1516_v48 = vsel %vm246_vm3, %v1500_v15, %v1501_v10 }
 0x545   :  { %v8237_v2 = vmax.f32 %v1450_v8, 0.0  ;;  %v1503_v19 = vrot.slane %v8191_v41, 7  ;;  %v1547_v7 = vrot.slane %v8129_v36, 1  ;;  %v1505_v15 = vrot.slane %v8215_v60, 7 }
 0x546   :  { %v1522_v21 = vsel %vm246_vm3, %v1508_v20, %v1495_v54  ;;  %v1527_v54 = vmul.f32 %v1518_v0, %v7549_v59  ;;  %v1506_v23 = vrot.slane %v8223_v6, 7  ;;  %v1549_v8 = vrot.slane %v8150_v53, 1  ;;  %v10350_v53 = vld [vmem:[#allocation10_spill] sm:$0xff] }
 0x547   :  { %v1523_v44 = vmul.f32 %v1522_v21, %v7492_v35  ;;  %v1545_v21 = vrot.slane %v8106_v26, 1  ;;  %v1599_v58 = vpack.c.bf16 %v8168_v34, %v8237_v2  ;;  %v1514_v38 = vsel %vm246_vm3, %v1502_v32, %v1503_v19 }
 0x548   :  { %6221 = vmatmul.mubr.msk.bf16.gmra.mxu0 %vm503_vm2, %v1596_v49  ;;  %v1539_v62 = vpack.c.bf16 %v1528_v63, %v1527_v54  ;;  %v1544_v49 = vrot.slane %v8108_v46, 1  ;;  %v1531_v39 = vmul.f32 %v1514_v38, %v7618_v13  ;;  %v1567_v17 = vsel %vm366_vm4, %v1547_v7, %v1548_v57  ;;  %v10347_v63 = vld [vmem:[#allocation6_spill] sm:$0xff]  ;;  %v10353_v38 = vld [vmem:[#allocation20_spill] sm:$0xff] }
 0x549   :  { %v1537_v16 = vpack.c.bf16 %v1524_v56, %v1523_v44  ;;  %6224 = vmatprep.mubr.msk.bf16.mxu0 %vm7059_vm0, %v10344_v37  ;;  %v1529_v56 = vmul.f32 %v1516_v48, %v7588_v27  ;;  %v1530_v44 = vmul.f32 %v1515_v28, %v7592_v30  ;;  %v1569_v51 = vsel %vm366_vm4, %v1545_v21, %v1546_v50 }
 0x54a   :  { %v1570_v26 = vsel %vm366_vm4, %v1544_v49, %v1545_v21  ;;  %v1573_v4 = vmul.f32 %v1569_v51, %v7507_v43  ;;  %v1568_v36 = vsel %vm366_vm4, %v1546_v50, %v1547_v7  ;;  %v1575_v14 = vmul.f32 %v1567_v17, %v7539_v55 }
 0x54b   :  { %6245 = vmatmul.mubr.msk.bf16.vlgmr.msra.gmra.mxu1 %vm503_vm2, %v1537_v16  ;;  %v1504_v16 = vrot.slane %v8199_v5, 7  ;;  %v1540_v24 = vpack.c.bf16 %v1530_v44, %v1529_v56  ;;  %v1572_v12 = vmul.f32 %v1570_v26, %v7505_v42  ;;  %v1511_v11 = vsel %vm246_vm3, %v1505_v15, %v1506_v23 }
 0x54c   :  { %6248 = vmatprep.mubr.msk.bf16.mxu1 %vm7059_vm0, %v10344_v37  ;;  %v1550_v54 = vrot.slane %v8165_v25, 1  ;;  %v1574_v10 = vmul.f32 %v1568_v36, %v10347_v63  ;;  %v1507_v48 = vrot.slane %v8237_v2, 7  ;;  %v1566_v56 = vsel %vm366_vm4, %v1548_v57, %v1549_v8  ;;  %v10356_v36 = vld [vmem:[#allocation14_spill] sm:$0xff] }
 0x54d   :  { %v1513_v22 = vsel %vm246_vm3, %v1503_v19, %v1504_v16  ;;  %v1586_v9 = vpack.c.bf16 %v1573_v4, %v1572_v12  ;;  %v1512_v0 = vsel %vm246_vm3, %v1504_v16, %v1505_v15  ;;  %v1552_v51 = vrot.slane %v8191_v41, 1  ;;  %v10351_v16 = vld [vmem:[#allocation9_spill] sm:$0xff]  ;;  %v10352_v4 = vld [vmem:[#allocation19_spill] sm:$0xff] }
 0x54e   :  { %v1587_v50 = vpack.c.bf16 %v1575_v14, %v1574_v10  ;;  %v1565_v21 = vsel %vm366_vm4, %v1549_v8, %v1550_v54  ;;  %v1509_v19 = vsel %vm246_vm3, %v1507_v48, %v1508_v20  ;;  %v1576_v26 = vmul.f32 %v1566_v56, %v10351_v16 }
 0x54f   :  { %v1577_v44 = vmul.f32 %v1565_v21, %v10350_v53  ;;  %v1536_v57 = vmul.f32 %v1509_v19, %v10353_v38  ;;  %v1553_v17 = vrot.slane %v8199_v5, 1  ;;  %v1555_v5 = vrot.slane %v8223_v6, 1 }
 0x550   :  { %6225 = vmatmul.mubr.msk.bf16.gmra.mxu0 %vm503_vm2, %v1597_v31  ;;  %v1532_v31 = vmul.f32 %v1513_v22, %v7622_v52  ;;  %v1557_v21 = vrot.slane %v8168_v34, 1 }
 0x551   :  { %6228 = vmatprep.mubr.msk.bf16.mxu0 %vm7059_vm0, %v10344_v37  ;;  %v1588_v12 = vpack.c.bf16 %v1577_v44, %v1576_v26  ;;  %v10360_v44 = vld [vmem:[#allocation21_spill] sm:$0xff] }
 0x552   :  { %v1571_v56 = vsel %vm366_vm4, %v1557_v21, %v1544_v49 }
 0x553   :  { %6249 = vmatmul.mubr.msk.bf16.gmra.mxu1 %vm503_vm2, %v1538_v18  ;;  %v1541_v18 = vpack.c.bf16 %v1532_v31, %v1531_v39  ;;  %v10354_v39 = vld [vmem:[#allocation12_spill] sm:$0xff] }
 0x554   :  { %6252 = vmatprep.mubr.msk.bf16.mxu1 %vm7059_vm0, %v10344_v37 }
 0x558   :  { %6229 = vmatmul.mubr.msk.bf16.gmra.mxu0 %vm503_vm2, %v1598_v1  ;;  %v10348_v1 = vld [vmem:[#allocation15_spill] sm:$0xff] }
 0x559   :  { %6232 = vmatprep.mubr.msk.bf16.mxu0 %vm7059_vm0, %v10344_v37  ;;  %v1533_v32 = vmul.f32 %v1512_v0, %v10348_v1  ;;  %v10357_v0 = vld [vmem:[#allocation13_spill] sm:$0xff] }
 0x55b   :  { %6253 = vmatmul.mubr.msk.bf16.gmra.mxu1 %vm503_vm2, %v1539_v62  ;;  %v10349_v62 = vld [vmem:[#allocation16_spill] sm:$0xff] }
 0x55c   :  { %6256 = vmatprep.mubr.msk.bf16.mxu1 %vm7059_vm0, %v10344_v37  ;;  %v1534_v28 = vmul.f32 %v1511_v11, %v10349_v62  ;;  %v1556_v11 = vrot.slane %v8237_v2, 1 }
 0x55e   :  { %v1542_v25 = vpack.c.bf16 %v1534_v28, %v1533_v32  ;;  %v1559_v8 = vsel %vm366_vm4, %v1555_v5, %v1556_v11  ;;  %v10358_v28 = vld [vmem:[#allocation18_spill] sm:$0xff]  ;;  %v1558_v6 = vsel %vm366_vm4, %v1556_v11, %v1557_v21 }
 0x55f   :  { %v1584_v19 = vmul.f32 %v1558_v6, %v10360_v44 }
 0x560   :  { %6233 = vmatmul.mubr.msk.bf16.gmra.mxu0 %vm503_vm2, %v1599_v58  ;;  %v1510_v58 = vsel %vm246_vm3, %v1506_v23, %v1507_v48  ;;  %v1583_v48 = vmul.f32 %v1559_v8, %v10358_v28 }
 0x561   :  { %6280 = vmatprep.mubr.msk.bf16.mxu0 %vm7059_vm0, %v10344_v37  ;;  %v1535_v22 = vmul.f32 %v1510_v58, %v10352_v4  ;;  %v10361_v58 = vld [vmem:[#allocation22_spill] sm:$0xff] }
 0x563   :  { %6257 = vmatmul.mubr.msk.bf16.gmra.mxu1 %vm503_vm2, %v1540_v24  ;;  %v1551_v24 = vrot.slane %v8172_v3, 1  ;;  %v1543_v41 = vpack.c.bf16 %v1536_v57, %v1535_v22  ;;  %v1554_v3 = vrot.slane %v8215_v60, 1  ;;  %v1562_v60 = vsel %vm366_vm4, %v1552_v51, %v1553_v17 }
 0x564   :  { %6260 = vmatprep.mubr.msk.bf16.mxu1 %vm7059_vm0, %v10344_v37 }
 0x565   :  { %v1563_v20 = vsel %vm366_vm4, %v1551_v24, %v1552_v51  ;;  %v1564_v7 = vsel %vm366_vm4, %v1550_v54, %v1551_v24  ;;  %v1580_v54 = vmul.f32 %v1562_v60, %v10357_v0  ;;  %v1560_v32 = vsel %vm366_vm4, %v1554_v3, %v1555_v5 }
 0x566   :  { %v1579_v31 = vmul.f32 %v1563_v20, %v10354_v39  ;;  %v1585_v51 = vmul.f32 %v1571_v56, %v10361_v58 }
 0x568   :  { %6281 = vmatmul.mubr.msk.bf16.vlgmr.msra.gmra.mxu0 %vm503_vm2, %v1586_v9  ;;  %v10355_v9 = vld [vmem:[#allocation11_spill] sm:$0xff]  ;;  %v1592_v26 = vpack.c.bf16 %v1585_v51, %v1584_v19 }
 0x569   :  { %6284 = vmatprep.mubr.msk.bf16.mxu0 %vm7059_vm0, %v10344_v37  ;;  %v1578_v15 = vmul.f32 %v1564_v7, %v10355_v9 }
 0x56b   :  { %6261 = vmatmul.mubr.msk.bf16.gmra.mxu1 %vm503_vm2, %v1541_v18  ;;  %v1589_v23 = vpack.c.bf16 %v1579_v31, %v1578_v15  ;;  %v1561_v18 = vsel %vm366_vm4, %v1553_v17, %v1554_v3 }
 0x56c   :  { %6264 = vmatprep.mubr.msk.bf16.mxu1 %vm7059_vm0, %v10344_v37  ;;  %v1581_v14 = vmul.f32 %v1561_v18, %v10356_v36 }
 0x56e   :  { %v1590_v10 = vpack.c.bf16 %v1581_v14, %v1580_v54 }
 0x570   :  { %6285 = vmatmul.mubr.msk.bf16.gmra.mxu0 %vm503_vm2, %v1587_v50  ;;  %v10359_v50 = vld [vmem:[#allocation17_spill] sm:$0xff] }
 0x571   :  { %6288 = vmatprep.mubr.msk.bf16.mxu0 %vm7059_vm0, %v10344_v37  ;;  %v1582_v2 = vmul.f32 %v1560_v32, %v10359_v50 }
 0x573   :  { %6265 = vmatmul.mubr.msk.bf16.gmra.mxu1 %vm503_vm2, %v1542_v25  ;;  %v1591_v25 = vpack.c.bf16 %v1583_v48, %v1582_v2 }
 0x574   :  { %6268 = vmatprep.mubr.msk.bf16.mxu1 %vm7059_vm0, %v10344_v37 }
 0x578   :  { %6289 = vmatmul.mubr.msk.bf16.gmra.mxu0 %vm503_vm2, %v1588_v12 }
 0x579   :  { %6292 = vmatprep.mubr.msk.bf16.mxu0 %vm7059_vm0, %v10344_v37 }
 0x57b   :  { %6269 = vmatmul.mubr.msk.bf16.gmra.mxu1 %vm503_vm2, %v1543_v41 }
 0x57c   :  { %6336 = vmatprep.mubr.msk.f32.mxu1 %vm7059_vm0, %v10344_v37 }
 0x580   :  { %6293 = vmatmul.mubr.msk.bf16.gmra.mxu0 %vm503_vm2, %v1589_v23 }
 0x581   :  { %6296 = vmatprep.mubr.msk.bf16.mxu0 %vm7059_vm0, %v10344_v37 }
 0x588   :  { %6297 = vmatmul.mubr.msk.bf16.gmra.mxu0 %vm503_vm2, %v1590_v10 }
 0x589   :  { %6300 = vmatprep.mubr.msk.bf16.mxu0 %vm7059_vm0, %v10344_v37 }
 0x590   :  { %6301 = vmatmul.mubr.msk.bf16.gmra.mxu0 %vm503_vm2, %v1591_v25 }
 0x591   :  { %6304 = vmatprep.mubr.msk.bf16.mxu0 %vm7059_vm0, %v10344_v37 }
 0x598   :  { %6305 = vmatmul.mubr.msk.bf16.gmra.mxu0 %vm503_vm2, %v1592_v26 }
 0x599   :  { %6424 = vmatprep.mubr.msk.bf16.mxu0 %vm7059_vm0, %v10344_v37 }
 0x5f0   :  { %v1679_v34 = vpop.f32.mrf.mxu0 }
 0x5f2   :  { %v6210_v24 = vpop.f32.mrf.mxu0 }
 0x5f4   :  { %v1682_v22 = vpop.f32.mrf.mxu0 }
 0x5f6   :  { %v6211_v57 = vpop.f32.mrf.mxu0 }
 0x5f8   :  { %v1687_v12 = vpop.f32.mrf.mxu0 }
 0x5fa   :  { %v6214_v20 = vpop.f32.mrf.mxu0 }
 0x5fc   :  { %v1690_v46 = vpop.f32.mrf.mxu0 }
 0x5fe   :  { %v6215_v41 = vpop.f32.mrf.mxu0 }
 0x600   :  { %v1695_v7 = vpop.f32.mrf.mxu0 }
 0x602   :  { %v6218_v49 = vpop.f32.mrf.mxu0 }
 0x604   :  { %v1698_v31 = vpop.f32.mrf.mxu0 }
 0x606   :  { %v6219_v3 = vpop.f32.mrf.mxu0 }
 0x608   :  { %v1703_v15 = vpop.f32.mrf.mxu0 }
 0x60a   :  { %v6222_v17 = vpop.f32.mrf.mxu0 }
 0x60b   :  { %v1813_v23 = vpop.f32.mrf.mxu1 }
 0x60c   :  { %v1814_v18 = vadd.f32 %v1813_v23, %v1679_v34  ;;  %v8371_v60 = vpop.f32.mrf.mxu0 }
 0x60d   :  { %v6246_v14 = vpop.f32.mrf.mxu1 }
 0x60e   :  { %v6223_v11 = vpop.f32.mrf.mxu0 }
 0x60f   :  { %v1816_v54 = vpop.f32.mrf.mxu1 }
 0x610   :  { %v1817_v5 = vadd.f32 %v1816_v54, %v1682_v22  ;;  %v8373_v10 = vpop.f32.mrf.mxu0 }
 0x611   :  { %v6247_v8 = vpop.f32.mrf.mxu1 }
 0x612   :  { %v6226_v32 = vpop.f32.mrf.mxu0 }
 0x613   :  { %v1821_v48 = vpop.f32.mrf.mxu1 }
 0x614   :  { %v1822_v2 = vadd.f32 %v1821_v48, %v1687_v12  ;;  %v8375_v21 = vpop.f32.mrf.mxu0 }
 0x615   :  { %v6250_v25 = vpop.f32.mrf.mxu1 }
 0x616   :  { %v6227_v6 = vpop.f32.mrf.mxu0 }
 0x617   :  { %v1824_v56 = vpop.f32.mrf.mxu1 }
 0x618   :  { %v8377_v19 = vadd.f32 %v1824_v56, %v1690_v46  ;;  %v8379_v51 = vpop.f32.mrf.mxu0 }
 0x619   :  { %v6251_v26 = vpop.f32.mrf.mxu1 }
 0x61a   :  { %v6230_v34 = vpop.f32.mrf.mxu0 }
 0x61b   :  { %v1829_v24 = vpop.f32.mrf.mxu1 }
 0x61c   :  { %v8381_v57 = vadd.f32 %v1829_v24, %v1695_v7  ;;  %v1722_v22 = vpop.f32.mrf.mxu0 }
 0x61d   :  { %v6254_v20 = vpop.f32.mrf.mxu1 }
 0x61e   :  { %v6231_v41 = vpop.f32.mrf.mxu0 }
 0x61f   :  { %v1832_v49 = vpop.f32.mrf.mxu1 }
 0x620   :  { %v8383_v3 = vadd.f32 %v1832_v49, %v1698_v31  ;;  %v1727_v12 = vpop.f32.mrf.mxu0 }
 0x621   :  { %v6255_v17 = vpop.f32.mrf.mxu1 }
 0x622   :  { %v6234_v23 = vpop.f32.mrf.mxu0 }
 0x623   :  { %v1837_v14 = vpop.f32.mrf.mxu1 }
 0x624   :  { %v8385_v11 = vadd.f32 %v1837_v14, %v1703_v15  ;;  %v1730_v46 = vpop.f32.mrf.mxu0 }
 0x625   :  { %v6258_v54 = vpop.f32.mrf.mxu1 }
 0x626   :  { %v6235_v8 = vpop.f32.mrf.mxu0 }
 0x627   :  { %v8387_v32 = vpop.f32.mrf.mxu1 }
 0x628   :  { %v1947_v48 = vpop.f32.mrf.mxu0 }
 0x629   :  { %v8389_v7 = vadd.f32 %v1947_v48, %v1814_v18  ;;  %v6259_v25 = vpop.f32.mrf.mxu1 }
 0x62a   :  { %v6282_v6 = vpop.f32.mrf.mxu0 }
 0x62b   :  { %v1845_v56 = vpop.f32.mrf.mxu1 }
 0x62c   :  { %v1950_v26 = vpop.f32.mrf.mxu0 }
 0x62d   :  { %v8391_v31 = vadd.f32 %v1950_v26, %v1817_v5  ;;  %v6262_v34 = vpop.f32.mrf.mxu1 }
 0x62e   :  { %v6283_v24 = vpop.f32.mrf.mxu0 }
 0x62f   :  { %v1848_v20 = vpop.f32.mrf.mxu1 }
 0x630   :  { %v1955_v41 = vpop.f32.mrf.mxu0 }
 0x631   :  { %v8393_v15 = vadd.f32 %v1955_v41, %v1822_v2  ;;  %v6263_v49 = vpop.f32.mrf.mxu1 }
 0x632   :  { %v6286_v17 = vpop.f32.mrf.mxu0 }
 0x633   :  { %v1853_v23 = vpop.f32.mrf.mxu1 }
 0x634   :  { %v8395_v14 = vpop.f32.mrf.mxu0 }
 0x635   :  { %v6266_v54 = vpop.f32.mrf.mxu1 }
 0x636   :  { %v6287_v18 = vpop.f32.mrf.mxu0 }
 0x637   :  { %v1856_v8 = vpop.f32.mrf.mxu1 }
 0x638   :  { %v1963_v48 = vpop.f32.mrf.mxu0 }
 0x639   :  { %v6267_v25 = vpop.f32.mrf.mxu1 }
 0x63a   :  { %v6290_v6 = vpop.f32.mrf.mxu0 }
 0x63b   :  { %v1861_v58 = vpop.f32.mrf.mxu1 }
 0x63c   :  { %v1966_v5 = vpop.f32.mrf.mxu0  ;;  %v1862_v38 = vadd.f32 %v1861_v58, %v1727_v12  ;;  %v2006_v12 = vadd.f32 %v1963_v48, %v8381_v57  ;;  %v8509_v48 = vld [vmem:[%s10346_s28 + $0x20] sm:$0xff] }
 0x63d   :  { %v6270_v26 = vpop.f32.mrf.mxu1 }
 0x63e   :  { %v6291_v34 = vpop.f32.mrf.mxu0 }
 0x63f   :  { %v1864_v24 = vpop.f32.mrf.mxu1  ;;  %v1857_v34 = vadd.f32 %v1856_v8, %v1722_v22  ;;  %v8502_v8 = vld [vmem:[%s10346_s28 + $0x18] sm:$0xff] }
 0x640   :  { %v1971_v44 = vpop.f32.mrf.mxu0  ;;  %v1865_v4 = vadd.f32 %v1864_v24, %v1730_v46  ;;  %v8523_v24 = vld [vmem:[%s10346_s28 + $0x30] sm:$0xff] }
 0x641   :  { %v6271_v50 = vpop.f32.mrf.mxu1 }
 0x642   :  { %v6294_v2 = vpop.f32.mrf.mxu0  ;;  %v5372_v50 = vld [vmem:[%s10242_s7 + $0x1] ss:$0 sm:$0xff] }
 0x644   :  { %v1974_v41 = vpop.f32.mrf.mxu0 }
 0x646   :  { %v6295_v49 = vpop.f32.mrf.mxu0 }
 0x648   :  { %v1979_v17 = vpop.f32.mrf.mxu0 }
 0x64a   :  { %v6298_v28 = vpop.f32.mrf.mxu0 }
 0x64b   :  { %v1854_v28 = vadd.f32 %v1853_v23, %v8379_v51  ;;  %v8487_v23 = vld [vmem:[%s10346_s28 + $0x8] sm:$0xff] }
 0x64c   :  { %v1982_v0 = vpop.f32.mrf.mxu0 }
 0x64e   :  { %v6299_v36 = vpop.f32.mrf.mxu0 }
 0x650   :  { %v1987_v54 = vpop.f32.mrf.mxu0 }
 0x652   :  { %v6302_v18 = vpop.f32.mrf.mxu0 }
 0x653   :  { %v2012_v18 = vadd.f32 %v1987_v54, %v1854_v28  ;;  %v8544_v54 = vld [vmem:[%s10346_s28 + $0x48] sm:$0xff] }
 0x654   :  { %v1990_v9 = vpop.f32.mrf.mxu0 }
 0x655   :  { %v2013_v36 = vadd.f32 %v1990_v9, %v1857_v34  ;;  %v8565_v34 = vld [vmem:[%s10346_s28 + $0x60] sm:$0xff] }
 0x656   :  { %v6303_v39 = vpop.f32.mrf.mxu0 }
 0x657   :  { %v1849_v39 = vadd.f32 %v1848_v20, %v8375_v21  ;;  %v8409_v58 = vadd.f32 %v5372_v50, %v2013_v36  ;;  %v8415_v21 = vadd.f32 %v5372_v50, %v2012_v18  ;;  %v8471_v20 = vld [vmem:[%s10345_s21] sm:$0x7] }
 0x658   :  { %v1995_v25 = vpop.f32.mrf.mxu0 }
 0x659   :  { %v2014_v16 = vadd.f32 %v1995_v25, %v1862_v38  ;;  %v2011_v38 = vadd.f32 %v1982_v0, %v1849_v39  ;;  %v2008_v0 = vadd.f32 %v1971_v44, %v8385_v11  ;;  %v2005_v44 = vadd.f32 %v8395_v14, %v8377_v19  ;;  %v8495_v14 = vld [vmem:[%s10346_s28 + $0x10] sm:$0xff] }
 0x65a   :  { %v6306_v6 = vpop.f32.mrf.mxu0  ;;  %v8453_v19 = vadd.f32 %v5372_v50, %v8393_v15  ;;  %v8551_v25 = vld [vmem:[%s10346_s28 + $0x50] sm:$0xff] }
 0x65b   :  { %v8404_v6 = vadd.f32 %v5372_v50, %v2014_v16  ;;  %v8419_v51 = vadd.f32 %v5372_v50, %v2011_v38  ;;  %v8434_v46 = vadd.f32 %v5372_v50, %v2008_v0  ;;  %v8448_v57 = vadd.f32 %v5372_v50, %v2005_v44 }
 0x65c   :  { %v1998_v26 = vpop.f32.mrf.mxu0 }
 0x65d   :  { %v2015_v62 = vadd.f32 %v1998_v26, %v1865_v4  ;;  %v1846_v4 = vadd.f32 %v1845_v56, %v8373_v10  ;;  %v8463_v56 = vadd.f32 %v5372_v50, %v8389_v7  ;;  %v8558_v26 = vld [vmem:[%s10346_s28 + $0x58] sm:$0xff] }
 0x65e   :  { %v6307_v2 = vpop.f32.mrf.mxu0 }
 0x65f   :  { %v8401_v49 = vadd.f32 %v5372_v50, %v2015_v62  ;;  %v1841_v62 = vadd.f32 %v8387_v32, %v8371_v60  ;;  %v2010_v9 = vadd.f32 %v1979_v17, %v1846_v4  ;;  %v2007_v60 = vadd.f32 %v1966_v5, %v8383_v3  ;;  %v8516_v5 = vld [vmem:[%s10346_s28 + $0x28] sm:$0xff]  ;;  %v8537_v17 = vld [vmem:[%s10346_s28 + $0x40] sm:$0xff] }
 0x660   :  { %v8444_v3 = vadd.f32 %v5372_v50, %v2006_v12  ;;  %v8458_v32 = vadd.f32 %v5372_v50, %v8391_v31  ;;  %v8478_v31 = vld [vmem:[%s10346_s28] sm:$0xff] }
 0x661   :  { %6309 = vmatpush3.msra.mxu1 %v8401_v49  ;;  %v2009_v16 = vadd.f32 %v1974_v41, %v1841_v62  ;;  %v8424_v10 = vadd.f32 %v5372_v50, %v2010_v9  ;;  %v8440_v11 = vadd.f32 %v5372_v50, %v2007_v60  ;;  %v8530_v41 = vld [vmem:[%s10346_s28 + $0x38] sm:$0xff] }
 0x662   :  { %6310 = vmatprep.subr.mxu1 %v10344_v37 }
 0x663   :  { %6311 = vmatpush3.msra.mxu1 %v8404_v6  ;;  %v8429_v22 = vadd.f32 %v5372_v50, %v2009_v16 }
 0x664   :  { %6312 = vmatprep.subr.mxu1 %v10344_v37 }
 0x665   :  { %6313 = vmatpush3.msra.mxu1 %v8409_v58 }
 0x666   :  { %6314 = vmatprep.subr.mxu1 %v10344_v37 }
 0x667   :  { %6315 = vmatpush3.msra.mxu1 %v8415_v21 }
 0x668   :  { %6316 = vmatprep.subr.mxu1 %v10344_v37 }
 0x669   :  { %6317 = vmatpush3.msra.mxu1 %v8419_v51 }
 0x66a   :  { %6318 = vmatprep.subr.mxu1 %v10344_v37 }
 0x66b   :  { %6319 = vmatpush3.msra.mxu1 %v8424_v10 }
 0x66c   :  { %6320 = vmatprep.subr.mxu1 %v10344_v37 }
 0x66d   :  { %6321 = vmatpush3.msra.mxu1 %v8429_v22 }
 0x66e   :  { %6322 = vmatprep.subr.mxu1 %v10344_v37 }
 0x66f   :  { %6323 = vmatpush3.msra.mxu1 %v8434_v46 }
 0x670   :  { %6324 = vmatprep.subr.mxu1 %v10344_v37 }
 0x671   :  { %6325 = vmatpush3.msra.mxu1 %v8440_v11 }
 0x672   :  { %6326 = vmatprep.subr.mxu1 %v10344_v37 }
 0x673   :  { %6327 = vmatpush3.msra.mxu1 %v8444_v3 }
 0x674   :  { %6328 = vmatprep.subr.mxu1 %v10344_v37 }
 0x675   :  { %6329 = vmatpush3.msra.mxu1 %v8448_v57 }
 0x676   :  { %6330 = vmatprep.subr.mxu1 %v10344_v37 }
 0x677   :  { %6331 = vmatpush3.msra.mxu1 %v8453_v19 }
 0x678   :  { %6332 = vmatprep.subr.mxu1 %v10344_v37 }
 0x679   :  { %6333 = vmatpush3.msra.mxu1 %v8458_v32 }
 0x67a   :  { %6334 = vmatprep.subr.mxu1 %v10344_v37 }
 0x67b   :  { %6335 = vmatpush3.msra.mxu1 %v8463_v56 }
 0x67c   :  { %6337 = vmatmul.mubr.msk.f32.vlgmr.msra.gmra.mxu1 %vm918_vm5, %v8471_v20 }
 0x67d   :  { %6341 = vmatprep.mubr.msk.f32.mxu1 %vm992_vm6, %v8478_v31 }
 0x73c   :  { %v2106_v7 = vpop.f32.mrf.mxu1 }
 0x73d   :  { %6339 = vmatprep.subr.msk.mxu1 %vm1035_vm7, %v2106_v7 }
 0x73e   :  { %v6338_v15 = vpop.f32.mrf.mxu1  ;;  %6340 = vmatpush3.msk.msra.mxu1 %vm1035_vm7, %v2106_v7 }
 0x73f   :  { %6342 = vmatmul.mubr.msk.f32.vlgmr.msra.gmra.mxu1 %vm992_vm6, %v8487_v23  ;;  %6362 = vmatprep.subr.mxu1 %v10344_v37 }
 0x740   :  { %6344 = vmatprep.mubr.msk.f32.mxu1 %vm992_vm6, %v8495_v14 }
 0x743   :  { %6345 = vmatmul.mubr.msk.f32.gmra.mxu1 %vm992_vm6, %v8502_v8 }
 0x744   :  { %6347 = vmatprep.mubr.msk.f32.mxu1 %vm992_vm6, %v8509_v48 }
 0x747   :  { %6348 = vmatmul.mubr.msk.f32.gmra.mxu1 %vm992_vm6, %v8516_v5 }
 0x748   :  { %6350 = vmatprep.mubr.msk.f32.mxu1 %vm992_vm6, %v8523_v24 }
 0x74b   :  { %6351 = vmatmul.mubr.msk.f32.gmra.mxu1 %vm992_vm6, %v8530_v41 }
 0x74c   :  { %6353 = vmatprep.mubr.msk.f32.mxu1 %vm992_vm6, %v8537_v17 }
 0x74f   :  { %6354 = vmatmul.mubr.msk.f32.gmra.mxu1 %vm992_vm6, %v8544_v54 }
 0x750   :  { %6356 = vmatprep.mubr.msk.f32.mxu1 %vm992_vm6, %v8551_v25 }
 0x753   :  { %6357 = vmatmul.mubr.msk.f32.gmra.mxu1 %vm992_vm6, %v8558_v26 }
 0x754   :  { %6359 = vmatprep.mubr.msk.f32.mxu1 %vm992_vm6, %v8565_v34 }
 0x757   :  { %6360 = vmatmul.mubr.msk.f32.gmra.mxu1 %vm992_vm6, %v7938_v40 }
 0x758   :  { %6390 = vmatprep.mubr.msk.f32.mxu1 %vm7059_vm0, %v10344_v37 }
 0x7ff   :  { %v6343_v50 = vpop.f32.mrf.mxu1 }
 0x801   :  { %v2179_v2 = vpop.f32.mrf.mxu1 }
 0x803   :  { %v6346_v28 = vpop.f32.mrf.mxu1 }
 0x805   :  { %v2189_v36 = vpop.f32.mrf.mxu1 }
 0x807   :  { %v6349_v39 = vpop.f32.mrf.mxu1 }
 0x809   :  { %v2199_v18 = vpop.f32.mrf.mxu1 }
 0x80b   :  { %v6352_v4 = vpop.f32.mrf.mxu1 }
 0x80d   :  { %v2209_v38 = vpop.f32.mrf.mxu1 }
 0x80f   :  { %v6355_v62 = vpop.f32.mrf.mxu1 }
 0x811   :  { %v2219_v9 = vpop.f32.mrf.mxu1 }
 0x813   :  { %v6358_v16 = vpop.f32.mrf.mxu1 }
 0x814   :  { %v8577_v44 = vsub.f32 %v8409_v58, %v6358_v16  ;;  %v8603_v16 = vsub.f32 %v8429_v22, %v6352_v4  ;;  %v8621_v4 = vsub.f32 %v8444_v3, %v2199_v18  ;;  %v8639_v18 = vsub.f32 %v8458_v32, %v6343_v50 }
 0x815   :  { %v2229_v0 = vpop.f32.mrf.mxu1 }
 0x816   :  { %v8585_v1 = vsub.f32 %v8415_v21, %v2229_v0  ;;  %v2273_v58 = vmul.f32 %v8577_v44, %v8577_v44  ;;  %v2269_v22 = vmul.f32 %v8603_v16, %v8603_v16  ;;  %v2266_v3 = vmul.f32 %v8621_v4, %v8621_v4  ;;  %v5392_v0 = vld [vmem:[%s10243_s8 + $0x1] ss:$0 sm:$0xff] }
 0x817   :  { %v6361_v60 = vpop.f32.mrf.mxu1 }
 0x818   :  { %v8574_v12 = vsub.f32 %v8401_v49, %v6361_v60  ;;  %v8591_v49 = vsub.f32 %v8419_v51, %v6355_v62  ;;  %v2272_v21 = vmul.f32 %v8585_v1, %v8585_v1  ;;  %v8615_v62 = vsub.f32 %v8440_v11, %v6349_v39 }
 0x819   :  { %v2239_v40 = vpop.f32.mrf.mxu1  ;;  %v8633_v39 = vsub.f32 %v8453_v19, %v2189_v36  ;;  %v2263_v36 = vmul.f32 %v8639_v18, %v8639_v18 }
 0x81a   :  { %v2275_v7 = vmul.f32 %v8574_v12, %v8574_v12  ;;  %v8582_v15 = vsub.f32 %v8404_v6, %v2239_v40  ;;  %v8597_v6 = vsub.f32 %v8424_v10, %v2219_v9  ;;  %v2271_v51 = vmul.f32 %v8591_v49, %v8591_v49  ;;  %v8697_v40 = vld [vmem:[%s10346_s28 + $0x68] sm:$0xff] }
 0x81b   :  { %v2267_v11 = vmul.f32 %v8615_v62, %v8615_v62  ;;  %v2264_v19 = vmul.f32 %v8633_v39, %v8633_v39 }
 0x81c   :  { %v2274_v53 = vmul.f32 %v8582_v15, %v8582_v15  ;;  %6363 = vmatpush3.msra.mxu1 %v2275_v7  ;;  %v2270_v10 = vmul.f32 %v8597_v6, %v8597_v6  ;;  %v6931_v7 = vld [vmem:[%s10245_s10 + $0x30] sm:$0xff]  }
 0x81d   :  { %6364 = vmatprep.subr.mxu1 %v10344_v37 }
 0x81e   :  { %6365 = vmatpush3.msra.mxu1 %v2274_v53  ;;  %v8609_v53 = vsub.f32 %v8434_v46, %v2209_v38  ;;  %v8627_v38 = vsub.f32 %v8448_v57, %v6346_v28  ;;  %v8645_v28 = vsub.f32 %v8463_v56, %v2179_v2  ;;  %v6930_v56 = vld [vmem:[%s10245_s10 + $0x38] sm:$0xff]  }
 0x81f   :  { %6366 = vmatprep.subr.mxu1 %v10344_v37  ;;  %6417 = vmatpush3.bf16.msra.mxu0 %v6930_v56 }
 0x820   :  { %6367 = vmatpush3.msra.mxu1 %v2273_v58  ;;  %v2268_v46 = vmul.f32 %v8609_v53, %v8609_v53  ;;  %v2265_v57 = vmul.f32 %v8627_v38, %v8627_v38  ;;  %v2262_v32 = vmul.f32 %v8645_v28, %v8645_v28  ;;  %6418 = vmatprep.subr.bf16.mxu0 %v10344_v37  ;;  %v6932_v58 = vld [vmem:[%s10245_s10 + $0x28] sm:$0xff]  }
 0x821   :  { %6368 = vmatprep.subr.mxu1 %v10344_v37 }
 0x822   :  { %6369 = vmatpush3.msra.mxu1 %v2272_v21  ;;  %v6933_v21 = vld [vmem:[%s10245_s10 + $0x20] sm:$0xff]  }
 0x823   :  { %6370 = vmatprep.subr.mxu1 %v10344_v37  ;;  %6419 = vmatpush3.bf16.msra.mxu0 %v6931_v7 }
 0x824   :  { %6371 = vmatpush3.msra.mxu1 %v2271_v51  ;;  %6420 = vmatprep.subr.bf16.mxu0 %v10344_v37  ;;  %v6934_v51 = vld [vmem:[%s10245_s10 + $0x18] sm:$0xff]  }
 0x825   :  { %6372 = vmatprep.subr.mxu1 %v10344_v37 }
 0x826   :  { %6373 = vmatpush3.msra.mxu1 %v2270_v10  ;;  %v6935_v10 = vld [vmem:[%s10245_s10 + $0x10] sm:$0xff]  }
 0x827   :  { %6374 = vmatprep.subr.mxu1 %v10344_v37  ;;  %6421 = vmatpush3.bf16.msra.mxu0 %v6932_v58 }
 0x828   :  { %6375 = vmatpush3.msra.mxu1 %v2269_v22  ;;  %6422 = vmatprep.subr.bf16.mxu0 %v10344_v37  ;;  %v6936_v22 = vld [vmem:[%s10245_s10 + $0x8] sm:$0xff]  }
 0x829   :  { %6376 = vmatprep.subr.mxu1 %v10344_v37 }
 0x82a   :  { %6377 = vmatpush3.msra.mxu1 %v2268_v46  ;;  %v6937_v46 = vld [vmem:[%s10245_s10] sm:$0xff]  }
 0x82b   :  { %6378 = vmatprep.subr.mxu1 %v10344_v37  ;;  %6423 = vmatpush3.bf16.msra.mxu0 %v6933_v21 }
 0x82c   :  { %6379 = vmatpush3.msra.mxu1 %v2267_v11  ;;  %6488 = vmatprep.subr.bf16.mxu0 %v10344_v37  ;;  %v8733_v11 = vld [vmem:[%s10362_s3] sm:$0x7] }
 0x82d   :  { %6380 = vmatprep.subr.mxu1 %v10344_v37 }
 0x82e   :  { %6381 = vmatpush3.msra.mxu1 %v2266_v3  ;;  %v8740_v3 = vld [vmem:[%s10244_s9 + $0x1] ss:$0 sm:$0xff] }
 0x82f   :  { %6382 = vmatprep.subr.mxu1 %v10344_v37 }
 0x830   :  { %6383 = vmatpush3.msra.mxu1 %v2265_v57 }
 0x831   :  { %6384 = vmatprep.subr.mxu1 %v10344_v37 }
 0x832   :  { %6385 = vmatpush3.msra.mxu1 %v2264_v19 }
 0x833   :  { %6386 = vmatprep.subr.mxu1 %v10344_v37 }
 0x834   :  { %6387 = vmatpush3.msra.mxu1 %v2263_v36 }
 0x835   :  { %6388 = vmatprep.subr.mxu1 %v10344_v37 }
 0x836   :  { %6389 = vmatpush3.msra.mxu1 %v2262_v32 }
 0x837   :  { %6391 = vmatmul.mubr.msk.f32.vlgmr.msra.gmra.mxu1 %vm918_vm5, %v8471_v20 }
 0x838   :  { %6395 = vmatprep.mubr.msk.f32.mxu1 %vm992_vm6, %v8478_v31 }
 0x8f7   :  { %v2342_v50 = vpop.f32.mrf.mxu1 }
 0x8f8   :  { %v2343_v2 = vadd.f32 1e-05, %v2342_v50 }
 0x8f9   :  { %v6392_v9 = vpop.f32.mrf.mxu1 }
 0x8fa   :  { %6954 = vrsqrt.f32 %v2343_v2 }
 0x907   :  { %v6955_v60 = vpop.eup %6954 }
 0x908   :  { %v2353_v20 = vmul.f32 %v6955_v60, %v5392_v0 }
 0x90a   :  { %6393 = vmatprep.subr.msk.mxu1 %vm1035_vm7, %v2353_v20 }
 0x90b   :  { %6394 = vmatpush3.msk.msra.mxu1 %vm1035_vm7, %v2353_v20 }
 0x90c   :  { %6396 = vmatmul.mubr.msk.f32.vlgmr.msra.gmra.mxu1 %vm992_vm6, %v8487_v23  ;;  %6452 = vmatprep.subr.bf16.mxu1 %v10344_v37 }
 0x90d   :  { %6398 = vmatprep.mubr.msk.f32.mxu1 %vm992_vm6, %v8495_v14  ;;  %6453 = vmatpush3.bf16.msra.mxu1 %v6934_v51 }
 0x90e   :  { %6454 = vmatprep.subr.bf16.mxu1 %v10344_v37 }
 0x910   :  { %6399 = vmatmul.mubr.msk.f32.gmra.mxu1 %vm992_vm6, %v8502_v8 }
 0x911   :  { %6401 = vmatprep.mubr.msk.f32.mxu1 %vm992_vm6, %v8509_v48  ;;  %6455 = vmatpush3.bf16.msra.mxu1 %v6935_v10 }
 0x912   :  { %6456 = vmatprep.subr.bf16.mxu1 %v10344_v37 }
 0x914   :  { %6402 = vmatmul.mubr.msk.f32.gmra.mxu1 %vm992_vm6, %v8516_v5 }
 0x915   :  { %6404 = vmatprep.mubr.msk.f32.mxu1 %vm992_vm6, %v8523_v24  ;;  %6457 = vmatpush3.bf16.msra.mxu1 %v6936_v22 }
 0x916   :  { %6458 = vmatprep.subr.bf16.mxu1 %v10344_v37 }
 0x918   :  { %6405 = vmatmul.mubr.msk.f32.gmra.mxu1 %vm992_vm6, %v8530_v41 }
 0x919   :  { %6407 = vmatprep.mubr.msk.f32.mxu1 %vm992_vm6, %v8537_v17  ;;  %6459 = vmatpush3.bf16.msra.mxu1 %v6937_v46 }
 0x91a   :  { %6524 = vmatprep.subr.msk.mxu1 %vm1035_vm7, %v8733_v11 }
 0x91c   :  { %6408 = vmatmul.mubr.msk.f32.gmra.mxu1 %vm992_vm6, %v8544_v54 }
 0x91d   :  { %6410 = vmatprep.mubr.msk.f32.mxu1 %vm992_vm6, %v8551_v25 }
 0x920   :  { %6411 = vmatmul.mubr.msk.f32.gmra.mxu1 %vm992_vm6, %v8558_v26 }
 0x921   :  { %6413 = vmatprep.mubr.msk.f32.mxu1 %vm992_vm6, %v8565_v34 }
 0x924   :  { %6414 = vmatmul.mubr.msk.f32.gmra.mxu1 %vm992_vm6, %v8697_v40 }
 0x925   :  { %6460 = vmatprep.mubr.msk.bf16.mxu1 %vm7059_vm0, %v10344_v37 }
 0x9cc   :  { %v6397_v57 = vpop.f32.mrf.mxu1 }
 0x9cd   :  { %v2493_v19 = vmul.f32 %v6397_v57, %v8639_v18  ;;  %v6938_v18 = vld [vmem:[%s10245_s10 + $0x58] sm:$0xff]  }
 0x9ce   :  { %v2423_v36 = vpop.f32.mrf.mxu1 }
 0x9cf   :  { %v2513_v32 = vadd.f32 %v8740_v3, %v2493_v19  ;;  %v2492_v56 = vmul.f32 %v2423_v36, %v8645_v28 }
 0x9d0   :  { %v6400_v50 = vpop.f32.mrf.mxu1 }
 0x9d1   :  { %v2512_v2 = vadd.f32 %v8740_v3, %v2492_v56  ;;  %v8746_v0 = vmax.f32 %v2513_v32, 0.0  ;;  %v2495_v20 = vmul.f32 %v6400_v50, %v8627_v38  ;;  %v6940_v56 = vld [vmem:[%s10245_s10 + $0x48] sm:$0xff]  }
 0x9d2   :  { %v2433_v9 = vpop.f32.mrf.mxu1 }
 0x9d3   :  { %v8748_v60 = vmax.f32 %v2512_v2, 0.0  ;;  %v2494_v7 = vmul.f32 %v2433_v9, %v8633_v39  ;;  %v2515_v10 = vadd.f32 %v8740_v3, %v2495_v20  ;;  %v6939_v39 = vld [vmem:[%s10245_s10 + $0x50] sm:$0xff]   ;;  %v6941_v20 = vld [vmem:[%s10245_s10 + $0x40] sm:$0xff]  }
 0x9d4   :  { %v6403_v58 = vpop.f32.mrf.mxu1 }
 0x9d5   :  { %v8757_v28 = vpack.c.bf16 %v8746_v0, %v8748_v60  ;;  %v2514_v21 = vadd.f32 %v8740_v3, %v2494_v7  ;;  %v8772_v19 = vmax.f32 %v2515_v10, 0.0  ;;  %v2497_v36 = vmul.f32 %v6403_v58, %v8615_v62 }
 0x9d6   :  { %v2443_v51 = vpop.f32.mrf.mxu1 }
 0x9d7   :  { %6425 = vmatmul.mubr.msk.bf16.vlgmr.msra.gmra.mxu0 %vm503_vm2, %v8757_v28  ;;  %v8768_v22 = vmax.f32 %v2514_v21, 0.0  ;;  %v2496_v46 = vmul.f32 %v2443_v51, %v8621_v4  ;;  %v2517_v9 = vadd.f32 %v8740_v3, %v2497_v36 }
 0x9d8   :  { %v6406_v38 = vpop.f32.mrf.mxu1  ;;  %6428 = vmatprep.mubr.msk.bf16.mxu0 %vm7059_vm0, %v10344_v37  ;;  %6489 = vmatpush3.bf16.msra.mxu0 %v6938_v18 }
 0x9d9   :  { %6490 = vmatprep.subr.bf16.mxu0 %v10344_v37  ;;  %v8780_v50 = vpack.c.bf16 %v8772_v19, %v8768_v22  ;;  %v2516_v2 = vadd.f32 %v8740_v3, %v2496_v46  ;;  %v8796_v21 = vmax.f32 %v2517_v9, 0.0  ;;  %v2499_v51 = vmul.f32 %v6406_v38, %v8603_v16 }
 0x9da   :  { %v2453_v57 = vpop.f32.mrf.mxu1  ;;  %v2567_v9 = vrot.slane %v8748_v60, 7 }
 0x9db   :  { %v8792_v7 = vmax.f32 %v2516_v2, 0.0  ;;  %v2498_v58 = vmul.f32 %v2453_v57, %v8609_v53  ;;  %v2519_v36 = vadd.f32 %v8740_v3, %v2499_v51  ;;  %v2568_v51 = vrot.slane %v8746_v0, 7 }
 0x9dc   :  { %v6409_v32 = vpop.f32.mrf.mxu1  ;;  %6491 = vmatpush3.bf16.msra.mxu0 %v6939_v39 }
 0x9dd   :  { %6492 = vmatprep.subr.bf16.mxu0 %v10344_v37  ;;  %v8801_v10 = vpack.c.bf16 %v8796_v21, %v8792_v7  ;;  %v2518_v39 = vadd.f32 %v8740_v3, %v2498_v58  ;;  %v2501_v2 = vmul.f32 %v6409_v32, %v8591_v49  ;;  %v2593_v49 = vsel %vm246_vm3, %v2567_v9, %v2568_v51 }
 0x9de   :  { %v2463_v4 = vpop.f32.mrf.mxu1 }
 0x9df   :  { %6429 = vmatmul.mubr.msk.bf16.gmra.mxu0 %vm503_vm2, %v8780_v50  ;;  %v8811_v16 = vmax.f32 %v2518_v39, 0.0  ;;  %v2500_v38 = vmul.f32 %v2463_v4, %v8597_v6  ;;  %v2521_v6 = vadd.f32 %v8740_v3, %v2501_v2 }
 0x9e0   :  { %v6412_v62 = vpop.f32.mrf.mxu1  ;;  %6432 = vmatprep.mubr.msk.bf16.mxu0 %vm7059_vm0, %v10344_v37  ;;  %6493 = vmatpush3.bf16.msra.mxu0 %v6940_v56  ;;  %v8815_v56 = vmax.f32 %v2519_v36, 0.0 }
 0x9e1   :  { %6494 = vmatprep.subr.bf16.mxu0 %v10344_v37 }
 0x9e2   :  { %v2473_v18 = vpop.f32.mrf.mxu1 }
 0x9e3   :  { %v2502_v39 = vmul.f32 %v2473_v18, %v8585_v1 }
 0x9e4   :  { %6495 = vmatpush3.bf16.msra.mxu0 %v6941_v20  ;;  %v6415_v46 = vpop.f32.mrf.mxu1  ;;  %v8821_v20 = vpack.c.bf16 %v8815_v56, %v8811_v16 }
 0x9e5   :  { %6583 = vmatprep.subr.mxu0 %v10344_v37  ;;  %v2505_v53 = vmul.f32 %v6415_v46, %v8574_v12  ;;  %v2520_v12 = vadd.f32 %v8740_v3, %v2500_v38  ;;  %v2569_v46 = vrot.slane %v8768_v22, 7  ;;  %v8844_v38 = vmax.f32 %v2521_v6, 0.0 }
 0x9e6   :  { %10363 = vst [vmem:[#allocation23_spill] sm:$0xff] %v8821_v20  ;;  %v2522_v18 = vadd.f32 %v8740_v3, %v2502_v39 }
 0x9e7   :  { %6433 = vmatmul.mubr.msk.bf16.gmra.mxu0 %vm503_vm2, %v8801_v10  ;;  %v2525_v57 = vadd.f32 %v8740_v3, %v2505_v53  ;;  %v8835_v4 = vmax.f32 %v2520_v12, 0.0  ;;  %v2596_v53 = vmul.f32 %v2593_v49, %v7486_v33  ;;  %v2570_v12 = vrot.slane %v8772_v19, 7  ;;  %v2483_v49 = vpop.f32.mrf.mxu1 }
 0x9e8   :  { %6436 = vmatprep.mubr.msk.bf16.mxu0 %vm7059_vm0, %v10344_v37  ;;  %v2592_v6 = vsel %vm246_vm3, %v2568_v51, %v2569_v46  ;;  %v2504_v51 = vmul.f32 %v2483_v49, %v8582_v15  ;;  %v2618_v49 = vrot.slane %v8768_v22, 1 }
 0x9e9   :  { %v8824_v58 = vmax.f32 %v2525_v57, 0.0  ;;  %v2503_v57 = vmul.f32 %v6412_v62, %v8577_v44  ;;  %v8851_v1 = vpack.c.bf16 %v8844_v38, %v8835_v4  ;;  %v2597_v62 = vmul.f32 %v2592_v6, %v7520_v45 }
 0x9eb   :  { %v10299_v32 = vrot.slane %v8824_v58, 7  ;;  %v2523_v44 = vadd.f32 %v8740_v3, %v2503_v57 }
 0x9ed   :  { %v2594_v36 = vsel %vm246_vm3, %v10299_v32, %v2567_v9  ;;  %v2591_v9 = vsel %vm246_vm3, %v2569_v46, %v2570_v12  ;;  %v8875_v46 = vmax.f32 %v2523_v44, 0.0  ;;  %v2617_v44 = vrot.slane %v8746_v0, 1 }
 0x9ee   :  { %v2595_v2 = vmul.f32 %v2594_v36, %v7492_v35  ;;  %v2598_v39 = vmul.f32 %v2591_v9, %v7524_v47  ;;  %v8868_v36 = vmax.f32 %v2522_v18, 0.0 }
 0x9ef   :  { %6437 = vmatmul.mubr.msk.bf16.gmra.mxu0 %vm503_vm2, %v8821_v20 }
 0x9f0   :  { %6440 = vmatprep.mubr.msk.bf16.mxu0 %vm7059_vm0, %v10344_v37  ;;  %v2609_v20 = vpack.c.bf16 %v2596_v53, %v2595_v2  ;;  %v2572_v53 = vrot.slane %v8796_v21, 7  ;;  %v8880_v57 = vpack.c.bf16 %v8875_v46, %v8868_v36  ;;  %v2524_v2 = vadd.f32 %v8740_v3, %v2504_v51 }
 0x9f1   :  { %v2610_v18 = vpack.c.bf16 %v2598_v39, %v2597_v62  ;;  %v10298_v62 = vrot.slane %v8748_v60, 1  ;;  %v2574_v39 = vrot.slane %v8815_v56, 7 }
 0x9f2   :  { %6461 = vmatmul.mubr.msk.bf16.vlgmr.msra.gmra.mxu1 %vm503_vm2, %v2609_v20  ;;  %v2571_v20 = vrot.slane %v8792_v7, 7  ;;  %v8894_v9 = vmax.f32 %v2524_v2, 0.0  ;;  %v2641_v2 = vsel %vm366_vm4, %v2617_v44, %v2618_v49 }
 0x9f3   :  { %6464 = vmatprep.mubr.msk.bf16.mxu1 %vm7059_vm0, %v10344_v37  ;;  %6525 = vmatpush3.msk.msra.mxu1 %vm1035_vm7, %v8733_v11  ;;  %v2642_v0 = vsel %vm366_vm4, %v10298_v62, %v2617_v44  ;;  %v2619_v44 = vrot.slane %v8772_v19, 1 }
 0x9f4   :  { %6547 = vmatprep.subr.bf16.mxu1 %v10344_v37  ;;  %v2589_v15 = vsel %vm246_vm3, %v2571_v20, %v2572_v53  ;;  %v2590_v11 = vsel %vm246_vm3, %v2570_v12, %v2571_v20  ;;  %v2573_v12 = vrot.slane %v8811_v16, 7  ;;  %v8905_v51 = vpack.c.bf16 %v8824_v58, %v8894_v9 }
 0x9f5   :  { %v2599_v3 = vmul.f32 %v2590_v11, %v7549_v59  ;;  %v2600_v6 = vmul.f32 %v2589_v15, %v7553_v61  ;;  %v2645_v15 = vmul.f32 %v2641_v2, %v7507_v43  ;;  %v2640_v19 = vsel %vm366_vm4, %v2618_v49, %v2619_v44 }
 0x9f6   :  { %v2588_v22 = vsel %vm246_vm3, %v2572_v53, %v2573_v12  ;;  %v2621_v49 = vrot.slane %v8796_v21, 1 }
 0x9f7   :  { %6441 = vmatmul.mubr.msk.bf16.gmra.mxu0 %vm503_vm2, %v8851_v1  ;;  %v2611_v20 = vpack.c.bf16 %v2600_v6, %v2599_v3  ;;  %v2601_v53 = vmul.f32 %v2588_v22, %v7588_v27  ;;  %v2620_v3 = vrot.slane %v8792_v7, 1  ;;  %v2575_v6 = vrot.slane %v8835_v4, 7 }
 0x9f8   :  { %6444 = vmatprep.mubr.msk.bf16.mxu0 %vm7059_vm0, %v10344_v37 }
 0x9f9   :  { %v2639_v61 = vsel %vm366_vm4, %v2619_v44, %v2620_v3  ;;  %v2638_v21 = vsel %vm366_vm4, %v2620_v3, %v2621_v49  ;;  %v2623_v3 = vrot.slane %v8815_v56, 1 }
 0x9fa   :  { %6465 = vmatmul.mubr.msk.bf16.gmra.mxu1 %vm503_vm2, %v2610_v18  ;;  %v2587_v18 = vsel %vm246_vm3, %v2573_v12, %v2574_v39  ;;  %v2644_v12 = vmul.f32 %v2642_v0, %v7505_v42  ;;  %v2647_v0 = vmul.f32 %v2639_v61, %v7539_v55 }
 0x9fb   :  { %6468 = vmatprep.mubr.msk.bf16.mxu1 %vm7059_vm0, %v10344_v37  ;;  %v2602_v11 = vmul.f32 %v2587_v18, %v7592_v30  ;;  %v2586_v18 = vsel %vm246_vm3, %v2574_v39, %v2575_v6  ;;  %v2622_v39 = vrot.slane %v8811_v16, 1  ;;  %v10364_v16 = vld [vmem:[#allocation10_spill] sm:$0xff] }
 0x9fc   :  { %v2658_v62 = vpack.c.bf16 %v2645_v15, %v2644_v12  ;;  %v2603_v7 = vmul.f32 %v2586_v18, %v7618_v13  ;;  %v2578_v15 = vrot.slane %v8875_v46, 7 }
 0x9fd   :  { %v2612_v32 = vpack.c.bf16 %v2602_v11, %v2601_v53  ;;  %v2636_v56 = vsel %vm366_vm4, %v2622_v39, %v2623_v3 }
 0x9ff   :  { %6445 = vmatmul.mubr.msk.bf16.gmra.mxu0 %vm503_vm2, %v8880_v57 }
 0xa00   :  { %6448 = vmatprep.mubr.msk.bf16.mxu0 %vm7059_vm0, %v10344_v37 }
 0xa02   :  { %6469 = vmatmul.mubr.msk.bf16.gmra.mxu1 %vm503_vm2, %v2611_v20  ;;  %v2576_v20 = vrot.slane %v8844_v38, 7 }
 0xa03   :  { %6472 = vmatprep.mubr.msk.bf16.mxu1 %vm7059_vm0, %v10344_v37 }
 0xa04   :  { %v2585_v2 = vsel %vm246_vm3, %v2575_v6, %v2576_v20  ;;  %v2637_v6 = vsel %vm366_vm4, %v2621_v49, %v2622_v39 }
 0xa05   :  { %v2604_v22 = vmul.f32 %v2585_v2, %v7622_v52  ;;  %v2649_v44 = vmul.f32 %v2637_v6, %v10364_v16  ;;  %v10365_v2 = vld [vmem:[#allocation15_spill] sm:$0xff] }
 0xa07   :  { %6449 = vmatmul.mubr.msk.bf16.gmra.mxu0 %vm503_vm2, %v8905_v51  ;;  %v2613_v53 = vpack.c.bf16 %v2604_v22, %v2603_v7  ;;  %v2579_v22 = vrot.slane %v8894_v9, 7 }
 0xa08   :  { %6496 = vmatprep.mubr.msk.bf16.mxu0 %vm7059_vm0, %v10344_v37 }
 0xa0a   :  { %6473 = vmatmul.mubr.msk.bf16.gmra.mxu1 %vm503_vm2, %v2612_v32  ;;  %v2577_v32 = vrot.slane %v8868_v36, 7 }
 0xa0b   :  { %6476 = vmatprep.mubr.msk.bf16.mxu1 %vm7059_vm0, %v10344_v37 }
 0xa0c   :  { %v2583_v12 = vsel %vm246_vm3, %v2577_v32, %v2578_v15  ;;  %v2584_v61 = vsel %vm246_vm3, %v2576_v20, %v2577_v32  ;;  %v2624_v20 = vrot.slane %v8835_v4, 1  ;;  %v10369_v4 = vld [vmem:[#allocation19_spill] sm:$0xff] }
 0xa0d   :  { %v2605_v18 = vmul.f32 %v2584_v61, %v10365_v2 }
 0xa0f   :  { %6497 = vmatmul.mubr.msk.bf16.vlgmr.msra.gmra.mxu0 %vm503_vm2, %v2658_v62  ;;  %v2646_v62 = vmul.f32 %v2640_v19, %v10347_v63  ;;  %v10366_v19 = vld [vmem:[#allocation16_spill] sm:$0xff] }
 0xa10   :  { %6500 = vmatprep.mubr.msk.bf16.mxu0 %vm7059_vm0, %v10344_v37  ;;  %v2606_v7 = vmul.f32 %v2583_v12, %v10366_v19  ;;  %v2582_v12 = vsel %vm246_vm3, %v2578_v15, %v2579_v22  ;;  %v2626_v15 = vrot.slane %v8868_v36, 1  ;;  %v10373_v36 = vld [vmem:[#allocation14_spill] sm:$0xff] }
 0xa11   :  { %v2659_v11 = vpack.c.bf16 %v2647_v0, %v2646_v62  ;;  %v10367_v0 = vld [vmem:[#allocation9_spill] sm:$0xff]  ;;  %v2607_v61 = vmul.f32 %v2582_v12, %v10369_v4 }
 0xa12   :  { %6477 = vmatmul.mubr.msk.bf16.gmra.mxu1 %vm503_vm2, %v2613_v53  ;;  %v2648_v32 = vmul.f32 %v2638_v21, %v10367_v0  ;;  %v2614_v62 = vpack.c.bf16 %v2606_v7, %v2605_v18  ;;  %v2635_v53 = vsel %vm366_vm4, %v2623_v3, %v2624_v20  ;;  %v10370_v21 = vld [vmem:[#allocation20_spill] sm:$0xff] }
 0xa13   :  { %6480 = vmatprep.mubr.msk.bf16.mxu1 %vm7059_vm0, %v10344_v37  ;;  %v10371_v18 = vld [vmem:[#allocation12_spill] sm:$0xff] }
 0xa14   :  { %v2660_v49 = vpack.c.bf16 %v2649_v44, %v2648_v32  ;;  %v2651_v7 = vmul.f32 %v2635_v53, %v10371_v18  ;;  %v2628_v53 = vrot.slane %v8894_v9, 1 }
 0xa17   :  { %6501 = vmatmul.mubr.msk.bf16.gmra.mxu0 %vm503_vm2, %v2659_v11  ;;  %v10368_v11 = vrot.slane %v8824_v58, 7 }
 0xa18   :  { %6504 = vmatprep.mubr.msk.bf16.mxu0 %vm7059_vm0, %v10344_v37 }
 0xa19   :  { %v2581_v6 = vsel %vm246_vm3, %v2579_v22, %v10368_v11  ;;  %v10372_v22 = vld [vmem:[#allocation11_spill] sm:$0xff] }
 0xa1a   :  { %6481 = vmatmul.mubr.msk.bf16.gmra.mxu1 %vm503_vm2, %v2614_v62  ;;  %v2608_v44 = vmul.f32 %v2581_v6, %v10370_v21  ;;  %v2650_v32 = vmul.f32 %v2636_v56, %v10372_v22  ;;  %v2625_v62 = vrot.slane %v8844_v38, 1  ;;  %v10374_v6 = vld [vmem:[#allocation13_spill] sm:$0xff]  ;;  %v2627_v56 = vrot.slane %v8875_v46, 1  ;;  %v10375_v46 = vld [vmem:[#allocation18_spill] sm:$0xff] }
 0xa1b   :  { %6484 = vmatprep.mubr.msk.bf16.mxu1 %vm7059_vm0, %v10344_v37 }
 0xa1c   :  { %v2661_v39 = vpack.c.bf16 %v2651_v7, %v2650_v32  ;;  %v2633_v3 = vsel %vm366_vm4, %v2625_v62, %v2626_v15  ;;  %v2634_v11 = vsel %vm366_vm4, %v2624_v20, %v2625_v62  ;;  %v2631_v20 = vsel %vm366_vm4, %v2627_v56, %v2628_v53  ;;  %v6943_v7 = vld [vmem:[%s10247_s12 + $0x10] sm:$0xff]   ;;  %v6944_v62 = vld [vmem:[%s10247_s12 + $0x8] sm:$0xff]  }
 0xa1d   :  { %v2653_v38 = vmul.f32 %v2633_v3, %v10373_v36  ;;  %v2652_v12 = vmul.f32 %v2634_v11, %v10374_v6  ;;  %v2655_v9 = vmul.f32 %v2631_v20, %v10375_v46  ;;  %v10379_v3 = vld [vmem:[#allocation22_spill] sm:$0xff] }
 0xa1f   :  { %6505 = vmatmul.mubr.msk.bf16.gmra.mxu0 %vm503_vm2, %v2660_v49  ;;  %v2615_v49 = vpack.c.bf16 %v2608_v44, %v2607_v61  ;;  %v2662_v61 = vpack.c.bf16 %v2653_v38, %v2652_v12  ;;  %v6942_v44 = vld [vmem:[%s10247_s12 + $0x18] sm:$0xff]  }
 0xa20   :  { %6508 = vmatprep.mubr.msk.bf16.mxu0 %vm7059_vm0, %v10344_v37 }
 0xa22   :  { %6485 = vmatmul.mubr.msk.bf16.gmra.mxu1 %vm503_vm2, %v2615_v49 }
 0xa23   :  { %6526 = vmatprep.mubr.msk.f32.mxu1 %vm992_vm6, %v8478_v31  ;;  %v2632_v31 = vsel %vm366_vm4, %v2626_v15, %v2627_v56  ;;  %v2629_v15 = vrot.slane %v8824_v58, 1  ;;  %v10378_v58 = vld [vmem:[#allocation21_spill] sm:$0xff] }
 0xa25   :  { %v2630_v49 = vsel %vm366_vm4, %v2628_v53, %v2629_v15 }
 0xa27   :  { %6509 = vmatmul.mubr.msk.bf16.gmra.mxu0 %vm503_vm2, %v2661_v39  ;;  %v2656_v39 = vmul.f32 %v2630_v49, %v10378_v58 }
 0xa28   :  { %6512 = vmatprep.mubr.msk.bf16.mxu0 %vm7059_vm0, %v10344_v37 }
 0xa2a   :  { %6527 = vmatmul.mubr.msk.f32.vlgmr.msra.gmra.mxu1 %vm992_vm6, %v8487_v23  ;;  %v10376_v23 = vld [vmem:[#allocation17_spill] sm:$0xff] }
 0xa2b   :  { %6529 = vmatprep.mubr.msk.f32.mxu1 %vm992_vm6, %v8495_v14  ;;  %6548 = vmatpush3.bf16.msra.mxu1 %v6942_v44  ;;  %v2654_v32 = vmul.f32 %v2632_v31, %v10376_v23 }
 0xa2c   :  { %6549 = vmatprep.subr.bf16.mxu1 %v10344_v37 }
 0xa2d   :  { %v2663_v14 = vpack.c.bf16 %v2655_v9, %v2654_v32 }
 0xa2e   :  { %6530 = vmatmul.mubr.msk.f32.gmra.mxu1 %vm992_vm6, %v8502_v8  ;;  %v10377_v8 = vrot.slane %v8748_v60, 1 }
 0xa2f   :  { %6513 = vmatmul.mubr.msk.bf16.gmra.mxu0 %vm503_vm2, %v2662_v61  ;;  %6532 = vmatprep.mubr.msk.f32.mxu1 %vm992_vm6, %v8509_v48 }
 0xa30   :  { %6516 = vmatprep.mubr.msk.bf16.mxu0 %vm7059_vm0, %v10344_v37  ;;  %6550 = vmatpush3.bf16.msra.mxu1 %v6943_v7  ;;  %v2643_v48 = vsel %vm366_vm4, %v2629_v15, %v10377_v8 }
 0xa31   :  { %6551 = vmatprep.subr.bf16.mxu1 %v10344_v37  ;;  %v2657_v60 = vmul.f32 %v2643_v48, %v10379_v3 }
 0xa32   :  { %6533 = vmatmul.mubr.msk.f32.gmra.mxu1 %vm992_vm6, %v8516_v5  ;;  %v6945_v5 = vld [vmem:[%s10247_s12] sm:$0xff]  }
 0xa33   :  { %6535 = vmatprep.mubr.msk.f32.mxu1 %vm992_vm6, %v8523_v24  ;;  %v2664_v24 = vpack.c.bf16 %v2657_v60, %v2656_v39 }
 0xa34   :  { %6552 = vmatpush3.bf16.msra.mxu1 %v6944_v62 }
 0xa35   :  { %6553 = vmatprep.subr.bf16.mxu1 %v10344_v37 }
 0xa36   :  { %6536 = vmatmul.mubr.msk.f32.gmra.mxu1 %vm992_vm6, %v8530_v41  ;;  %v10380_v41 = vld [vmem:[#allocation23_spill] sm:$0xff] }
 0xa37   :  { %6517 = vmatmul.mubr.msk.bf16.gmra.mxu0 %vm503_vm2, %v2663_v14  ;;  %6538 = vmatprep.mubr.msk.f32.mxu1 %vm992_vm6, %v8537_v17 }
 0xa38   :  { %6520 = vmatprep.mubr.msk.bf16.mxu0 %vm7059_vm0, %v10344_v37  ;;  %6554 = vmatpush3.bf16.msra.mxu1 %v6945_v5 }
 0xa3a   :  { %6539 = vmatmul.mubr.msk.f32.gmra.mxu1 %vm992_vm6, %v8544_v54 }
 0xa3b   :  { %6541 = vmatprep.mubr.msk.f32.mxu1 %vm992_vm6, %v8551_v25 }
 0xa3e   :  { %6542 = vmatmul.mubr.msk.f32.gmra.mxu1 %vm992_vm6, %v8558_v26 }
 0xa3f   :  { %6521 = vmatmul.mubr.msk.bf16.gmra.mxu0 %vm503_vm2, %v2664_v24  ;;  %6544 = vmatprep.mubr.msk.f32.mxu1 %vm992_vm6, %v8565_v34 }
 0xa40   :  { %6611 = vmatprep.mubr.msk.f32.mxu0 %vm7059_vm0, %v10344_v37 }
 0xa42   :  { %6545 = vmatmul.mubr.msk.f32.gmra.mxu1 %vm992_vm6, %v8697_v40 }
 0xa43   :  { %6555 = vmatprep.mubr.msk.bf16.mxu1 %vm7059_vm0, %v10344_v37 }
 0xa46   :  { %6556 = vmatmul.mubr.msk.bf16.vlgmr.msra.gmra.mxu1 %vm503_vm2, %v8757_v28 }
 0xa47   :  { %6559 = vmatprep.mubr.msk.bf16.mxu1 %vm7059_vm0, %v10344_v37 }
 0xa4e   :  { %6560 = vmatmul.mubr.msk.bf16.gmra.mxu1 %vm503_vm2, %v8780_v50 }
 0xa4f   :  { %6563 = vmatprep.mubr.msk.bf16.mxu1 %vm7059_vm0, %v10344_v37 }
 0xa56   :  { %6564 = vmatmul.mubr.msk.bf16.gmra.mxu1 %vm503_vm2, %v8801_v10 }
 0xa57   :  { %6567 = vmatprep.mubr.msk.bf16.mxu1 %vm7059_vm0, %v10344_v37 }
 0xa5e   :  { %6568 = vmatmul.mubr.msk.bf16.gmra.mxu1 %vm503_vm2, %v10380_v41 }
 0xa5f   :  { %6571 = vmatprep.mubr.msk.bf16.mxu1 %vm7059_vm0, %v10344_v37 }
 0xa66   :  { %6572 = vmatmul.mubr.msk.bf16.gmra.mxu1 %vm503_vm2, %v8851_v1 }
 0xa67   :  { %6575 = vmatprep.mubr.msk.bf16.mxu1 %vm7059_vm0, %v10344_v37 }
 0xa6e   :  { %6576 = vmatmul.mubr.msk.bf16.gmra.mxu1 %vm503_vm2, %v8880_v57 }
 0xa6f   :  { %6579 = vmatprep.mubr.msk.bf16.mxu1 %vm7059_vm0, %v10344_v37 }
 0xa76   :  { %6580 = vmatmul.mubr.msk.bf16.gmra.mxu1 %vm503_vm2, %v8905_v51 }
 0xa77   :  { %6682 = vmatprep.mubr.msk.f32.mxu1 %vm992_vm6, %v8537_v17 }
 0xa97   :  { %v2751_v54 = vpop.f32.mrf.mxu0 }
 0xa99   :  { %v6426_v25 = vpop.f32.mrf.mxu0 }
 0xa9b   :  { %v2754_v26 = vpop.f32.mrf.mxu0 }
 0xa9d   :  { %v6427_v34 = vpop.f32.mrf.mxu0 }
 0xa9f   :  { %v2759_v40 = vpop.f32.mrf.mxu0 }
 0xaa1   :  { %v6430_v28 = vpop.f32.mrf.mxu0 }
 0xaa3   :  { %v2762_v50 = vpop.f32.mrf.mxu0 }
 0xaa5   :  { %v6431_v10 = vpop.f32.mrf.mxu0 }
 0xaa7   :  { %v2767_v1 = vpop.f32.mrf.mxu0 }
 0xaa9   :  { %v6434_v11 = vpop.f32.mrf.mxu0 }
 0xaab   :  { %v2770_v57 = vpop.f32.mrf.mxu0 }
 0xaad   :  { %v6435_v38 = vpop.f32.mrf.mxu0 }
 0xaaf   :  { %v2775_v53 = vpop.f32.mrf.mxu0 }
 0xab1   :  { %v6438_v12 = vpop.f32.mrf.mxu0 }
 0xab2   :  { %v2885_v51 = vpop.f32.mrf.mxu1 }
 0xab3   :  { %v2778_v56 = vpop.f32.mrf.mxu0  ;;  %v2886_v20 = vadd.f32 %v2885_v51, %v2751_v54 }
 0xab4   :  { %v6462_v17 = vpop.f32.mrf.mxu1 }
 0xab5   :  { %v6439_v61 = vpop.f32.mrf.mxu0 }
 0xab6   :  { %v2888_v9 = vpop.f32.mrf.mxu1 }
 0xab7   :  { %v2783_v44 = vpop.f32.mrf.mxu0  ;;  %v2889_v32 = vadd.f32 %v2888_v9, %v2754_v26 }
 0xab8   :  { %v6463_v15 = vpop.f32.mrf.mxu1 }
 0xab9   :  { %v6442_v31 = vpop.f32.mrf.mxu0 }
 0xaba   :  { %v2893_v62 = vpop.f32.mrf.mxu1 }
 0xabb   :  { %v2786_v7 = vpop.f32.mrf.mxu0  ;;  %v2894_v8 = vadd.f32 %v2893_v62, %v2759_v40 }
 0xabc   :  { %v6466_v48 = vpop.f32.mrf.mxu1 }
 0xabd   :  { %v6443_v14 = vpop.f32.mrf.mxu0 }
 0xabe   :  { %v2896_v5 = vpop.f32.mrf.mxu1 }
 0xabf   :  { %v2791_v49 = vpop.f32.mrf.mxu0  ;;  %v2897_v24 = vadd.f32 %v2896_v5, %v2762_v50 }
 0xac0   :  { %v6467_v41 = vpop.f32.mrf.mxu1 }
 0xac1   :  { %v6446_v39 = vpop.f32.mrf.mxu0 }
 0xac2   :  { %v2901_v34 = vpop.f32.mrf.mxu1 }
 0xac3   :  { %v2794_v60 = vpop.f32.mrf.mxu0  ;;  %v2902_v54 = vadd.f32 %v2901_v34, %v2767_v1 }
 0xac4   :  { %v6470_v10 = vpop.f32.mrf.mxu1 }
 0xac5   :  { %v6447_v25 = vpop.f32.mrf.mxu0 }
 0xac6   :  { %v2904_v38 = vpop.f32.mrf.mxu1 }
 0xac7   :  { %v2799_v28 = vpop.f32.mrf.mxu0  ;;  %v2905_v26 = vadd.f32 %v2904_v38, %v2770_v57 }
 0xac8   :  { %v6471_v61 = vpop.f32.mrf.mxu1 }
 0xac9   :  { %v6450_v11 = vpop.f32.mrf.mxu0 }
 0xaca   :  { %v2909_v17 = vpop.f32.mrf.mxu1 }
 0xacb   :  { %v2802_v12 = vpop.f32.mrf.mxu0  ;;  %v2910_v40 = vadd.f32 %v2909_v17, %v2775_v53 }
 0xacc   :  { %v6474_v15 = vpop.f32.mrf.mxu1 }
 0xacd   :  { %v6451_v51 = vpop.f32.mrf.mxu0 }
 0xace   :  { %v2912_v50 = vpop.f32.mrf.mxu1 }
 0xacf   :  { %v3019_v31 = vpop.f32.mrf.mxu0  ;;  %v2913_v48 = vadd.f32 %v2912_v50, %v2778_v56 }
 0xad0   :  { %v9106_v9 = vadd.f32 %v3019_v31, %v2886_v20  ;;  %v6475_v1 = vpop.f32.mrf.mxu1 }
 0xad1   :  { %v6498_v14 = vpop.f32.mrf.mxu0 }
 0xad2   :  { %v2917_v41 = vpop.f32.mrf.mxu1 }
 0xad3   :  { %v3022_v62 = vpop.f32.mrf.mxu0  ;;  %v2918_v34 = vadd.f32 %v2917_v41, %v2783_v44 }
 0xad4   :  { %v9108_v39 = vadd.f32 %v3022_v62, %v2889_v32  ;;  %v6478_v10 = vpop.f32.mrf.mxu1 }
 0xad5   :  { %v6499_v5 = vpop.f32.mrf.mxu0 }
 0xad6   :  { %10381 = vst [vmem:[#allocation15_spill] sm:$0xff] %v9108_v39  ;;  %v2920_v38 = vpop.f32.mrf.mxu1 }
 0xad7   :  { %v3027_v25 = vpop.f32.mrf.mxu0  ;;  %v2921_v20 = vadd.f32 %v2920_v38, %v2786_v7 }
 0xad8   :  { %v9110_v57 = vadd.f32 %v3027_v25, %v2894_v8  ;;  %v6479_v51 = vpop.f32.mrf.mxu1 }
 0xad9   :  { %v6502_v11 = vpop.f32.mrf.mxu0 }
 0xada   :  { %v2925_v31 = vpop.f32.mrf.mxu1 }
 0xadb   :  { %v3030_v53 = vpop.f32.mrf.mxu0  ;;  %v2926_v32 = vadd.f32 %v2925_v31, %v2791_v49 }
 0xadc   :  { %v9112_v61 = vadd.f32 %v3030_v53, %v2897_v24  ;;  %v6482_v14 = vpop.f32.mrf.mxu1 }
 0xadd   :  { %v6503_v17 = vpop.f32.mrf.mxu0 }
 0xade   :  { %10382 = vst [vmem:[#allocation16_spill] sm:$0xff] %v9112_v61  ;;  %v2928_v62 = vpop.f32.mrf.mxu1 }
 0xadf   :  { %v3035_v56 = vpop.f32.mrf.mxu0  ;;  %v2929_v8 = vadd.f32 %v2928_v62, %v2794_v60 }
 0xae0   :  { %v9114_v15 = vadd.f32 %v3035_v56, %v2902_v54  ;;  %v6483_v5 = vpop.f32.mrf.mxu1 }
 0xae1   :  { %v6506_v50 = vpop.f32.mrf.mxu0 }
 0xae2   :  { %v2933_v25 = vpop.f32.mrf.mxu1 }
 0xae3   :  { %v3038_v44 = vpop.f32.mrf.mxu0  ;;  %v2934_v24 = vadd.f32 %v2933_v25, %v2799_v28 }
 0xae4   :  { %v9116_v1 = vadd.f32 %v3038_v44, %v2905_v26  ;;  %v6486_v11 = vpop.f32.mrf.mxu1 }
 0xae5   :  { %v6507_v41 = vpop.f32.mrf.mxu0 }
 0xae6   :  { %10383 = vst [vmem:[#allocation19_spill] sm:$0xff] %v9116_v1  ;;  %v2936_v53 = vpop.f32.mrf.mxu1 }
 0xae7   :  { %v3043_v7 = vpop.f32.mrf.mxu0  ;;  %v2937_v54 = vadd.f32 %v2936_v53, %v2802_v12 }
 0xae8   :  { %v9118_v10 = vadd.f32 %v3043_v7, %v2910_v40  ;;  %v6487_v17 = vpop.f32.mrf.mxu1 }
 0xae9   :  { %v6510_v38 = vpop.f32.mrf.mxu0 }
 0xaea   :  { %v6528_v56 = vpop.f32.mrf.mxu1 }
 0xaeb   :  { %v3046_v49 = vpop.f32.mrf.mxu0  ;;  %3259 = vperm.xlu0 %6904, %v6528_v56  }
 0xaec   :  { %v9120_v51 = vadd.f32 %v3046_v49, %v2913_v48  ;;  %v3178_v14 = vpop.f32.mrf.mxu1 }
 0xaed   :  { %v6511_v31 = vpop.f32.mrf.mxu0  ;;  %3254 = vperm.xlu1 %6905, %v3178_v14  }
 0xaee   :  { %10384 = vst [vmem:[#allocation23_spill] sm:$0xff] %v9120_v51  ;;  %v9124_v28 = vpop.f32.mrf.mxu1 }
 0xaef   :  { %v3051_v60 = vpop.f32.mrf.mxu0  ;;  %10386 = vst [vmem:[#allocation25_spill] sm:$0xff] %v9124_v28 }
 0xaf0   :  { %v9122_v26 = vadd.f32 %v3051_v60, %v2918_v34  ;;  %v3188_v44 = vpop.f32.mrf.mxu1 }
 0xaf1   :  { %v6514_v50 = vpop.f32.mrf.mxu0  ;;  %3264 = vperm.xlu1 %6905, %v3188_v44  }
 0xaf2   :  { %10385 = vst [vmem:[#allocation24_spill] sm:$0xff] %v9122_v26  ;;  %v9128_v12 = vpop.f32.mrf.mxu1 }
 0xaf3   :  { %v3054_v40 = vpop.f32.mrf.mxu0  ;;  %10388 = vst [vmem:[#allocation27_spill] sm:$0xff] %v9128_v12 }
 0xaf4   :  { %v9126_v62 = vadd.f32 %v3054_v40, %v2921_v20  ;;  %v3198_v25 = vpop.f32.mrf.mxu1 }
 0xaf5   :  { %v6515_v5 = vpop.f32.mrf.mxu0  ;;  %3274 = vperm.xlu1 %6905, %v3198_v25  }
 0xaf6   :  { %10387 = vst [vmem:[#allocation26_spill] sm:$0xff] %v9126_v62  ;;  %v9132_v34 = vpop.f32.mrf.mxu1 }
 0xaf7   :  { %v3059_v48 = vpop.f32.mrf.mxu0  ;;  %10390 = vst [vmem:[#allocation29_spill] sm:$0xff] %v9132_v34 }
 0xaf8   :  { %v9130_v41 = vadd.f32 %v3059_v48, %v2926_v32  ;;  %v3208_v53 = vpop.f32.mrf.mxu1 }
 0xaf9   :  { %v6518_v7 = vpop.f32.mrf.mxu0  ;;  %3284 = vperm.xlu1 %6905, %v3208_v53  }
 0xafa   :  { %10389 = vst [vmem:[#allocation28_spill] sm:$0xff] %v9130_v41  ;;  %v9136_v20 = vpop.f32.mrf.mxu1 }
 0xafb   :  { %v3062_v11 = vpop.f32.mrf.mxu0  ;;  %10392 = vst [vmem:[#allocation31_spill] sm:$0xff] %v9136_v20 }
 0xafc   :  { %v9134_v38 = vadd.f32 %v3062_v11, %v2929_v8  ;;  %v3218_v56 = vpop.f32.mrf.mxu1 }
 0xafd   :  { %v6519_v49 = vpop.f32.mrf.mxu0  ;;  %3294 = vperm.xlu1 %6905, %v3218_v56  }
 0xafe   :  { %10391 = vst [vmem:[#allocation30_spill] sm:$0xff] %v9134_v38  ;;  %v9140_v32 = vpop.f32.mrf.mxu1 }
 0xaff   :  { %v3067_v17 = vpop.f32.mrf.mxu0  ;;  %10394 = vst [vmem:[#allocation33_spill] sm:$0xff] %v9140_v32 }
 0xb00   :  { %v9138_v31 = vadd.f32 %v3067_v17, %v2934_v24  ;;  %v9144_v40 = vpop.f32.mrf.mxu1 }
 0xb01   :  { %v6522_v60 = vpop.f32.mrf.mxu0  ;;  %10396 = vst [vmem:[#allocation35_spill] sm:$0xff] %v9144_v40 }
 0xb02   :  { %10393 = vst [vmem:[#allocation32_spill] sm:$0xff] %v9138_v31  ;;  %v9146_v44 = vpop.f32.mrf.mxu1 }
 0xb03   :  { %v3070_v14 = vpop.f32.mrf.mxu0  ;;  %10397 = vst [vmem:[#allocation36_spill] sm:$0xff] %v9146_v44 }
 0xb04   :  { %v9142_v50 = vadd.f32 %v3070_v14, %v2937_v54  ;;  %v9148_v5 = vpop.f32.mrf.mxu1 }
 0xb05   :  { %v6523_v8 = vpop.f32.mrf.mxu0  ;;  %10398 = vst [vmem:[#allocation37_spill] sm:$0xff] %v9148_v5 }
 0xb06   :  { %10395 = vst [vmem:[#allocation34_spill] sm:$0xff] %v9142_v50  ;;  %v9150_v48 = vpop.f32.mrf.mxu1 }
 0xb08   :  { %v6557_v25 = vpop.f32.mrf.mxu1 }
 0xb0a   :  { %v3454_v24 = vpop.f32.mrf.mxu1 }
 0xb0c   :  { %v6558_v7 = vpop.f32.mrf.mxu1 }
 0xb0e   :  { %v3459_v11 = vpop.f32.mrf.mxu1 }
 0xb10   :  { %v6561_v53 = vpop.f32.mrf.mxu1 }
 0xb12   :  { %v3462_v49 = vpop.f32.mrf.mxu1 }
 0xb14   :  { %v6562_v17 = vpop.f32.mrf.mxu1 }
 0xb15   :  { %v5474_v17 = vld [vmem:[%s10248_s13] ss:$0 sm:$0xff] }
 0xb16   :  { %v3467_v56 = vpop.f32.mrf.mxu1 }
 0xb18   :  { %v6565_v60 = vpop.f32.mrf.mxu1 }
 0xb1a   :  { %v3470_v54 = vpop.f32.mrf.mxu1 }
 0xb1c   :  { %v6566_v14 = vpop.f32.mrf.mxu1 }
 0xb1e   :  { %v3475_v50 = vpop.f32.mrf.mxu1 }
 0xb20   :  { %v6569_v31 = vpop.f32.mrf.mxu1 }
 0xb22   :  { %v3478_v8 = vpop.f32.mrf.mxu1 }
 0xb24   :  { %v6570_v41 = vpop.f32.mrf.mxu1 }
 0xb26   :  { %v3483_v38 = vpop.f32.mrf.mxu1 }
 0xb28   :  { %v6573_v62 = vpop.f32.mrf.mxu1 }
 0xb2a   :  { %v3486_v26 = vpop.f32.mrf.mxu1 }
 0xb2b   :  { %v9169_v41 = vadd.f32 %v5474_v17, %v3486_v26  ;;  %v9185_v26 = vadd.f32 %v5474_v17, %v3470_v54  ;;  %v9201_v54 = vadd.f32 %v5474_v17, %v3454_v24  ;;  %v9221_v24 = vld [vmem:[%s10346_s28] sm:$0xff] }
 0xb2c   :  { %v6574_v51 = vpop.f32.mrf.mxu1 }
 0xb2e   :  { %v3491_v1 = vpop.f32.mrf.mxu1 }
 0xb2f   :  { %v9165_v62 = vadd.f32 %v5474_v17, %v3491_v1  ;;  %v9181_v1 = vadd.f32 %v5474_v17, %v3475_v50  ;;  %v9197_v50 = vadd.f32 %v5474_v17, %v3459_v11  ;;  %v9214_v11 = vld [vmem:[%s10345_s21] sm:$0x7] }
 0xb30   :  { %v6577_v25 = vpop.f32.mrf.mxu1 }
 0xb32   :  { %v3494_v61 = vpop.f32.mrf.mxu1 }
 0xb33   :  { %v9161_v51 = vadd.f32 %v5474_v17, %v3494_v61  ;;  %v9177_v61 = vadd.f32 %v5474_v17, %v3478_v8  ;;  %v9193_v8 = vadd.f32 %v5474_v17, %v3462_v49 }
 0xb34   :  { %v6578_v7 = vpop.f32.mrf.mxu1 }
 0xb36   :  { %v3499_v39 = vpop.f32.mrf.mxu1 }
 0xb37   :  { %v9157_v44 = vadd.f32 %v5474_v17, %v3499_v39  ;;  %v9173_v39 = vadd.f32 %v5474_v17, %v3483_v38  ;;  %v9189_v38 = vadd.f32 %v5474_v17, %v3467_v56  ;;  %v9206_v56 = vadd.f32 %v5474_v17, %v9150_v48  ;;  %v5458_v48 = vld [vmem:[%s10246_s11] ss:$0 sm:$0xff] }
 0xb38   :  { %v6581_v53 = vpop.f32.mrf.mxu1  ;;  %v9229_v49 = vadd.f32 %v5458_v48, %v9106_v9  ;;  %v9237_v34 = vadd.f32 %v5458_v48, %v9114_v15  ;;  %v9241_v5 = vadd.f32 %v5458_v48, %v9118_v10  ;;  %v9325_v10 = vld [vmem:[%s10346_s28 + $0x38] sm:$0xff] }
 0xb3a   :  { %v3502_v60 = vpop.f32.mrf.mxu1  ;;  %10399 = vst [vmem:[#allocation38_spill] sm:$0xff] %v9229_v49  ;;  %10401 = vst [vmem:[#allocation40_spill] sm:$0xff] %v9237_v34 }
 0xb3b   :  { %v9155_v14 = vadd.f32 %v5474_v17, %v3502_v60  ;;  %v9233_v17 = vadd.f32 %v5458_v48, %v9110_v57  ;;  %10402 = vst [vmem:[#allocation41_spill] sm:$0xff] %v9241_v5 }
 0xb3c   :  { %v6582_v31 = vpop.f32.mrf.mxu1 }
 0xb3d   :  { %6584 = vmatpush3.msra.mxu0 %v9155_v14  ;;  %10400 = vst [vmem:[#allocation39_spill] sm:$0xff] %v9233_v17 }
 0xb3e   :  { %6585 = vmatprep.subr.mxu0 %v10344_v37 }
 0xb3f   :  { %6586 = vmatpush3.msra.mxu0 %v9157_v44 }
 0xb40   :  { %6587 = vmatprep.subr.mxu0 %v10344_v37 }
 0xb41   :  { %6588 = vmatpush3.msra.mxu0 %v9161_v51 }
 0xb42   :  { %6589 = vmatprep.subr.mxu0 %v10344_v37 }
 0xb43   :  { %6590 = vmatpush3.msra.mxu0 %v9165_v62 }
 0xb44   :  { %6591 = vmatprep.subr.mxu0 %v10344_v37 }
 0xb45   :  { %6592 = vmatpush3.msra.mxu0 %v9169_v41 }
 0xb46   :  { %6593 = vmatprep.subr.mxu0 %v10344_v37 }
 0xb47   :  { %6594 = vmatpush3.msra.mxu0 %v9173_v39 }
 0xb48   :  { %6595 = vmatprep.subr.mxu0 %v10344_v37 }
 0xb49   :  { %6596 = vmatpush3.msra.mxu0 %v9177_v61 }
 0xb4a   :  { %6597 = vmatprep.subr.mxu0 %v10344_v37 }
 0xb4b   :  { %6598 = vmatpush3.msra.mxu0 %v9181_v1 }
 0xb4c   :  { %6599 = vmatprep.subr.mxu0 %v10344_v37 }
 0xb4d   :  { %6600 = vmatpush3.msra.mxu0 %v9185_v26 }
 0xb4e   :  { %6601 = vmatprep.subr.mxu0 %v10344_v37 }
 0xb4f   :  { %6602 = vmatpush3.msra.mxu0 %v9189_v38 }
 0xb50   :  { %6603 = vmatprep.subr.mxu0 %v10344_v37 }
 0xb51   :  { %6604 = vmatpush3.msra.mxu0 %v9193_v8 }
 0xb52   :  { %6605 = vmatprep.subr.mxu0 %v10344_v37 }
 0xb53   :  { %6606 = vmatpush3.msra.mxu0 %v9197_v50 }
 0xb54   :  { %6607 = vmatprep.subr.mxu0 %v10344_v37 }
 0xb55   :  { %6608 = vmatpush3.msra.mxu0 %v9201_v54 }
 0xb56   :  { %6609 = vmatprep.subr.mxu0 %v10344_v37 }
 0xb57   :  { %6610 = vmatpush3.msra.mxu0 %v9206_v56 }
 0xb58   :  { %6612 = vmatmul.mubr.msk.f32.vlgmr.msra.gmra.mxu0 %vm918_vm5, %v9214_v11 }
 0xb59   :  { %6616 = vmatprep.mubr.msk.f32.mxu0 %vm992_vm6, %v9221_v24 }
 0xb68   :  { %v3255_v25 = vpop.permute.xlu1 %3254 }
 0xb69   :  { %v3322_v7 = vmul.f32 %v3255_v25, %v9229_v49  ;;  %v10403_v25 = vlaneseq }
 0xb6b   :  { %v3336_v53 = vmul.f32 1.442695, %v3322_v7  ;;  %v9244_v7 = vand.u32 127, %v10403_v25  ;;  %v9290_v25 = vld [vmem:[%s10346_s28 + $0x10] sm:$0xff] }
 0xb6c   :  { %v3265_v60 = vpop.permute.xlu1 %3264 }
 0xb6d   :  { %6956 = vpow2.f32 %v3336_v53  ;;  %v3324_v31 = vmul.f32 %v3265_v60, %v9233_v17  ;;  %10404 = vst [vmem:[#allocation42_spill] sm:$0xff] %v9244_v7  ;;  %vm3249_vm8 = vcmp.ge.s32.totalorder %v9244_v7, 3  ;;  %vm3250_vm9 = vcmp.lt.s32.totalorder %v9244_v7, 5  ;;  %v9360_v17 = vld [vmem:[%s10346_s28 + $0x60] sm:$0xff] }
 0xb6e   :  { %vm9251_vm10 = vmand %vm3249_vm8, %vm3250_vm9 }
 0xb6f   :  { %v3340_v40 = vmul.f32 1.442695, %v3324_v31  ;;  %v9311_v31 = vld [vmem:[%s10346_s28 + $0x28] sm:$0xff] }
 0xb70   :  { %v3275_v12 = vpop.permute.xlu1 %3274 }
 0xb71   :  { %6958 = vpow2.f32 %v3340_v40  ;;  %v3326_v9 = vmul.f32 %v3275_v12, %v9237_v34  ;;  %v10406_v12 = vmov 0  ;;  %v9318_v40 = vld [vmem:[%s10346_s28 + $0x30] sm:$0xff] }
 0xb72   :  { %v10407_v12 = vsel %vm9251_vm10, 4294967295, %v10406_v12  ;;  %v9346_v34 = vld [vmem:[%s10346_s28 + $0x50] sm:$0xff] }
 0xb73   :  { %v3344_v28 = vmul.f32 1.442695, %v3326_v9  ;;  %10408 = vst [vmem:[#allocation44_spill] sm:$0xff] %v10407_v12 }
 0xb74   :  { %v3285_v57 = vpop.permute.xlu1 %3284 }
 0xb75   :  { %6960 = vpow2.f32 %v3344_v28  ;;  %v3328_v53 = vmul.f32 %v3285_v57, %v9241_v5  ;;  %v9332_v5 = vld [vmem:[%s10346_s28 + $0x40] sm:$0xff] }
 0xb76   :  { %10412 = vst [vmem:[#allocation48_spill] sm:$0xff] %v9332_v5 }
 0xb77   :  { %v3348_v60 = vmul.f32 1.442695, %v3328_v53 }
 0xb79   :  { %6962 = vpow2.f32 %v3348_v60  ;;  %v9282_v60 = vld [vmem:[%s10346_s28 + $0x8] sm:$0xff] }
 0xb7a   :  { %v9249_v15 = vpop.eup %6956 }
 0xb7b   :  { %10405 = vst [vmem:[#allocation43_spill] sm:$0xff] %v9249_v15 }
 0xb7e   :  { %v9259_v28 = vpop.eup %6958 }
 0xb7f   :  { %10409 = vst [vmem:[#allocation45_spill] sm:$0xff] %v9259_v28  ;;  %v9367_v28 = vld [vmem:[%s10346_s28 + $0x68] sm:$0xff] }
 0xb82   :  { %v9265_v48 = vpop.eup %6960 }
 0xb83   :  { %10410 = vst [vmem:[#allocation46_spill] sm:$0xff] %v9265_v48  ;;  %v9353_v48 = vld [vmem:[%s10346_s28 + $0x58] sm:$0xff] }
 0xb86   :  { %v9271_v9 = vpop.eup %6962 }
 0xb87   :  { %10411 = vst [vmem:[#allocation47_spill] sm:$0xff] %v9271_v9  ;;  %v9339_v9 = vld [vmem:[%s10346_s28 + $0x48] sm:$0xff] }
 0xc18   :  { %v3574_v57 = vpop.f32.mrf.mxu0 }
 0xc19   :  { %6614 = vmatprep.subr.msk.mxu0 %vm1035_vm7, %v3574_v57 }
 0xc1a   :  { %v6613_v53 = vpop.f32.mrf.mxu0  ;;  %6615 = vmatpush3.msk.msra.mxu0 %vm1035_vm7, %v3574_v57  ;;  %v9297_v57 = vld [vmem:[%s10346_s28 + $0x18] sm:$0xff] }
 0xc1b   :  { %6617 = vmatmul.mubr.msk.f32.vlgmr.msra.gmra.mxu0 %vm992_vm6, %v9282_v60  ;;  %6637 = vmatprep.subr.mxu0 %v10344_v37  ;;  %v9304_v53 = vld [vmem:[%s10346_s28 + $0x20] sm:$0xff] }
 0xc1c   :  { %6619 = vmatprep.mubr.msk.f32.mxu0 %vm992_vm6, %v9290_v25 }
 0xc1f   :  { %6620 = vmatmul.mubr.msk.f32.gmra.mxu0 %vm992_vm6, %v9297_v57 }
 0xc20   :  { %6622 = vmatprep.mubr.msk.f32.mxu0 %vm992_vm6, %v9304_v53 }
 0xc23   :  { %6623 = vmatmul.mubr.msk.f32.gmra.mxu0 %vm992_vm6, %v9311_v31 }
 0xc24   :  { %6625 = vmatprep.mubr.msk.f32.mxu0 %vm992_vm6, %v9318_v40 }
 0xc27   :  { %6626 = vmatmul.mubr.msk.f32.gmra.mxu0 %vm992_vm6, %v9325_v10 }
 0xc28   :  { %6628 = vmatprep.mubr.msk.f32.mxu0 %vm992_vm6, %v9332_v5 }
 0xc2b   :  { %6629 = vmatmul.mubr.msk.f32.gmra.mxu0 %vm992_vm6, %v9339_v9 }
 0xc2c   :  { %6631 = vmatprep.mubr.msk.f32.mxu0 %vm992_vm6, %v9346_v34 }
 0xc2f   :  { %6632 = vmatmul.mubr.msk.f32.gmra.mxu0 %vm992_vm6, %v9353_v48 }
 0xc30   :  { %6634 = vmatprep.mubr.msk.f32.mxu0 %vm992_vm6, %v9360_v17 }
 0xc33   :  { %6635 = vmatmul.mubr.msk.f32.gmra.mxu0 %vm992_vm6, %v9367_v28 }
 0xc34   :  { %6665 = vmatprep.mubr.msk.f32.mxu0 %vm7059_vm0, %v10344_v37 }
 0xcdb   :  { %v6618_v49 = vpop.f32.mrf.mxu0 }
 0xcdd   :  { %v3647_v15 = vpop.f32.mrf.mxu0 }
 0xcdf   :  { %v6621_v12 = vpop.f32.mrf.mxu0 }
 0xce1   :  { %v3657_v7 = vpop.f32.mrf.mxu0 }
 0xce3   :  { %v6624_v32 = vpop.f32.mrf.mxu0 }
 0xce5   :  { %v3667_v20 = vpop.f32.mrf.mxu0 }
 0xce7   :  { %v6627_v5 = vpop.f32.mrf.mxu0 }
 0xce9   :  { %v3677_v3 = vpop.f32.mrf.mxu0 }
 0xceb   :  { %v6630_v58 = vpop.f32.mrf.mxu0 }
 0xced   :  { %v3687_v23 = vpop.f32.mrf.mxu0 }
 0xcef   :  { %v6633_v46 = vpop.f32.mrf.mxu0 }
 0xcf0   :  { %v9377_v0 = vsub.f32 %v9161_v51, %v6633_v46  ;;  %v9427_v51 = vsub.f32 %v9193_v8, %v6621_v12  ;;  %v6949_v12 = vld [vmem:[%s10251_s16] sm:$0xff]  }
 0xcf1   :  { %v3697_v6 = vpop.f32.mrf.mxu0 }
 0xcf2   :  { %v9385_v55 = vsub.f32 %v9165_v62, %v3697_v6  ;;  %v3741_v46 = vmul.f32 %v9377_v0, %v9377_v0  ;;  %v9433_v62 = vsub.f32 %v9197_v50, %v3657_v7 }
 0xcf3   :  { %v6636_v36 = vpop.f32.mrf.mxu0 }
 0xcf4   :  { %v9374_v18 = vsub.f32 %v9155_v14, %v6636_v36  ;;  %v9391_v36 = vsub.f32 %v9169_v41, %v6630_v58  ;;  %v3740_v6 = vmul.f32 %v9385_v55, %v9385_v55  ;;  %v9421_v14 = vsub.f32 %v9189_v38, %v3667_v20 }
 0xcf5   :  { %v3707_v22 = vpop.f32.mrf.mxu0  ;;  %v3717_v41 = vsub.f32 %v9201_v54, %v6618_v49 }
 0xcf6   :  { %v3743_v16 = vmul.f32 %v9374_v18, %v9374_v18  ;;  %v9382_v63 = vsub.f32 %v9157_v44, %v3707_v22  ;;  %v9397_v22 = vsub.f32 %v9173_v39, %v3687_v23  ;;  %v3739_v58 = vmul.f32 %v9391_v36, %v9391_v36 }
 0xcf7   :  { %v9415_v44 = vsub.f32 %v9185_v26, %v6624_v32  ;;  %v3734_v20 = vmul.f32 %v9421_v14, %v9421_v14  ;;  %v3733_v39 = vmul.f32 %v9427_v51, %v9427_v51  ;;  %v3731_v26 = vmul.f32 %v3717_v41, %v3717_v41 }
 0xcf8   :  { %v3742_v21 = vmul.f32 %v9382_v63, %v9382_v63  ;;  %6638 = vmatpush3.msra.mxu0 %v3743_v16  ;;  %v9403_v16 = vsub.f32 %v9177_v61, %v6627_v5  ;;  %v3738_v23 = vmul.f32 %v9397_v22, %v9397_v22  ;;  %v3716_v61 = vsub.f32 %v9206_v56, %v3647_v15  ;;  %v5503_v56 = vld [vmem:[%s10249_s14] ss:$0 sm:$0xff]  ;;  %v6948_v15 = vld [vmem:[%s10251_s16 + $0x8] sm:$0xff]  }
 0xcf9   :  { %6639 = vmatprep.subr.mxu0 %v10344_v37  ;;  %v3735_v32 = vmul.f32 %v9415_v44, %v9415_v44 }
 0xcfa   :  { %6640 = vmatpush3.msra.mxu0 %v3742_v21  ;;  %v9409_v21 = vsub.f32 %v9181_v1, %v3677_v3  ;;  %v3737_v5 = vmul.f32 %v9403_v16, %v9403_v16  ;;  %v3732_v1 = vmul.f32 %v9433_v62, %v9433_v62  ;;  %v3730_v38 = vmul.f32 %v3716_v61, %v3716_v61 }
 0xcfb   :  { %6641 = vmatprep.subr.mxu0 %v10344_v37 }
 0xcfc   :  { %6642 = vmatpush3.msra.mxu0 %v3741_v46  ;;  %v3736_v3 = vmul.f32 %v9409_v21, %v9409_v21 }
 0xcfd   :  { %6643 = vmatprep.subr.mxu0 %v10344_v37 }
 0xcfe   :  { %6644 = vmatpush3.msra.mxu0 %v3740_v6 }
 0xcff   :  { %6645 = vmatprep.subr.mxu0 %v10344_v37 }
 0xd00   :  { %6646 = vmatpush3.msra.mxu0 %v3739_v58  ;;  %v9510_v58 = vld [vmem:[%s10250_s15] ss:$0 sm:$0xff] }
 0xd01   :  { %6647 = vmatprep.subr.mxu0 %v10344_v37 }
 0xd02   :  { %6648 = vmatpush3.msra.mxu0 %v3738_v23 }
 0xd03   :  { %6649 = vmatprep.subr.mxu0 %v10344_v37 }
 0xd04   :  { %6650 = vmatpush3.msra.mxu0 %v3737_v5 }
 0xd05   :  { %6651 = vmatprep.subr.mxu0 %v10344_v37 }
 0xd06   :  { %6652 = vmatpush3.msra.mxu0 %v3736_v3 }
 0xd07   :  { %6653 = vmatprep.subr.mxu0 %v10344_v37 }
 0xd08   :  { %6654 = vmatpush3.msra.mxu0 %v3735_v32 }
 0xd09   :  { %6655 = vmatprep.subr.mxu0 %v10344_v37 }
 0xd0a   :  { %6656 = vmatpush3.msra.mxu0 %v3734_v20 }
 0xd0b   :  { %6657 = vmatprep.subr.mxu0 %v10344_v37 }
 0xd0c   :  { %6658 = vmatpush3.msra.mxu0 %v3733_v39 }
 0xd0d   :  { %6659 = vmatprep.subr.mxu0 %v10344_v37 }
 0xd0e   :  { %6660 = vmatpush3.msra.mxu0 %v3732_v1 }
 0xd0f   :  { %6661 = vmatprep.subr.mxu0 %v10344_v37 }
 0xd10   :  { %6662 = vmatpush3.msra.mxu0 %v3731_v26 }
 0xd11   :  { %6663 = vmatprep.subr.mxu0 %v10344_v37 }
 0xd12   :  { %6664 = vmatpush3.msra.mxu0 %v3730_v38 }
 0xd13   :  { %6666 = vmatmul.mubr.msk.f32.vlgmr.msra.gmra.mxu0 %vm918_vm5, %v9214_v11  ;;  %v6946_v11 = vld [vmem:[%s10251_s16 + $0x18] sm:$0xff]  }
 0xd14   :  { %6670 = vmatprep.mubr.msk.f32.mxu0 %vm992_vm6, %v9221_v24  ;;  %v6947_v24 = vld [vmem:[%s10251_s16 + $0x10] sm:$0xff]  }
 0xdd3   :  { %v3810_v8 = vpop.f32.mrf.mxu0 }
 0xdd4   :  { %v3811_v50 = vadd.f32 1e-05, %v3810_v8 }
 0xdd5   :  { %v6667_v54 = vpop.f32.mrf.mxu0 }
 0xdd6   :  { %6964 = vrsqrt.f32 %v3811_v50 }
 0xde3   :  { %v6965_v49 = vpop.eup %6964 }
 0xde4   :  { %v3821_v7 = vmul.f32 %v6965_v49, %v5503_v56 }
 0xde6   :  { %6668 = vmatprep.subr.msk.mxu0 %vm1035_vm7, %v3821_v7  ;;  %6895 = vmatprep.subr.msk.mxu1 %vm1035_vm7, %v3821_v7 }
 0xde7   :  { %6669 = vmatpush3.msk.msra.mxu0 %vm1035_vm7, %v3821_v7  ;;  %6896 = vmatpush3.msk.msra.mxu1 %vm1035_vm7, %v3821_v7 }
 0xde8   :  { %6671 = vmatmul.mubr.msk.f32.vlgmr.msra.gmra.mxu0 %vm992_vm6, %v9282_v60  ;;  %6683 = vmatmul.mubr.msk.f32.vlgmr.msra.gmra.mxu1 %vm992_vm6, %v9339_v9 }
 0xde9   :  { %6673 = vmatprep.mubr.msk.f32.mxu0 %vm992_vm6, %v9290_v25  ;;  %6685 = vmatprep.mubr.msk.f32.mxu1 %vm992_vm6, %v9346_v34 }
 0xdea   :  { %6691 = vmatprep.subr.bf16.mxu1 %v10344_v37  ;;  %6723 = vmatprep.subr.bf16.mxu0 %v10344_v37 }
 0xdeb   :  { %6692 = vmatpush3.bf16.msra.mxu1 %v6946_v11  ;;  %6724 = vmatpush3.bf16.msra.mxu0 %v6948_v15  ;;  %v6950_v11 = vld [vmem:[%s10251_s16 + $0x28] sm:$0xff]  }
 0xdec   :  { %6674 = vmatmul.mubr.msk.f32.gmra.mxu0 %vm992_vm6, %v9297_v57  ;;  %6686 = vmatmul.mubr.msk.f32.gmra.mxu1 %vm992_vm6, %v9353_v48 }
 0xded   :  { %6676 = vmatprep.mubr.msk.f32.mxu0 %vm992_vm6, %v9304_v53  ;;  %6688 = vmatprep.mubr.msk.f32.mxu1 %vm992_vm6, %v9360_v17 }
 0xdee   :  { %6693 = vmatprep.subr.bf16.mxu1 %v10344_v37  ;;  %6725 = vmatprep.subr.bf16.mxu0 %v10344_v37 }
 0xdef   :  { %6694 = vmatpush3.bf16.msra.mxu1 %v6947_v24  ;;  %6726 = vmatpush3.bf16.msra.mxu0 %v6949_v12 }
 0xdf0   :  { %6677 = vmatmul.mubr.msk.f32.gmra.mxu0 %vm992_vm6, %v9311_v31  ;;  %6689 = vmatmul.mubr.msk.f32.gmra.mxu1 %vm992_vm6, %v9367_v28 }
 0xdf1   :  { %6679 = vmatprep.mubr.msk.f32.mxu0 %vm992_vm6, %v9318_v40  ;;  %6695 = vmatprep.mubr.msk.bf16.mxu1 %vm7059_vm0, %v10344_v37 }
 0xdf2   :  { %6755 = vmatprep.subr.bf16.mxu1 %v10344_v37  ;;  %6787 = vmatprep.subr.mxu0 %v10344_v37 }
 0xdf4   :  { %6680 = vmatmul.mubr.msk.f32.gmra.mxu0 %vm992_vm6, %v9325_v10 }
 0xdf5   :  { %6727 = vmatprep.mubr.msk.bf16.mxu0 %vm7059_vm0, %v10344_v37 }
 0xea8   :  { %v6672_v46 = vpop.f32.mrf.mxu0  ;;  %v9505_v6 = vpop.f32.mrf.mxu1 }
 0xea9   :  { %v3961_v23 = vmul.f32 %v6672_v46, %v3717_v41 }
 0xeaa   :  { %v3891_v5 = vpop.f32.mrf.mxu0  ;;  %v9512_v3 = vpop.f32.mrf.mxu1 }
 0xeab   :  { %v3960_v32 = vmul.f32 %v3891_v5, %v3716_v61  ;;  %v3981_v20 = vadd.f32 %v9510_v58, %v3961_v23 }
 0xeac   :  { %v6675_v39 = vpop.f32.mrf.mxu0  ;;  %v9515_v1 = vpop.f32.mrf.mxu1 }
 0xead   :  { %v3980_v26 = vadd.f32 %v9510_v58, %v3960_v32  ;;  %v9520_v50 = vmax.f32 %v3981_v20, 0.0  ;;  %v3963_v41 = vmul.f32 %v6675_v39, %v9427_v51 }
 0xeae   :  { %v3901_v38 = vpop.f32.mrf.mxu0  ;;  %v9518_v8 = vpop.f32.mrf.mxu1 }
 0xeaf   :  { %v9522_v54 = vmax.f32 %v3980_v26, 0.0  ;;  %v3962_v56 = vmul.f32 %v3901_v38, %v9433_v62  ;;  %v3983_v24 = vadd.f32 %v9510_v58, %v3963_v41  ;;  %v6951_v62 = vld [vmem:[%s10251_s16 + $0x20] sm:$0xff]   ;;  %v4024_v38 = vrot.slane %v9520_v50, 7 }
 0xeb0   :  { %v6690_v49 = vpop.f32.mrf.mxu1  ;;  %v6678_v7 = vpop.f32.mrf.mxu0 }
 0xeb1   :  { %v4121_v61 = vpack.c.bf16 %v9520_v50, %v9522_v54  ;;  %v3982_v15 = vadd.f32 %v9510_v58, %v3962_v56  ;;  %v3973_v12 = vmul.f32 %v6690_v49, %v9374_v18  ;;  %v9543_v23 = vmax.f32 %v3983_v24, 0.0 }
 0xeb2   :  { %v3911_v51 = vpop.f32.mrf.mxu0  ;;  %v3965_v18 = vmul.f32 %v6678_v7, %v9415_v44  ;;  %v4023_v26 = vrot.slane %v9522_v54, 7 }
 0xeb3   :  { %6696 = vmatmul.mubr.msk.bf16.vlgmr.msra.gmra.mxu1 %vm188_vm1, %v4121_v61  ;;  %v9540_v46 = vmax.f32 %v3982_v15, 0.0  ;;  %v3993_v5 = vadd.f32 %v9510_v58, %v3973_v12  ;;  %v3964_v32 = vmul.f32 %v3911_v51, %v9421_v14 }
 0xeb4   :  { %6699 = vmatprep.mubr.msk.bf16.mxu1 %vm7059_vm0, %v10344_v37  ;;  %6756 = vmatpush3.bf16.msra.mxu1 %v6950_v11  ;;  %v3985_v41 = vadd.f32 %v9510_v58, %v3965_v18  ;;  %v6681_v14 = vpop.f32.mrf.mxu0  ;;  %v4049_v49 = vsel %vm246_vm3, %v4023_v26, %v4024_v38 }
 0xeb5   :  { %6757 = vmatprep.subr.bf16.mxu1 %v10344_v37  ;;  %v4122_v20 = vpack.c.bf16 %v9543_v23, %v9540_v46  ;;  %v9550_v39 = vmax.f32 %v3993_v5, 0.0  ;;  %v3984_v56 = vadd.f32 %v9510_v58, %v3964_v32  ;;  %v4025_v61 = vrot.slane %v9540_v46, 7 }
 0xeb6   :  { %v9563_v7 = vmax.f32 %v3985_v41, 0.0  ;;  %v4052_v15 = vmul.f32 %v4049_v49, %v7486_v33  ;;  %v3921_v51 = vpop.f32.mrf.mxu0  ;;  %v3967_v18 = vmul.f32 %v6681_v14, %v9403_v16  ;;  %v3969_v14 = vmul.f32 %v9505_v6, %v9391_v36 }
 0xeb7   :  { %v4036_v44 = vrot.slane %v9550_v39, 7  ;;  %v9569_v24 = vmax.f32 %v3984_v56, 0.0  ;;  %v3966_v41 = vmul.f32 %v3921_v51, %v9409_v21 }
 0xeb8   :  { %6758 = vmatpush3.bf16.msra.mxu1 %v6951_v62  ;;  %v4026_v62 = vrot.slane %v9543_v23, 7  ;;  %v3987_v33 = vadd.f32 %v9510_v58, %v3967_v18  ;;  %v4028_v49 = vrot.slane %v9563_v7, 7  ;;  %v3989_v36 = vadd.f32 %v9510_v58, %v3969_v14 }
 0xeb9   :  { %v4050_v11 = vsel %vm246_vm3, %v4036_v44, %v4023_v26  ;;  %v4123_v5 = vpack.c.bf16 %v9563_v7, %v9569_v24  ;;  %v4048_v26 = vsel %vm246_vm3, %v4024_v38, %v4025_v61  ;;  %v3968_v38 = vmul.f32 %v9512_v3, %v9397_v22 }
 0xeba   :  { %v4051_v12 = vmul.f32 %v4050_v11, %v7492_v35  ;;  %v4053_v35 = vmul.f32 %v4048_v26, %v7520_v45  ;;  %v4027_v21 = vrot.slane %v9569_v24, 7  ;;  %v3986_v56 = vadd.f32 %v9510_v58, %v3966_v41 }
 0xebb   :  { %6700 = vmatmul.mubr.msk.bf16.gmra.mxu1 %vm188_vm1, %v4122_v20  ;;  %v4047_v20 = vsel %vm246_vm3, %v4025_v61, %v4026_v62  ;;  %v9598_v61 = vmax.f32 %v3987_v33, 0.0  ;;  %v3988_v11 = vadd.f32 %v9510_v58, %v3968_v38 }
 0xebc   :  { %6703 = vmatprep.mubr.msk.bf16.mxu1 %vm7059_vm0, %v10344_v37  ;;  %v4065_v32 = vpack.c.bf16 %v4052_v15, %v4051_v12  ;;  %v4054_v16 = vmul.f32 %v4047_v20, %v7524_v47  ;;  %v9600_v45 = vmax.f32 %v3986_v56, 0.0  ;;  %v4045_v15 = vsel %vm246_vm3, %v4027_v21, %v4028_v49  ;;  %v10413_v12 = vld [vmem:[#allocation8_spill] sm:$0xff] }
 0xebd   :  { %v4046_v22 = vsel %vm246_vm3, %v4026_v62, %v4027_v21  ;;  %v4056_v51 = vmul.f32 %v4045_v15, %v10413_v12  ;;  %v3970_v62 = vmul.f32 %v9518_v8, %v9385_v55  ;;  %v4030_v20 = vrot.slane %v9598_v61, 7 }
 0xebe   :  { %6728 = vmatmul.mubr.msk.bf16.vlgmr.msra.gmra.mxu0 %vm188_vm1, %v4065_v32  ;;  %v4066_v47 = vpack.c.bf16 %v4054_v16, %v4053_v35  ;;  %v4124_v3 = vpack.c.bf16 %v9598_v61, %v9600_v45  ;;  %v4055_v6 = vmul.f32 %v4046_v22, %v7549_v59  ;;  %v4029_v18 = vrot.slane %v9600_v45, 7  ;;  %v3951_v35 = vpop.f32.mrf.mxu1 }
 0xebf   :  { %6731 = vmatprep.mubr.msk.bf16.mxu0 %vm7059_vm0, %v10344_v37  ;;  %v9623_v32 = vmax.f32 %v3989_v36, 0.0  ;;  %v3971_v59 = vmul.f32 %v9515_v1, %v9377_v0  ;;  %v3990_v33 = vadd.f32 %v9510_v58, %v3970_v62  ;;  %v3972_v21 = vmul.f32 %v3951_v35, %v9382_v63 }
 0xec0   :  { %v4067_v26 = vpack.c.bf16 %v4056_v51, %v4055_v6  ;;  %v4043_v55 = vsel %vm246_vm3, %v4029_v18, %v4030_v20  ;;  %v4044_v8 = vsel %vm246_vm3, %v4028_v49, %v4029_v18  ;;  %v4074_v36 = vrot.slane %v9540_v46, 1 }
 0xec1   :  { %v3991_v16 = vadd.f32 %v9510_v58, %v3971_v59  ;;  %v4057_v0 = vmul.f32 %v4044_v8, %v7588_v27  ;;  %v4058_v1 = vmul.f32 %v4043_v55, %v7592_v30  ;;  %v9644_v38 = vmax.f32 %v3990_v33, 0.0 }
 0xec2   :  { %v3992_v27 = vadd.f32 %v9510_v58, %v3972_v21  ;;  %v4073_v12 = vrot.slane %v9520_v50, 1  ;;  %v4072_v51 = vrot.slane %v9522_v54, 1  ;;  %v4076_v33 = vrot.slane %v9569_v24, 1  ;;  %v10414_v24 = vld [vmem:[#allocation20_spill] sm:$0xff] }
 0xec3   :  { %6704 = vmatmul.mubr.msk.bf16.gmra.mxu1 %vm188_vm1, %v4123_v5  ;;  %v9616_v5 = vmax.f32 %v3988_v11, 0.0  ;;  %v9648_v14 = vmax.f32 %v3991_v16, 0.0  ;;  %v4068_v49 = vpack.c.bf16 %v4058_v1, %v4057_v0  ;;  %v4033_v58 = vrot.slane %v9644_v38, 7  ;;  %v10415_v0 = vld [vmem:[#allocation7_spill] sm:$0xff] }
 0xec4   :  { %6707 = vmatprep.mubr.msk.bf16.mxu1 %vm7059_vm0, %v10344_v37  ;;  %v9666_v22 = vmax.f32 %v3992_v27, 0.0  ;;  %v4098_v50 = vsel %vm366_vm4, %v4072_v51, %v4073_v12  ;;  %v4075_v8 = vrot.slane %v9543_v23, 1  ;;  %v4078_v21 = vrot.slane %v9600_v45, 1  ;;  %v10417_v45 = vld [vmem:[#allocation10_spill] sm:$0xff] }
 0xec5   :  { %v4125_v41 = vpack.c.bf16 %v9623_v32, %v9616_v5  ;;  %v4031_v56 = vrot.slane %v9616_v5, 7  ;;  %v4126_v11 = vpack.c.bf16 %v9648_v14, %v9644_v38  ;;  %v4034_v6 = vrot.slane %v9648_v14, 7 }
 0xec6   :  { %6732 = vmatmul.mubr.msk.bf16.gmra.mxu0 %vm188_vm1, %v4066_v47  ;;  %v4032_v47 = vrot.slane %v9623_v32, 7  ;;  %v4127_v59 = vpack.c.bf16 %v9550_v39, %v9666_v22  ;;  %v4100_v55 = vmul.f32 %v4098_v50, %v7505_v42  ;;  %v4096_v42 = vsel %vm366_vm4, %v4074_v36, %v4075_v8 }
 0xec7   :  { %6735 = vmatprep.mubr.msk.bf16.mxu0 %vm7059_vm0, %v10344_v37  ;;  %v4042_v30 = vsel %vm246_vm3, %v4030_v20, %v4031_v56 }
 0xec8   :  { %v4041_v63 = vsel %vm246_vm3, %v4031_v56, %v4032_v47  ;;  %v4059_v15 = vmul.f32 %v4042_v30, %v7618_v13  ;;  %v4039_v13 = vsel %vm246_vm3, %v4033_v58, %v4034_v6  ;;  %v4040_v18 = vsel %vm246_vm3, %v4032_v47, %v4033_v58  ;;  %v10416_v56 = vld [vmem:[#allocation6_spill] sm:$0xff] }
 0xec9   :  { %v4061_v46 = vmul.f32 %v4040_v18, %v10365_v2  ;;  %v4062_v20 = vmul.f32 %v4039_v13, %v10366_v19  ;;  %v4077_v47 = vrot.slane %v9563_v7, 1  ;;  %v4079_v58 = vrot.slane %v9598_v61, 1 }
 0xeca   :  { %v4082_v18 = vrot.slane %v9644_v38, 1  ;;  %v4084_v38 = vrot.slane %v9666_v22, 1 }
 0xecb   :  { %6708 = vmatmul.mubr.msk.bf16.gmra.mxu1 %vm188_vm1, %v4124_v3  ;;  %v4060_v3 = vmul.f32 %v4041_v63, %v7622_v52  ;;  %v4097_v52 = vsel %vm366_vm4, %v4073_v12, %v4074_v36  ;;  %v4070_v35 = vpack.c.bf16 %v4062_v20, %v4061_v46  ;;  %v4093_v30 = vsel %vm366_vm4, %v4077_v47, %v4078_v21  ;;  %v10418_v63 = vld [vmem:[#allocation9_spill] sm:$0xff]  ;;  %v10421_v20 = vld [vmem:[#allocation14_spill] sm:$0xff] }
 0xecc   :  { %6711 = vmatprep.mubr.msk.bf16.mxu1 %vm7059_vm0, %v10344_v37  ;;  %v4105_v7 = vmul.f32 %v4093_v30, %v10417_v45  ;;  %v4080_v36 = vrot.slane %v9616_v5, 1 }
 0xecd   :  { %v4069_v62 = vpack.c.bf16 %v4060_v3, %v4059_v15 }
 0xece   :  { %6736 = vmatmul.mubr.msk.bf16.gmra.mxu0 %vm188_vm1, %v4067_v26  ;;  %v4101_v26 = vmul.f32 %v4097_v52, %v7507_v43  ;;  %v4095_v43 = vsel %vm366_vm4, %v4075_v8, %v4076_v33  ;;  %v4091_v12 = vsel %vm366_vm4, %v4079_v58, %v4080_v36  ;;  %v4081_v52 = vrot.slane %v9623_v32, 1 }
 0xecf   :  { %6739 = vmatprep.mubr.msk.bf16.mxu0 %vm7059_vm0, %v10344_v37  ;;  %v4103_v1 = vmul.f32 %v4095_v43, %v10415_v0  ;;  %v4083_v32 = vrot.slane %v9648_v14, 1  ;;  %v4085_v43 = vrot.slane %v9550_v39, 1  ;;  %v10426_v0 = vld [vmem:[#allocation22_spill] sm:$0xff] }
 0xed0   :  { %v4114_v16 = vpack.c.bf16 %v4101_v26, %v4100_v55  ;;  %v4089_v50 = vsel %vm366_vm4, %v4081_v52, %v4082_v18  ;;  %v4090_v46 = vsel %vm366_vm4, %v4080_v36, %v4081_v52 }
 0xed1   :  { %v4109_v26 = vmul.f32 %v4089_v50, %v10421_v20  ;;  %v4087_v8 = vsel %vm366_vm4, %v4083_v32, %v4084_v38  ;;  %v4086_v14 = vsel %vm366_vm4, %v4084_v38, %v4085_v43 }
 0xed3   :  { %6712 = vmatmul.mubr.msk.bf16.gmra.mxu1 %vm188_vm1, %v4125_v41  ;;  %v4035_v41 = vrot.slane %v9666_v22, 7 }
 0xed4   :  { %6715 = vmatprep.mubr.msk.bf16.mxu1 %vm7059_vm0, %v10344_v37 }
 0xed5   :  { %v4037_v2 = vsel %vm246_vm3, %v4035_v41, %v4036_v44  ;;  %v4038_v19 = vsel %vm246_vm3, %v4034_v6, %v4035_v41  ;;  %v4092_v6 = vsel %vm366_vm4, %v4078_v21, %v4079_v58  ;;  %v10422_v41 = vld [vmem:[#allocation13_spill] sm:$0xff] }
 0xed6   :  { %6740 = vmatmul.mubr.msk.bf16.gmra.mxu0 %vm188_vm1, %v4068_v49  ;;  %v4063_v23 = vmul.f32 %v4038_v19, %v10369_v4  ;;  %v4064_v44 = vmul.f32 %v4037_v2, %v10414_v24  ;;  %v4102_v49 = vmul.f32 %v4096_v42, %v10416_v56  ;;  %v4094_v4 = vsel %vm366_vm4, %v4076_v33, %v4077_v47  ;;  %v10424_v19 = vld [vmem:[#allocation17_spill] sm:$0xff] }
 0xed7   :  { %6743 = vmatprep.mubr.msk.bf16.mxu0 %vm7059_vm0, %v10344_v37  ;;  %v4104_v15 = vmul.f32 %v4094_v4, %v10418_v63  ;;  %v4108_v33 = vmul.f32 %v4090_v46, %v10422_v41  ;;  %v10425_v24 = vld [vmem:[#allocation21_spill] sm:$0xff] }
 0xed8   :  { %v4115_v27 = vpack.c.bf16 %v4103_v1, %v4102_v49 }
 0xed9   :  { %v4116_v3 = vpack.c.bf16 %v4105_v7, %v4104_v15  ;;  %v4118_v55 = vpack.c.bf16 %v4109_v26, %v4108_v33 }
 0xedb   :  { %6716 = vmatmul.mubr.msk.bf16.gmra.mxu1 %vm188_vm1, %v4126_v11  ;;  %v4071_v11 = vpack.c.bf16 %v4064_v44, %v4063_v23  ;;  %v4099_v23 = vsel %vm366_vm4, %v4085_v43, %v4072_v51  ;;  %v4112_v44 = vmul.f32 %v4086_v14, %v10425_v24 }
 0xedc   :  { %6719 = vmatprep.mubr.msk.bf16.mxu1 %vm7059_vm0, %v10344_v37  ;;  %v4113_v1 = vmul.f32 %v4099_v23, %v10426_v0 }
 0xede   :  { %6744 = vmatmul.mubr.msk.bf16.gmra.mxu0 %vm188_vm1, %v4069_v62  ;;  %v10419_v62 = vld [vmem:[#allocation11_spill] sm:$0xff]  ;;  %v4120_v21 = vpack.c.bf16 %v4113_v1, %v4112_v44 }
 0xedf   :  { %6747 = vmatprep.mubr.msk.bf16.mxu0 %vm7059_vm0, %v10344_v37  ;;  %v4106_v13 = vmul.f32 %v4092_v6, %v10419_v62 }
 0xee3   :  { %6720 = vmatmul.mubr.msk.bf16.gmra.mxu1 %vm188_vm1, %v4127_v59  ;;  %v10420_v59 = vld [vmem:[#allocation12_spill] sm:$0xff] }
 0xee4   :  { %6759 = vmatprep.mubr.msk.bf16.mxu1 %vm7059_vm0, %v10344_v37  ;;  %v4107_v61 = vmul.f32 %v4091_v12, %v10420_v59 }
 0xee6   :  { %6748 = vmatmul.mubr.msk.bf16.gmra.mxu0 %vm188_vm1, %v4070_v35  ;;  %v4117_v5 = vpack.c.bf16 %v4107_v61, %v4106_v13  ;;  %v4088_v35 = vsel %vm366_vm4, %v4082_v18, %v4083_v32 }
 0xee7   :  { %6751 = vmatprep.mubr.msk.bf16.mxu0 %vm7059_vm0, %v10344_v37  ;;  %v4110_v22 = vmul.f32 %v4088_v35, %v10424_v19 }
 0xeeb   :  { %6760 = vmatmul.mubr.msk.bf16.vlgmr.msra.gmra.mxu1 %vm188_vm1, %v4114_v16  ;;  %v10423_v16 = vld [vmem:[#allocation18_spill] sm:$0xff] }
 0xeec   :  { %6763 = vmatprep.mubr.msk.bf16.mxu1 %vm7059_vm0, %v10344_v37  ;;  %v4111_v2 = vmul.f32 %v4087_v8, %v10423_v16 }
 0xeee   :  { %6752 = vmatmul.mubr.msk.bf16.gmra.mxu0 %vm188_vm1, %v4071_v11  ;;  %v4119_v42 = vpack.c.bf16 %v4111_v2, %v4110_v22 }
 0xeef   :  { %6815 = vmatprep.mubr.msk.f32.mxu0 %vm7059_vm0, %v10344_v37 }
 0xef3   :  { %6764 = vmatmul.mubr.msk.bf16.gmra.mxu1 %vm188_vm1, %v4115_v27 }
 0xef4   :  { %6767 = vmatprep.mubr.msk.bf16.mxu1 %vm7059_vm0, %v10344_v37 }
 0xefb   :  { %6768 = vmatmul.mubr.msk.bf16.gmra.mxu1 %vm188_vm1, %v4116_v3 }
 0xefc   :  { %6771 = vmatprep.mubr.msk.bf16.mxu1 %vm7059_vm0, %v10344_v37 }
 0xf03   :  { %6772 = vmatmul.mubr.msk.bf16.gmra.mxu1 %vm188_vm1, %v4117_v5 }
 0xf04   :  { %6775 = vmatprep.mubr.msk.bf16.mxu1 %vm7059_vm0, %v10344_v37 }
 0xf0b   :  { %6776 = vmatmul.mubr.msk.bf16.gmra.mxu1 %vm188_vm1, %v4118_v55 }
 0xf0c   :  { %6779 = vmatprep.mubr.msk.bf16.mxu1 %vm7059_vm0, %v10344_v37 }
 0xf13   :  { %6780 = vmatmul.mubr.msk.bf16.gmra.mxu1 %vm188_vm1, %v4119_v42 }
 0xf14   :  { %6783 = vmatprep.mubr.msk.bf16.mxu1 %vm7059_vm0, %v10344_v37 }
 0xf1b   :  { %6784 = vmatmul.mubr.msk.bf16.gmra.mxu1 %vm188_vm1, %v4120_v21 }
 0xf73   :  { %v4195_v39 = vpop.f32.mrf.mxu1 }
 0xf75   :  { %v6697_v56 = vpop.f32.mrf.mxu1 }
 0xf77   :  { %v4198_v49 = vpop.f32.mrf.mxu1 }
 0xf79   :  { %v6698_v47 = vpop.f32.mrf.mxu1 }
 0xf7b   :  { %v4203_v11 = vpop.f32.mrf.mxu1 }
 0xf7d   :  { %v6701_v27 = vpop.f32.mrf.mxu1 }
 0xf7e   :  { %v4317_v51 = vpop.f32.mrf.mxu0 }
 0xf7f   :  { %v4206_v54 = vpop.f32.mrf.mxu1  ;;  %v4318_v4 = vadd.f32 %v4317_v51, %v4195_v39 }
 0xf80   :  { %v6729_v7 = vpop.f32.mrf.mxu0 }
 0xf81   :  { %v6702_v30 = vpop.f32.mrf.mxu1 }
 0xf82   :  { %v4320_v15 = vpop.f32.mrf.mxu0 }
 0xf83   :  { %v4211_v29 = vpop.f32.mrf.mxu1  ;;  %v4321_v58 = vadd.f32 %v4320_v15, %v4198_v49 }
 0xf84   :  { %v6730_v36 = vpop.f32.mrf.mxu0 }
 0xf85   :  { %v6705_v45 = vpop.f32.mrf.mxu1 }
 0xf86   :  { %v4325_v6 = vpop.f32.mrf.mxu0 }
 0xf87   :  { %v4214_v63 = vpop.f32.mrf.mxu1  ;;  %v4326_v12 = vadd.f32 %v4325_v6, %v4203_v11 }
 0xf88   :  { %v6733_v13 = vpop.f32.mrf.mxu0 }
 0xf89   :  { %v6706_v3 = vpop.f32.mrf.mxu1 }
 0xf8a   :  { %v4328_v59 = vpop.f32.mrf.mxu0 }
 0xf8b   :  { %v4219_v62 = vpop.f32.mrf.mxu1  ;;  %v9778_v61 = vadd.f32 %v4328_v59, %v4206_v54 }
 0xf8c   :  { %v6734_v5 = vpop.f32.mrf.mxu0 }
 0xf8d   :  { %v6709_v18 = vpop.f32.mrf.mxu1 }
 0xf8e   :  { %v4333_v46 = vpop.f32.mrf.mxu0 }
 0xf8f   :  { %v4222_v52 = vpop.f32.mrf.mxu1  ;;  %v9780_v20 = vadd.f32 %v4333_v46, %v4211_v29 }
 0xf90   :  { %v6737_v38 = vpop.f32.mrf.mxu0 }
 0xf91   :  { %v6710_v50 = vpop.f32.mrf.mxu1 }
 0xf92   :  { %v4336_v33 = vpop.f32.mrf.mxu0 }
 0xf93   :  { %v4227_v26 = vpop.f32.mrf.mxu1  ;;  %v9782_v32 = vadd.f32 %v4336_v33, %v4214_v63 }
 0xf94   :  { %v6738_v8 = vpop.f32.mrf.mxu0 }
 0xf95   :  { %v6713_v41 = vpop.f32.mrf.mxu1 }
 0xf96   :  { %v4341_v16 = vpop.f32.mrf.mxu0 }
 0xf97   :  { %v9784_v55 = vpop.f32.mrf.mxu1  ;;  %v9786_v2 = vadd.f32 %v4341_v16, %v4219_v62 }
 0xf98   :  { %v6741_v22 = vpop.f32.mrf.mxu0 }
 0xf99   :  { %v6714_v35 = vpop.f32.mrf.mxu1 }
 0xf9a   :  { %v4344_v42 = vpop.f32.mrf.mxu0 }
 0xf9b   :  { %v4235_v19 = vpop.f32.mrf.mxu1  ;;  %v9788_v14 = vadd.f32 %v4344_v42, %v4222_v52 }
 0xf9c   :  { %v6742_v24 = vpop.f32.mrf.mxu0 }
 0xf9d   :  { %v6717_v43 = vpop.f32.mrf.mxu1 }
 0xf9e   :  { %v4349_v0 = vpop.f32.mrf.mxu0 }
 0xf9f   :  { %v4238_v23 = vpop.f32.mrf.mxu1  ;;  %v9790_v1 = vadd.f32 %v4349_v0, %v4227_v26 }
 0xfa0   :  { %v6745_v39 = vpop.f32.mrf.mxu0 }
 0xfa1   :  { %v6718_v44 = vpop.f32.mrf.mxu1 }
 0xfa2   :  { %v4352_v49 = vpop.f32.mrf.mxu0 }
 0xfa3   :  { %v4243_v21 = vpop.f32.mrf.mxu1 }
 0xfa4   :  { %v6746_v11 = vpop.f32.mrf.mxu0 }
 0xfa5   :  { %v6721_v56 = vpop.f32.mrf.mxu1 }
 0xfa6   :  { %v4357_v54 = vpop.f32.mrf.mxu0 }
 0xfa7   :  { %v4246_v47 = vpop.f32.mrf.mxu1 }
 0xfa8   :  { %v6749_v29 = vpop.f32.mrf.mxu0 }
 0xfa9   :  { %v6722_v27 = vpop.f32.mrf.mxu1 }
 0xfaa   :  { %v4360_v7 = vpop.f32.mrf.mxu0 }
 0xfab   :  { %v4439_v30 = vpop.f32.mrf.mxu1  ;;  %v4361_v29 = vadd.f32 %v4360_v7, %v4238_v23 }
 0xfac   :  { %v9792_v51 = vadd.f32 %v4439_v30, %v4318_v4  ;;  %v6750_v15 = vpop.f32.mrf.mxu0 }
 0xfad   :  { %v6761_v45 = vpop.f32.mrf.mxu1  ;;  %v5555_v15 = vld [vmem:[%s10252_s17] ss:$0 sm:$0xff] }
 0xfae   :  { %v4365_v6 = vpop.f32.mrf.mxu0 }
 0xfaf   :  { %v4442_v63 = vpop.f32.mrf.mxu1  ;;  %v4366_v11 = vadd.f32 %v4365_v6, %v4243_v21 }
 0xfb0   :  { %v9794_v3 = vadd.f32 %v4442_v63, %v4321_v58  ;;  %v6753_v13 = vpop.f32.mrf.mxu0 }
 0xfb1   :  { %v6762_v36 = vpop.f32.mrf.mxu1 }
 0xfb2   :  { %v4368_v52 = vpop.f32.mrf.mxu0 }
 0xfb3   :  { %v4447_v62 = vpop.f32.mrf.mxu1  ;;  %v4369_v27 = vadd.f32 %v4368_v52, %v4246_v47 }
 0xfb4   :  { %v9796_v18 = vadd.f32 %v4447_v62, %v4326_v12  ;;  %v6754_v50 = vpop.f32.mrf.mxu0  ;;  %v4358_v62 = vadd.f32 %v4357_v54, %v4235_v19 }
 0xfb5   :  { %v6765_v59 = vpop.f32.mrf.mxu1  ;;  %v4353_v50 = vadd.f32 %v4352_v49, %v9784_v55 }
 0xfb7   :  { %v4450_v5 = vpop.f32.mrf.mxu1 }
 0xfb9   :  { %v6766_v46 = vpop.f32.mrf.mxu1 }
 0xfbb   :  { %v4455_v26 = vpop.f32.mrf.mxu1 }
 0xfbd   :  { %v6769_v4 = vpop.f32.mrf.mxu1 }
 0xfbf   :  { %v4458_v38 = vpop.f32.mrf.mxu1 }
 0xfc1   :  { %v6770_v41 = vpop.f32.mrf.mxu1 }
 0xfc3   :  { %v4463_v33 = vpop.f32.mrf.mxu1 }
 0xfc4   :  { %v4500_v54 = vadd.f32 %v4463_v33, %v9786_v2  ;;  %v4497_v2 = vadd.f32 %v4450_v5, %v9778_v61  ;;  %v9851_v61 = vadd.f32 %v5555_v15, %v9796_v18  ;;  %v9856_v5 = vadd.f32 %v5555_v15, %v9794_v3  ;;  %v9869_v18 = vld [vmem:[%s10345_s21] sm:$0x7] }
 0xfc5   :  { %v6773_v8 = vpop.f32.mrf.mxu1  ;;  %v9876_v3 = vld [vmem:[%s10346_s28] sm:$0xff] }
 0xfc6   :  { %v9833_v52 = vadd.f32 %v5555_v15, %v4500_v54  ;;  %v5573_v54 = vld [vmem:[%s10253_s18] ss:$0 sm:$0xff] }
 0xfc7   :  { %v4466_v35 = vpop.f32.mrf.mxu1 }
 0xfc8   :  { %v4501_v55 = vadd.f32 %v4466_v35, %v9788_v14  ;;  %v4498_v14 = vadd.f32 %v4455_v26, %v9780_v20  ;;  %v9846_v20 = vadd.f32 %v5555_v15, %v4497_v2  ;;  %v9861_v26 = vadd.f32 %v5555_v15, %v9792_v51  ;;  %v7024_v2 = vld [vmem:[%s10346_s28 + $0x28] sm:$0xff] }
 0xfc9   :  { %v6774_v58 = vpop.f32.mrf.mxu1 }
 0xfca   :  { %v9828_v6 = vadd.f32 %v5555_v15, %v4501_v55 }
 0xfcb   :  { %v4471_v16 = vpop.f32.mrf.mxu1 }
 0xfcc   :  { %v4502_v19 = vadd.f32 %v4471_v16, %v9790_v1  ;;  %v4499_v1 = vadd.f32 %v4458_v38, %v9782_v32  ;;  %v9842_v32 = vadd.f32 %v5555_v15, %v4498_v14  ;;  %v7022_v14 = vld [vmem:[%s10346_s28 + $0x18] sm:$0xff] }
 0xfcd   :  { %v6777_v22 = vpop.f32.mrf.mxu1 }
 0xfce   :  { %v9823_v7 = vadd.f32 %v5555_v15, %v4502_v19  ;;  %v9838_v41 = vadd.f32 %v5555_v15, %v4499_v1 }
 0xfcf   :  { %v4474_v43 = vpop.f32.mrf.mxu1 }
 0xfd0   :  { %v4503_v23 = vadd.f32 %v4474_v43, %v4353_v50 }
 0xfd1   :  { %v6778_v42 = vpop.f32.mrf.mxu1 }
 0xfd2   :  { %v9818_v49 = vadd.f32 %v5555_v15, %v4503_v23 }
 0xfd3   :  { %v4479_v24 = vpop.f32.mrf.mxu1 }
 0xfd4   :  { %v4504_v46 = vadd.f32 %v4479_v24, %v4358_v62 }
 0xfd5   :  { %v6781_v12 = vpop.f32.mrf.mxu1 }
 0xfd6   :  { %v9813_v47 = vadd.f32 %v5555_v15, %v4504_v46 }
 0xfd7   :  { %v4482_v44 = vpop.f32.mrf.mxu1 }
 0xfd8   :  { %v4505_v13 = vadd.f32 %v4482_v44, %v4361_v29 }
 0xfd9   :  { %v6782_v0 = vpop.f32.mrf.mxu1 }
 0xfda   :  { %v9808_v21 = vadd.f32 %v5555_v15, %v4505_v13 }
 0xfdb   :  { %v4487_v39 = vpop.f32.mrf.mxu1 }
 0xfdc   :  { %v4506_v45 = vadd.f32 %v4487_v39, %v4366_v11 }
 0xfdd   :  { %v6785_v56 = vpop.f32.mrf.mxu1 }
 0xfde   :  { %v9804_v4 = vadd.f32 %v5555_v15, %v4506_v45 }
 0xfdf   :  { %v4490_v30 = vpop.f32.mrf.mxu1 }
 0xfe0   :  { %v4507_v63 = vadd.f32 %v4490_v30, %v4369_v27 }
 0xfe1   :  { %v6786_v36 = vpop.f32.mrf.mxu1 }
 0xfe2   :  { %v9801_v59 = vadd.f32 %v5555_v15, %v4507_v63 }
 0xfe4   :  { %6788 = vmatpush3.msra.mxu0 %v9801_v59 }
 0xfe5   :  { %6789 = vmatprep.subr.mxu0 %v10344_v37 }
 0xfe6   :  { %6790 = vmatpush3.msra.mxu0 %v9804_v4 }
 0xfe7   :  { %6791 = vmatprep.subr.mxu0 %v10344_v37 }
 0xfe8   :  { %6792 = vmatpush3.msra.mxu0 %v9808_v21 }
 0xfe9   :  { %6793 = vmatprep.subr.mxu0 %v10344_v37 }
 0xfea   :  { %6794 = vmatpush3.msra.mxu0 %v9813_v47 }
 0xfeb   :  { %6795 = vmatprep.subr.mxu0 %v10344_v37 }
 0xfec   :  { %6796 = vmatpush3.msra.mxu0 %v9818_v49 }
 0xfed   :  { %6797 = vmatprep.subr.mxu0 %v10344_v37 }
 0xfee   :  { %6798 = vmatpush3.msra.mxu0 %v9823_v7 }
 0xfef   :  { %6799 = vmatprep.subr.mxu0 %v10344_v37 }
 0xff0   :  { %6800 = vmatpush3.msra.mxu0 %v9828_v6 }
 0xff1   :  { %6801 = vmatprep.subr.mxu0 %v10344_v37 }
 0xff2   :  { %6802 = vmatpush3.msra.mxu0 %v9833_v52 }
 0xff3   :  { %6803 = vmatprep.subr.mxu0 %v10344_v37 }
 0xff4   :  { %6804 = vmatpush3.msra.mxu0 %v9838_v41 }
 0xff5   :  { %6805 = vmatprep.subr.mxu0 %v10344_v37 }
 0xff6   :  { %6806 = vmatpush3.msra.mxu0 %v9842_v32 }
 0xff7   :  { %6807 = vmatprep.subr.mxu0 %v10344_v37 }
 0xff8   :  { %6808 = vmatpush3.msra.mxu0 %v9846_v20 }
 0xff9   :  { %6809 = vmatprep.subr.mxu0 %v10344_v37 }
 0xffa   :  { %6810 = vmatpush3.msra.mxu0 %v9851_v61 }
 0xffb   :  { %6811 = vmatprep.subr.mxu0 %v10344_v37 }
 0xffc   :  { %6812 = vmatpush3.msra.mxu0 %v9856_v5 }
 0xffd   :  { %6813 = vmatprep.subr.mxu0 %v10344_v37 }
 0xffe   :  { %6814 = vmatpush3.msra.mxu0 %v9861_v26 }
 0xfff   :  { %6816 = vmatmul.mubr.msk.f32.vlgmr.msra.gmra.mxu0 %vm918_vm5, %v9869_v18 }
0x1000   :  { %6820 = vmatprep.mubr.msk.f32.mxu0 %vm992_vm6, %v9876_v3 }
0x10bf   :  { %v4596_v51 = vpop.f32.mrf.mxu0 }
0x10c0   :  { %6818 = vmatprep.subr.msk.mxu0 %vm1035_vm7, %v4596_v51 }
0x10c1   :  { %6819 = vmatpush3.msk.msra.mxu0 %vm1035_vm7, %v4596_v51  ;;  %v6817_v38 = vpop.f32.mrf.mxu0  ;;  %v10050_v51 = vld [vmem:[%s10254_s19] ss:$0 sm:$0xff] }
0x10c2   :  { %6821 = vmatmul.mubr.msk.f32.vlgmr.msra.gmra.mxu0 %vm992_vm6, %v9282_v60  ;;  %6841 = vmatprep.subr.mxu0 %v10344_v37  ;;  %v10427_v60 = vld [vmem:[#allocation48_spill] sm:$0xff] }
0x10c3   :  { %6823 = vmatprep.mubr.msk.f32.mxu0 %vm992_vm6, %v9290_v25 }
0x10c6   :  { %6824 = vmatmul.mubr.msk.f32.gmra.mxu0 %vm992_vm6, %v9297_v57 }
0x10c7   :  { %6826 = vmatprep.mubr.msk.f32.mxu0 %vm992_vm6, %v9304_v53 }
0x10ca   :  { %6827 = vmatmul.mubr.msk.f32.gmra.mxu0 %vm992_vm6, %v9311_v31 }
0x10cb   :  { %6829 = vmatprep.mubr.msk.f32.mxu0 %vm992_vm6, %v9318_v40 }
0x10ce   :  { %6830 = vmatmul.mubr.msk.f32.gmra.mxu0 %vm992_vm6, %v9325_v10 }
0x10cf   :  { %6832 = vmatprep.mubr.msk.f32.mxu0 %vm992_vm6, %v10427_v60 }
0x10d2   :  { %6833 = vmatmul.mubr.msk.f32.gmra.mxu0 %vm992_vm6, %v9339_v9 }
0x10d3   :  { %6835 = vmatprep.mubr.msk.f32.mxu0 %vm992_vm6, %v9346_v34 }
0x10d6   :  { %6836 = vmatmul.mubr.msk.f32.gmra.mxu0 %vm992_vm6, %v9353_v48 }
0x10d7   :  { %6838 = vmatprep.mubr.msk.f32.mxu0 %vm992_vm6, %v9360_v17 }
0x10da   :  { %6839 = vmatmul.mubr.msk.f32.gmra.mxu0 %vm992_vm6, %v9367_v28 }
0x10db   :  { %6869 = vmatprep.mubr.msk.f32.mxu0 %vm7059_vm0, %v10344_v37 }
0x1182   :  { %v6822_v10 = vpop.f32.mrf.mxu0 }
0x1183   :  { %v4739_v50 = vsub.f32 %v9856_v5, %v6822_v10  ;;  %v7029_v5 = vld [vmem:[%s10346_s28 + $0x50] sm:$0xff] }
0x1184   :  { %v4669_v40 = vpop.f32.mrf.mxu0 }
0x1186   :  { %v6825_v31 = vpop.f32.mrf.mxu0 }
0x1187   :  { %v9965_v36 = vsub.f32 %v9846_v20, %v6825_v31  ;;  %v7027_v20 = vld [vmem:[%s10346_s28 + $0x40] sm:$0xff] }
0x1188   :  { %v4679_v25 = vpop.f32.mrf.mxu0 }
0x1189   :  { %v9971_v13 = vsub.f32 %v9851_v61, %v4679_v25  ;;  %v4755_v46 = vmul.f32 %v9965_v36, %v9965_v36  ;;  %v7028_v61 = vld [vmem:[%s10346_s28 + $0x48] sm:$0xff] }
0x118a   :  { %v6828_v9 = vpop.f32.mrf.mxu0 }
0x118b   :  { %v9953_v29 = vsub.f32 %v9838_v41, %v6828_v9  ;;  %v4754_v23 = vmul.f32 %v9971_v13, %v9971_v13  ;;  %v7025_v41 = vld [vmem:[%s10346_s28 + $0x30] sm:$0xff]  ;;  %v10056_v9 = vld [vmem:[%s10255_s20] ss:$0 sm:$0xff] }
0x118c   :  { %v4689_v57 = vpop.f32.mrf.mxu0 }
0x118d   :  { %v9959_v63 = vsub.f32 %v9842_v32, %v4689_v57  ;;  %v4757_v62 = vmul.f32 %v9953_v29, %v9953_v29  ;;  %v7026_v32 = vld [vmem:[%s10346_s28 + $0x38] sm:$0xff] }
0x118e   :  { %v6831_v53 = vpop.f32.mrf.mxu0 }
0x118f   :  { %v9941_v56 = vsub.f32 %v9828_v6, %v6831_v53  ;;  %v7021_v6 = vld [vmem:[%s10346_s28 + $0x10] sm:$0xff] }
0x1190   :  { %v4699_v34 = vpop.f32.mrf.mxu0 }
0x1191   :  { %v9947_v27 = vsub.f32 %v9833_v52, %v4699_v34  ;;  %v4759_v45 = vmul.f32 %v9941_v56, %v9941_v56  ;;  %v7023_v52 = vld [vmem:[%s10346_s28 + $0x20] sm:$0xff] }
0x1192   :  { %v6834_v33 = vpop.f32.mrf.mxu0 }
0x1193   :  { %v9929_v12 = vsub.f32 %v9818_v49, %v6834_v33  ;;  %v4758_v15 = vmul.f32 %v9947_v27, %v9947_v27 }
0x1194   :  { %v4709_v8 = vpop.f32.mrf.mxu0 }
0x1195   :  { %v9935_v0 = vsub.f32 %v9823_v7, %v4709_v8  ;;  %v4761_v11 = vmul.f32 %v9929_v12, %v9929_v12 }
0x1196   :  { %v6837_v48 = vpop.f32.mrf.mxu0 }
0x1197   :  { %v9915_v16 = vsub.f32 %v9808_v21, %v6837_v48  ;;  %v4760_v30 = vmul.f32 %v9935_v0, %v9935_v0  ;;  %v4753_v21 = vmul.f32 %v4739_v50, %v4739_v50 }
0x1198   :  { %v4719_v35 = vpop.f32.mrf.mxu0 }
0x1199   :  { %v9923_v42 = vsub.f32 %v9813_v47, %v4719_v35  ;;  %v4763_v44 = vmul.f32 %v9915_v16, %v9915_v16 }
0x119a   :  { %v6840_v58 = vpop.f32.mrf.mxu0 }
0x119b   :  { %v9912_v17 = vsub.f32 %v9801_v59, %v6840_v58  ;;  %v4762_v39 = vmul.f32 %v9923_v42, %v9923_v42  ;;  %v4756_v59 = vmul.f32 %v9959_v63, %v9959_v63 }
0x119c   :  { %v4729_v28 = vpop.f32.mrf.mxu0 }
0x119d   :  { %v4765_v22 = vmul.f32 %v9912_v17, %v9912_v17  ;;  %v9920_v43 = vsub.f32 %v9804_v4, %v4729_v28  ;;  %v4738_v4 = vsub.f32 %v9861_v26, %v4669_v40  ;;  %v7030_v26 = vld [vmem:[%s10346_s28 + $0x58] sm:$0xff] }
0x119f   :  { %v4764_v24 = vmul.f32 %v9920_v43, %v9920_v43  ;;  %6842 = vmatpush3.msra.mxu0 %v4765_v22  ;;  %v4752_v19 = vmul.f32 %v4738_v4, %v4738_v4 }
0x11a0   :  { %6843 = vmatprep.subr.mxu0 %v10344_v37 }
0x11a1   :  { %6844 = vmatpush3.msra.mxu0 %v4764_v24 }
0x11a2   :  { %6845 = vmatprep.subr.mxu0 %v10344_v37 }
0x11a3   :  { %6846 = vmatpush3.msra.mxu0 %v4763_v44 }
0x11a4   :  { %6847 = vmatprep.subr.mxu0 %v10344_v37 }
0x11a5   :  { %6848 = vmatpush3.msra.mxu0 %v4762_v39 }
0x11a6   :  { %6849 = vmatprep.subr.mxu0 %v10344_v37 }
0x11a7   :  { %6850 = vmatpush3.msra.mxu0 %v4761_v11 }
0x11a8   :  { %6851 = vmatprep.subr.mxu0 %v10344_v37 }
0x11a9   :  { %6852 = vmatpush3.msra.mxu0 %v4760_v30 }
0x11aa   :  { %6853 = vmatprep.subr.mxu0 %v10344_v37 }
0x11ab   :  { %6854 = vmatpush3.msra.mxu0 %v4759_v45 }
0x11ac   :  { %6855 = vmatprep.subr.mxu0 %v10344_v37 }
0x11ad   :  { %6856 = vmatpush3.msra.mxu0 %v4758_v15 }
0x11ae   :  { %6857 = vmatprep.subr.mxu0 %v10344_v37 }
0x11af   :  { %6858 = vmatpush3.msra.mxu0 %v4757_v62 }
0x11b0   :  { %6859 = vmatprep.subr.mxu0 %v10344_v37 }
0x11b1   :  { %6860 = vmatpush3.msra.mxu0 %v4756_v59 }
0x11b2   :  { %6861 = vmatprep.subr.mxu0 %v10344_v37 }
0x11b3   :  { %6862 = vmatpush3.msra.mxu0 %v4755_v46 }
0x11b4   :  { %6863 = vmatprep.subr.mxu0 %v10344_v37 }
0x11b5   :  { %6864 = vmatpush3.msra.mxu0 %v4754_v23 }
0x11b6   :  { %6865 = vmatprep.subr.mxu0 %v10344_v37 }
0x11b7   :  { %6866 = vmatpush3.msra.mxu0 %v4753_v21 }
0x11b8   :  { %6867 = vmatprep.subr.mxu0 %v10344_v37  ;;  %v7020_v37 = vld [vmem:[%s10346_s28 + $0x8] sm:$0xff] }
0x11b9   :  { %6868 = vmatpush3.msra.mxu0 %v4752_v19 }
0x11ba   :  { %6870 = vmatmul.mubr.msk.f32.vlgmr.msra.gmra.mxu0 %vm918_vm5, %v9869_v18  ;;  %v7031_v18 = vld [vmem:[%s10346_s28 + $0x60] sm:$0xff] }
0x11bb   :  { %6874 = vmatprep.mubr.msk.f32.mxu0 %vm992_vm6, %v9876_v3  ;;  %v7032_v3 = vld [vmem:[%s10346_s28 + $0x68] sm:$0xff] }
0x127a   :  { %v4832_v47 = vpop.f32.mrf.mxu0 }
0x127b   :  { %v4833_v55 = vadd.f32 1e-05, %v4832_v47 }
0x127c   :  { %v6871_v49 = vpop.f32.mrf.mxu0 }
0x127d   :  { %6966 = vrsqrt.f32 %v4833_v55 }
0x128a   :  { %v6967_v7 = vpop.eup %6966 }
0x128b   :  { %v4843_v1 = vmul.f32 %v6967_v7, %v5573_v54 }
0x128d   :  { %6872 = vmatprep.subr.msk.mxu0 %vm1035_vm7, %v4843_v1 }
0x128e   :  { %6873 = vmatpush3.msk.msra.mxu0 %vm1035_vm7, %v4843_v1 }
0x128f   :  { %6875 = vmatmul.mubr.msk.f32.vlgmr.msra.gmra.mxu0 %vm992_vm6, %v7020_v37 }
0x1290   :  { %6877 = vmatprep.mubr.msk.f32.mxu0 %vm992_vm6, %v7021_v6 }
0x1293   :  { %6878 = vmatmul.mubr.msk.f32.gmra.mxu0 %vm992_vm6, %v7022_v14 }
0x1294   :  { %6880 = vmatprep.mubr.msk.f32.mxu0 %vm992_vm6, %v7023_v52 }
0x1297   :  { %6881 = vmatmul.mubr.msk.f32.gmra.mxu0 %vm992_vm6, %v7024_v2 }
0x1298   :  { %6883 = vmatprep.mubr.msk.f32.mxu0 %vm992_vm6, %v7025_v41 }
0x129b   :  { %6884 = vmatmul.mubr.msk.f32.gmra.mxu0 %vm992_vm6, %v7026_v32 }
0x129c   :  { %6886 = vmatprep.mubr.msk.f32.mxu0 %vm992_vm6, %v7027_v20 }
0x129f   :  { %6887 = vmatmul.mubr.msk.f32.gmra.mxu0 %vm992_vm6, %v7028_v61 }
0x12a0   :  { %6889 = vmatprep.mubr.msk.f32.mxu0 %vm992_vm6, %v7029_v5 }
0x12a3   :  { %6890 = vmatmul.mubr.msk.f32.gmra.mxu0 %vm992_vm6, %v7030_v26 }
0x12a4   :  { %6892 = vmatprep.mubr.msk.f32.mxu0 %vm992_vm6, %v7031_v18 }
0x12a7   :  { %6893 = vmatmul.mubr.msk.f32.gmra.mxu0 %vm992_vm6, %v7032_v3 }
0x134f   :  { %v6876_v38 = vpop.f32.mrf.mxu0 }
0x1350   :  { %v4983_v60 = vmul.f32 %v6876_v38, %v4739_v50 }
0x1351   :  { %v4913_v10 = vpop.f32.mrf.mxu0 }
0x1352   :  { %v5003_v40 = vadd.f32 %v10050_v51, %v4983_v60  ;;  %v4982_v31 = vmul.f32 %v4913_v10, %v4738_v4 }
0x1353   :  { %v6879_v25 = vpop.f32.mrf.mxu0 }
0x1354   :  { %v5017_v57 = vmax.f32 %v5003_v40, 0.0  ;;  %v5002_v53 = vadd.f32 %v10050_v51, %v4982_v31  ;;  %v4985_v34 = vmul.f32 %v6879_v25, %v9965_v36 }
0x1355   :  { %v4923_v33 = vpop.f32.mrf.mxu0 }
0x1356   :  { %v5016_v8 = vmax.f32 %v5002_v53, 0.0  ;;  %v5005_v48 = vadd.f32 %v10050_v51, %v4985_v34  ;;  %v4984_v35 = vmul.f32 %v4923_v33, %v9971_v13  ;;  %v5038_v58 = vmul.f32 %v10056_v9, %v5017_v57 }
0x1357   :  { %v6882_v28 = vpop.f32.mrf.mxu0 }
0x1358   :  { %v5019_v22 = vmax.f32 %v5005_v48, 0.0  ;;  %v5004_v24 = vadd.f32 %v10050_v51, %v4984_v35  ;;  %v4987_v44 = vmul.f32 %v6882_v28, %v9953_v29  ;;  %v5055_v39 = vsel %vm5051_vm11, %v5038_v58, 0.0 }
0x1359   :  { %5056 = vadd.xlane.f32.xlu1 %v5055_v39  ;;  %v4933_v11 = vpop.f32.mrf.mxu0  ;;  %v5037_v30 = vmul.f32 %v10056_v9, %v5016_v8 }
0x135a   :  { %v4986_v45 = vmul.f32 %v4933_v11, %v9959_v63  ;;  %v5018_v15 = vmax.f32 %v5004_v24, 0.0  ;;  %v5007_v36 = vadd.f32 %v10050_v51, %v4987_v44  ;;  %v5040_v59 = vmul.f32 %v10056_v9, %v5019_v22 }
0x135b   :  { %v5052_v62 = vsel %vm5051_vm11, %v5037_v30, 0.0  ;;  %v6885_v13 = vpop.f32.mrf.mxu0 }
0x135c   :  { %v5006_v50 = vadd.f32 %v10050_v51, %v4986_v45  ;;  %5053 = vadd.xlane.f32.xlu0 %v5052_v62  ;;  %v4989_v29 = vmul.f32 %v6885_v13, %v9941_v56  ;;  %v5021_v21 = vmax.f32 %v5007_v36, 0.0  ;;  %v5061_v19 = vsel %vm5051_vm11, %v5040_v59, 0.0  ;;  %v10428_v45 = vld [vmem:[#allocation31_spill] sm:$0xff]  ;;  %v10430_v36 = vld [vmem:[#allocation37_spill] sm:$0xff] }
0x135d   :  { %v4943_v46 = vpop.f32.mrf.mxu0  ;;  %v5039_v55 = vmul.f32 %v10056_v9, %v5018_v15  ;;  %v10429_v15 = vld [vmem:[#allocation33_spill] sm:$0xff]  ;;  %v10432_v13 = vld [vmem:[#allocation27_spill] sm:$0xff] }
0x135e   :  { %v5020_v4 = vmax.f32 %v5006_v50, 0.0  ;;  %v4988_v23 = vmul.f32 %v4943_v46, %v9947_v27  ;;  %v5009_v63 = vadd.f32 %v10050_v51, %v4989_v29  ;;  %v5042_v41 = vmul.f32 %v10056_v9, %v5021_v21  ;;  %v10431_v62 = vld [vmem:[#allocation25_spill] sm:$0xff]  ;;  %v10434_v50 = vld [vmem:[#allocation35_spill] sm:$0xff]  ;;  %v10435_v29 = vld [vmem:[#allocation36_spill] sm:$0xff] }
0x135f   :  { %v6888_v47 = vpop.f32.mrf.mxu0  ;;  %v5058_v52 = vsel %vm5051_vm11, %v5039_v55, 0.0  ;;  %v10433_v59 = vld [vmem:[#allocation29_spill] sm:$0xff]  ;;  %v5591_v46 = vld [vmem:[#allocation2] ss:$0 sm:$0xff] }
0x1360   :  { %v5008_v49 = vadd.f32 %v10050_v51, %v4988_v23  ;;  %5062 = vadd.xlane.f32.xlu0 %v5061_v19  ;;  %v4991_v54 = vmul.f32 %v6888_v47, %v9929_v12  ;;  %v5041_v7 = vmul.f32 %v10056_v9, %v5020_v4  ;;  %v5023_v6 = vmax.f32 %v5009_v63, 0.0  ;;  %v3260_v4 = vpop.permute.xlu0 %3259 }
0x1361   :  { %v4953_v56 = vpop.f32.mrf.mxu0  ;;  %v5067_v38 = vsel %vm5051_vm11, %v5042_v41, 0.0 }
0x1362   :  { %v5022_v1 = vmax.f32 %v5008_v49, 0.0  ;;  %v4990_v37 = vmul.f32 %v4953_v56, %v9935_v0  ;;  %v5064_v27 = vsel %vm5051_vm11, %v5041_v7, 0.0  ;;  %v5011_v14 = vadd.f32 %v10050_v51, %v4991_v54 }
0x1363   :  { %5065 = vadd.xlane.f32.xlu1 %v5064_v27  ;;  %v6891_v2 = vpop.f32.mrf.mxu0  ;;  %v5044_v10 = vmul.f32 %v10056_v9, %v5023_v6 }
0x1364   :  { %v5010_v32 = vadd.f32 %v10050_v51, %v4990_v37  ;;  %5059 = vadd.xlane.f32.xlu0 %v5058_v52  ;;  %v4993_v12 = vmul.f32 %v6891_v2, %v9915_v16  ;;  %v5043_v20 = vmul.f32 %v10056_v9, %v5022_v1  ;;  %v5025_v18 = vmax.f32 %v5011_v14, 0.0 }
0x1365   :  { %v4963_v61 = vpop.f32.mrf.mxu0  ;;  %v5073_v8 = vsel %vm5051_vm11, %v5044_v10, 0.0  ;;  %v7033_v10 = vld [vmem:[%s10246_s11] ss:$0 sm:$0xff]  ;;  %s7060_s11 = smov [#allocation3]  }
0x1366   :  { %v5024_v0 = vmax.f32 %v5010_v32, 0.0  ;;  %v4992_v5 = vmul.f32 %v4963_v61, %v9923_v42  ;;  %v5070_v26 = vsel %vm5051_vm11, %v5043_v20, 0.0  ;;  %v5013_v3 = vadd.f32 %v10050_v51, %v4993_v12  ;;  %s5219_s28 = sshll.u32 %s7060_s11, 4  ;;  %s5220_s28 = int_to_ptr.vmem [resolvable:$true] %s5219_s28 }
0x1367   :  { %5071 = vadd.xlane.f32.xlu1 %v5070_v26  ;;  %v6894_v60 = vpop.f32.mrf.mxu0  ;;  %v5046_v48 = vmul.f32 %v10056_v9, %v5025_v18  ;;  %s7034_s4 = scalar_lea.vmem %s5220_s28, 1792  ;;  %p7039_p1 = scmp.lt.s32.totalorder %s5220_s28, %s5220_s28 }
0x1368   :  { %v5012_v40 = vadd.f32 %v10050_v51, %v4992_v5  ;;  %5068 = vadd.xlane.f32.xlu0 %v5067_v38  ;;  %v4995_v16 = vmul.f32 %v6894_v60, %v9912_v17  ;;  %v5045_v31 = vmul.f32 %v10056_v9, %v5024_v0  ;;  %v5027_v34 = vmax.f32 %v5013_v3, 0.0  ;;  %p7035_p0 = scmp.ne.s32.totalorder %s5220_s28, %s7034_s4  ;;  %p7040_p2 = scmp.lt.s32.totalorder %s7034_s4, %s7034_s4 }
0x1369   :  { %v4973_v25 = vpop.f32.mrf.mxu0 }
0x136a   :  { %v5026_v42 = vmax.f32 %v5012_v40, 0.0  ;;  %v4994_v57 = vmul.f32 %v4973_v25, %v9920_v43  ;;  %v5076_v53 = vsel %vm5051_vm11, %v5045_v31, 0.0  ;;  %v5015_v33 = vadd.f32 %v10050_v51, %v4995_v16  ;;  %v10436_v40 = vld [vmem:[#allocation15_spill] sm:$0xff]  ;;  %p7041_p3 = por %p7040_p2, %p7039_p1 }
0x136b   :  { %5077 = vadd.xlane.f32.xlu1 %v5076_v53  ;;  %v5079_v43 = vsel %vm5051_vm11, %v5046_v48, 0.0  ;;  %v5048_v24 = vmul.f32 %v10056_v9, %v5027_v34  ;;  %v3095_v16 = vadd.f32 %v7033_v10, %v10436_v40  ;;  %v10451_v40 = vld [vmem:[#allocation45_spill] sm:$0xff] }
0x136c   :  { %v5014_v35 = vadd.f32 %v10050_v51, %v4994_v57  ;;  %5074 = vadd.xlane.f32.xlu0 %v5073_v8  ;;  %v5047_v17 = vmul.f32 %v10056_v9, %v5026_v42  ;;  %v5029_v22 = vmax.f32 %v5015_v33, 0.0  ;;  %v10437_v57 = vld [vmem:[#allocation16_spill] sm:$0xff]  ;;  %p7042_p4 = pnand %p7041_p3, %p7035_p0 }
0x136d   :  { %v5085_v11 = vsel %vm5051_vm11, %v5048_v24, 0.0  ;;  %v3323_v31 = vmul.f32 %v3260_v4, %v3095_v16  ;;  %v3097_v53 = vadd.f32 %v7033_v10, %v10437_v57 }
0x136e   :  { %v5028_v58 = vmax.f32 %v5014_v35, 0.0  ;;  %v5082_v28 = vsel %vm5051_vm11, %v5047_v17, 0.0  ;;  %v5050_v51 = vmul.f32 %v10056_v9, %v5029_v22  ;;  %v10438_v35 = vld [vmem:[#allocation19_spill] sm:$0xff] }
0x136f   :  { %5083 = vadd.xlane.f32.xlu1 %v5082_v28  ;;  %v3338_v42 = vmul.f32 1.442695, %v3323_v31  ;;  %v3099_v17 = vadd.f32 %v7033_v10, %v10438_v35 }
0x1370   :  { %5080 = vadd.xlane.f32.xlu0 %v5079_v43  ;;  %v5049_v44 = vmul.f32 %v10056_v9, %v5028_v58  ;;  %v5091_v30 = vsel %vm5051_vm11, %v5050_v51, 0.0  ;;  %v10119_v9 = vpop.permute.xlu1 %3294  ;;  %v10439_v43 = vld [vmem:[#allocation23_spill] sm:$0xff] }
0x1371   :  { %6968 = vpow2.f32 %v3338_v42  ;;  %v10128_v24 = vadd.f32 %v7033_v10, %v10439_v43 }
0x1372   :  { %v5088_v39 = vsel %vm5051_vm11, %v5049_v44, 0.0 }
0x1373   :  { %5089 = vadd.xlane.f32.xlu1 %v5088_v39 }
0x1374   :  { %5086 = vadd.xlane.f32.xlu0 %v5085_v11  ;;  %v10440_v11 = vld [vmem:[#allocation24_spill] sm:$0xff] }
0x1375   :  { %v10132_v51 = vadd.f32 %v7033_v10, %v10440_v11  ;;  %v10457_v11 = vld [vmem:[#allocation47_spill] sm:$0xff] }
0x1378   :  { %5092 = vadd.xlane.f32.xlu0 %v5091_v30 }
0x1384   :  { %3299 = vperm.xlu1 %6905, %v10428_v45   ;;  %v6969_v45 = vpop.eup %6968 }
0x1388   :  { %3309 = vperm.xlu1 %6905, %v10429_v15   ;;  %v10441_v15 = vld [vmem:[#allocation26_spill] sm:$0xff] }
0x138c   :  { %3314 = vperm.xlu1 %6905, %v10430_v36   ;;  %v10135_v36 = vadd.f32 %v7033_v10, %v10441_v15 }
0x138e   :  { %3269 = vperm.xlu0 %6904, %v10431_v62   ;;  %v3330_v62 = vmul.f32 %v10119_v9, %v10132_v51 }
0x1392   :  { %3279 = vperm.xlu0 %6904, %v10432_v13   ;;  %v10442_v13 = vld [vmem:[#allocation42_spill] sm:$0xff] }
0x1393   :  { %vm5115_vm12 = vcmp.eq.s32.totalorder %v10442_v13, 5 }
0x1396   :  { %3289 = vperm.xlu0 %6904, %v10433_v59  }
0x139a   :  { %3304 = vperm.xlu0 %6904, %v10434_v50  }
0x139e   :  { %3319 = vperm.xlu0 %6904, %v10435_v29  }
0x13e2   :  { %v5057_v23 = vpop.xlane.xlu1 %5056 }
0x13e3   :  { %v5102_v21 = vadd.f32 %v5591_v46, %v5057_v23 }
0x13e5   :  { %v5054_v63 = vpop.xlane.xlu0 %5053  ;;  %5123 = vperm.xlu0 %6904, %v5102_v21   ;;  %v3365_v21 = vsel %vm9251_vm10, %v6969_v45, %v3095_v16  ;;  %v10452_v16 = vld [vmem:[#allocation39_spill] sm:$0xff] }
0x13e6   :  { %v5101_v19 = vadd.f32 %v5591_v46, %v5054_v63  ;;  %v10453_v31 = vsel %vm9251_vm10, %v10451_v40, %v10452_v16 }
0x13e8   :  { %5118 = vperm.xlu1 %6905, %v5101_v19   ;;  %v10445_v19 = vld [vmem:[#allocation28_spill] sm:$0xff] }
0x13e9   :  { %v5063_v47 = vpop.xlane.xlu0 %5062 }
0x13ea   :  { %v5104_v55 = vadd.f32 %v5591_v46, %v5063_v47  ;;  %v10147_v47 = vadd.f32 %v7033_v10, %v10445_v19 }
0x13ec   :  { %5133 = vperm.xlu0 %6904, %v5104_v55   ;;  %v5066_v49 = vpop.xlane.xlu1 %5065  ;;  %v3352_v55 = vmul.f32 1.442695, %v3330_v62 }
0x13ed   :  { %v5060_v54 = vpop.xlane.xlu0 %5059  ;;  %v5105_v37 = vadd.f32 %v5591_v46, %v5066_v49 }
0x13ee   :  { %v5103_v7 = vadd.f32 %v5591_v46, %v5060_v54 }
0x13f0   :  { %5128 = vperm.xlu1 %6905, %v5103_v7   ;;  %v5072_v56 = vpop.xlane.xlu1 %5071 }
0x13f1   :  { %v5069_v1 = vpop.xlane.xlu0 %5068  ;;  %v5107_v52 = vadd.f32 %v5591_v46, %v5072_v56 }
0x13f2   :  { %v5106_v27 = vadd.f32 %v5591_v46, %v5069_v1 }
0x13f4   :  { %5143 = vperm.xlu0 %6904, %v5106_v27   ;;  %5138 = vperm.xlu1 %6905, %v5105_v37   ;;  %v5078_v6 = vpop.xlane.xlu1 %5077  ;;  %v10446_v37 = vld [vmem:[#allocation32_spill] sm:$0xff] }
0x13f5   :  { %v5075_v14 = vpop.xlane.xlu0 %5074  ;;  %v5109_v12 = vadd.f32 %v5591_v46, %v5078_v6  ;;  %v10154_v27 = vadd.f32 %v7033_v10, %v10446_v37  ;;  %v10447_v6 = vld [vmem:[#allocation43_spill] sm:$0xff] }
0x13f6   :  { %v5108_v2 = vadd.f32 %v5591_v46, %v5075_v14  ;;  %v10448_v14 = vld [vmem:[#allocation38_spill] sm:$0xff] }
0x13f8   :  { %5153 = vperm.xlu0 %6904, %v5108_v2   ;;  %5148 = vperm.xlu1 %6905, %v5107_v52   ;;  %v5084_v32 = vpop.xlane.xlu1 %5083  ;;  %v10449_v52 = vsel %vm9251_vm10, %v10447_v6, %v10448_v14 }
0x13f9   :  { %v5081_v41 = vpop.xlane.xlu0 %5080  ;;  %v5111_v0 = vadd.f32 %v5591_v46, %v5084_v32 }
0x13fa   :  { %v5110_v20 = vadd.f32 %v5591_v46, %v5081_v41  ;;  %v10450_v41 = vld [vmem:[#allocation34_spill] sm:$0xff] }
0x13fb   :  { %v10164_v32 = vadd.f32 %v7033_v10, %v10450_v41 }
0x13fc   :  { %5163 = vperm.xlu0 %6904, %v5110_v20   ;;  %5158 = vperm.xlu1 %6905, %v5109_v12   ;;  %v5090_v26 = vpop.xlane.xlu1 %5089 }
0x13fd   :  { %v5087_v61 = vpop.xlane.xlu0 %5086  ;;  %v5113_v3 = vadd.f32 %v5591_v46, %v5090_v26 }
0x13fe   :  { %v5112_v5 = vadd.f32 %v5591_v46, %v5087_v61 }
0x1400   :  { %5173 = vperm.xlu0 %6904, %v5112_v5   ;;  %5168 = vperm.xlu1 %6905, %v5111_v0   ;;  %v3300_v8 = vpop.permute.xlu1 %3299 }
0x1401   :  { %v5093_v18 = vpop.xlane.xlu0 %5092  ;;  %v3331_v59 = vmul.f32 %v3300_v8, %v10135_v36  ;;  %v10454_v8 = vld [vmem:[#allocation46_spill] sm:$0xff] }
0x1402   :  { %v5114_v38 = vadd.f32 %v5591_v46, %v5093_v18  ;;  %v10443_v46 = vld [vmem:[#allocation30_spill] sm:$0xff] }
0x1403   :  { %v10142_v4 = vadd.f32 %v7033_v10, %v10443_v46  ;;  %v3354_v54 = vmul.f32 1.442695, %v3331_v59 }
0x1404   :  { %5183 = vperm.xlu0 %6904, %v5114_v38   ;;  %5178 = vperm.xlu1 %6905, %v5113_v3   ;;  %v3310_v22 = vpop.permute.xlu1 %3309 }
0x1405   :  { %v3333_v49 = vmul.f32 %v3310_v22, %v10142_v4 }
0x1407   :  { %v3358_v12 = vmul.f32 1.442695, %v3333_v49 }
0x1408   :  { %v3315_v50 = vpop.permute.xlu1 %3314 }
0x1409   :  { %v3270_v60 = vpop.permute.xlu0 %3269  ;;  %v3334_v20 = vmul.f32 %v3315_v50, %v10154_v27 }
0x140a   :  { %v3325_v34 = vmul.f32 %v3270_v60, %v3097_v53 }
0x140b   :  { %v3360_v3 = vmul.f32 1.442695, %v3334_v20 }
0x140c   :  { %v3342_v48 = vmul.f32 1.442695, %v3325_v34 }
0x140d   :  { %v3280_v25 = vpop.permute.xlu0 %3279 }
0x140e   :  { %6970 = vpow2.f32 %v3342_v48  ;;  %v3327_v28 = vmul.f32 %v3280_v25, %v3099_v17  ;;  %v10455_v48 = vld [vmem:[#allocation40_spill] sm:$0xff] }
0x140f   :  { %v10456_v35 = vsel %vm9251_vm10, %v10454_v8, %v10455_v48 }
0x1410   :  { %v3346_v44 = vmul.f32 1.442695, %v3327_v28 }
0x1411   :  { %v3290_v33 = vpop.permute.xlu0 %3289 }
0x1412   :  { %v3329_v39 = vmul.f32 %v3290_v33, %v10128_v24  ;;  %6972 = vpow2.f32 %v3346_v44 }
0x1414   :  { %v3350_v29 = vmul.f32 1.442695, %v3329_v39 }
0x1415   :  { %v3305_v58 = vpop.permute.xlu0 %3304 }
0x1416   :  { %6974 = vpow2.f32 %v3350_v29  ;;  %v3332_v7 = vmul.f32 %v3305_v58, %v10147_v47 }
0x1417   :  { %6976 = vpow2.f32 %v3352_v55 }
0x1418   :  { %6978 = vpow2.f32 %v3354_v54  ;;  %v3356_v61 = vmul.f32 1.442695, %v3332_v7 }
0x1419   :  { %v3320_v30 = vpop.permute.xlu0 %3319  ;;  %6980 = vpow2.f32 %v3358_v12 }
0x141a   :  { %v3335_v0 = vmul.f32 %v3320_v30, %v10164_v32  ;;  %6982 = vpow2.f32 %v3356_v61  ;;  %v10458_v30 = vld [vmem:[#allocation41_spill] sm:$0xff] }
0x141b   :  { %v6971_v1 = vpop.eup %6970  ;;  %6984 = vpow2.f32 %v3360_v3  ;;  %v10459_v45 = vsel %vm9251_vm10, %v10457_v11, %v10458_v30 }
0x141c   :  { %v3367_v5 = vsel %vm9251_vm10, %v6971_v1, %v3097_v53  ;;  %v3362_v38 = vmul.f32 1.442695, %v3335_v0 }
0x141e   :  { %6986 = vpow2.f32 %v3362_v38 }
0x141f   :  { %v6973_v10 = vpop.eup %6972 }
0x1420   :  { %v3369_v42 = vsel %vm9251_vm10, %v6973_v10, %v3099_v17 }
0x1423   :  { %v6975_v34 = vpop.eup %6974 }
0x1424   :  { %v6977_v28 = vpop.eup %6976  ;;  %v3371_v17 = vsel %vm9251_vm10, %v6975_v34, %v10128_v24 }
0x1425   :  { %v6979_v44 = vpop.eup %6978  ;;  %v3372_v50 = vsel %vm9251_vm10, %v6977_v28, %v10132_v51 }
0x1426   :  { %v6981_v62 = vpop.eup %6980  ;;  %v3373_v24 = vsel %vm9251_vm10, %v6979_v44, %v10135_v36 }
0x1427   :  { %v6983_v46 = vpop.eup %6982  ;;  %v3375_v36 = vsel %vm9251_vm10, %v6981_v62, %v10142_v4 }
0x1428   :  { %v6985_v19 = vpop.eup %6984  ;;  %v3374_v51 = vsel %vm9251_vm10, %v6983_v46, %v10147_v47 }
0x1429   :  { %v3376_v47 = vsel %vm9251_vm10, %v6985_v19, %v10154_v27 }
0x142b   :  { %v6987_v49 = vpop.eup %6986 }
0x142c   :  { %v3377_v4 = vsel %vm9251_vm10, %v6987_v49, %v10164_v32 }
0x1460   :  { %v5124_v63 = vpop.permute.xlu0 %5123 }
0x1461   :  { %v5187_v9 = vsel %vm5115_vm12, %v5124_v63, %v3365_v21 }
0x1462   :  { %5201 = vst [vmem:[#allocation3 + $0x8] sm:$0xff] %v5187_v9 }
0x1463   :  { %v5119_v56 = vpop.permute.xlu1 %5118 }
0x1464   :  { %v5186_v2 = vsel %vm5115_vm12, %v5119_v56, %v10449_v52 }
0x1465   :  { %5200 = vst [vmem:[#allocation3] sm:$0xff] %v5186_v2 }
0x1467   :  { %v5134_v26 = vpop.permute.xlu0 %5133 }
0x1468   :  { %v5189_v18 = vsel %vm5115_vm12, %v5134_v26, %v3367_v5 }
0x1469   :  { %5203 = vst [vmem:[#allocation3 + $0x18] sm:$0xff] %v5189_v18 }
0x146b   :  { %v5129_v60 = vpop.permute.xlu1 %5128 }
0x146c   :  { %v5188_v25 = vsel %vm5115_vm12, %v5129_v60, %v10453_v31 }
0x146d   :  { %5202 = vst [vmem:[#allocation3 + $0x10] sm:$0xff] %v5188_v25 }
0x146f   :  { %v5144_v57 = vpop.permute.xlu0 %5143  ;;  %v5139_v53 = vpop.permute.xlu1 %5138 }
0x1470   :  { %v5191_v33 = vsel %vm5115_vm12, %v5144_v57, %v3369_v42  ;;  %v5190_v58 = vsel %vm5115_vm12, %v5139_v53, %v10456_v35 }
0x1471   :  { %5205 = vst [vmem:[#allocation3 + $0x28] sm:$0xff] %v5191_v33  ;;  %5204 = vst [vmem:[#allocation3 + $0x20] sm:$0xff] %v5190_v58 }
0x1473   :  { %v5154_v22 = vpop.permute.xlu0 %5153  ;;  %v5149_v43 = vpop.permute.xlu1 %5148 }
0x1474   :  { %v5193_v39 = vsel %vm5115_vm12, %v5154_v22, %v3371_v17  ;;  %v5192_v15 = vsel %vm5115_vm12, %v5149_v43, %v10459_v45 }
0x1475   :  { %5207 = vst [vmem:[#allocation3 + $0x38] sm:$0xff] %v5193_v39  ;;  %5206 = vst [vmem:[#allocation3 + $0x30] sm:$0xff] %v5192_v15 }
0x1477   :  { %v5164_v59 = vpop.permute.xlu0 %5163  ;;  %v5159_v29 = vpop.permute.xlu1 %5158 }
0x1478   :  { %v5195_v21 = vsel %vm5115_vm12, %v5164_v59, %v3373_v24  ;;  %v5194_v63 = vsel %vm5115_vm12, %v5159_v29, %v3372_v50 }
0x1479   :  { %5209 = vst [vmem:[#allocation3 + $0x48] sm:$0xff] %v5195_v21  ;;  %5208 = vst [vmem:[#allocation3 + $0x40] sm:$0xff] %v5194_v63 }
0x147b   :  { %v5174_v9 = vpop.permute.xlu0 %5173  ;;  %v5169_v55 = vpop.permute.xlu1 %5168 }
0x147c   :  { %v5197_v54 = vsel %vm5115_vm12, %v5174_v9, %v3375_v36  ;;  %v5196_v7 = vsel %vm5115_vm12, %v5169_v55, %v3374_v51 }
0x147d   :  { %5211 = vst [vmem:[#allocation3 + $0x58] sm:$0xff] %v5197_v54  ;;  %5210 = vst [vmem:[#allocation3 + $0x50] sm:$0xff] %v5196_v7 }
0x147f   :  { %v5184_v56 = vpop.permute.xlu0 %5183  ;;  %v5179_v1 = vpop.permute.xlu1 %5178 }
0x1480   :  { %v5199_v37 = vsel %vm5115_vm12, %v5184_v56, %v3377_v4  ;;  %v5198_v6 = vsel %vm5115_vm12, %v5179_v1, %v3376_v47 }
0x1481   :  { %5213 = vst [vmem:[#allocation3 + $0x68] sm:$0xff] %v5199_v37  ;;  %5212 = vst [vmem:[#allocation3 + $0x60] sm:$0xff] %v5198_v6 }
0x1482   :  { %7045 = shalt.err (!%p7042_p4)
}
0x1483   :  { %s7061_s18 = smov 128   ;;  %s7062_s8 = smov 8  }
0x1484   :  { %5225 = dma.vmem_to_hbm [thread:$0]  %s5220_s28, 1792, %s10257_s22, [#allocation4], %s7061_s18, %s7061_s18, %s7062_s8  }
0x1485   :  { %7054 = dma.done.wait [#allocation4], 1792  }
0x1486   :  { %7055 = vsyncadd [#allocation4], 4294965504 }
0x1487   :  { %5229 = vsyncpa [#allocation4], 1 }

</bundles_post_ra>
